<compile_context>
chip_gen: v7x
topology: tpu7x:2x2x1
jax: 0.10.0
libtpu: 0.0.40
codegen_flags: <defaults>
</compile_context>

<pallas_src>
import functools

import numpy as np
import jax
import jax.numpy as jnp
from jax.experimental import pallas as pl
from jax.experimental.pallas import tpu as pltpu


# ----------------------------------------------------------------------------
# Reference size helper (verbatim semantics from the PyTorch file)
# ----------------------------------------------------------------------------
def wavelet_scattering_size(J, max_order=1, L=8, A=4):
    order0_size = 1
    order1_size = L * J * A
    output_size = order0_size + order1_size
    if max_order == 2:
        order2_size = L ** 2 * J * (J - 1) // 2
        output_size += order2_size
    return output_size


# ----------------------------------------------------------------------------
# Pallas GEMM kernel with fused epilogue (modulus mask, shift, ReLU6)
# ----------------------------------------------------------------------------
TN = 128                      # one lane-wide output tile; N <= 128 in this net


def _round_up(x, m):
    return ((x + m - 1) // m) * m


def _choose_tm(M):
    """Large tiles for full-resolution layers, tight tiles for tiny GEMMs.

    Keeps >=2 blocks on the parallel M axis for the big layers (megacore) and
    avoids padding M=32 up to a 128/512 tile at scattering resolution."""
    if M >= 1024:
        return 512
    if M >= 512:
        return 256
    if M >= 256:
        return 128
    return max(16, _round_up(M, 16))


def _gemm_epilogue_kernel(x_ref, w_ref, side_ref, o_ref, *, has_abs, relu6):
    # Full-K resident: one MXU dot per (i, j) tile, no accumulator scratch.
    v = jnp.dot(x_ref[...], w_ref[...], preferred_element_type=jnp.float32)
    side = side_ref[...]                        # (2, TN): row0 mask, row1 shift
    if has_abs:
        v = jnp.where(side[0:1, :] != 0.0, jnp.abs(v), v)   # scattering modulus
    v = v + side[1:2, :]                        # bias + folded BatchNorm shift
    if relu6:
        v = jnp.clip(v, 0.0, 6.0)
    o_ref[...] = v.astype(o_ref.dtype)


def gemm_epilogue(x, w, mask, shift, *, has_abs, relu6,
                  out_dtype=jnp.bfloat16):
    """x:(M,K) @ w:(K,N) + fused epilogue. Operands cast to bf16, f32 accum."""
    M, K = x.shape
    K2, N = w.shape
    assert K == K2
    tm = _choose_tm(M)
    Mp = _round_up(M, tm)
    Np = _round_up(N, TN)

    xp = x.astype(jnp.bfloat16)
    if Mp != M:
        xp = jnp.pad(xp, ((0, Mp - M), (0, 0)))
    wp = w.astype(jnp.bfloat16)
    if Np != N:
        wp = jnp.pad(wp, ((0, 0), (0, Np - N)))
    side = jnp.stack([
        jnp.pad(mask.astype(jnp.float32), (0, Np - N)),
        jnp.pad(shift.astype(jnp.float32), (0, Np - N)),
    ])                                                     # (2, Np)

    grid = (Mp // tm, Np // TN)
    out = pl.pallas_call(
        functools.partial(_gemm_epilogue_kernel, has_abs=has_abs, relu6=relu6),
        out_shape=jax.ShapeDtypeStruct((Mp, Np), out_dtype),
        grid=grid,
        in_specs=[
            pl.BlockSpec((tm, K), lambda i, j: (i, 0)),    # stream M tiles
            pl.BlockSpec((K, TN), lambda i, j: (0, j)),    # weight stays in VMEM
            pl.BlockSpec((2, TN), lambda i, j: (0, j)),    # fused mask/shift
        ],
        out_specs=pl.BlockSpec((tm, TN), lambda i, j: (i, j)),
        compiler_params=pltpu.CompilerParams(
            dimension_semantics=("parallel", "parallel")),
    )(xp, wp, side)
    return out[:M, :N]


# ----------------------------------------------------------------------------
# im2col glue + conv wrappers (all heavy math goes through gemm_epilogue)
# ----------------------------------------------------------------------------
def extract_patches(x, kh, kw, stride, pad):
    """x:(B,H,W,C) -> ((B*Ho*Wo, C*kh*kw), (B,Ho,Wo)); K order = (c, ki, kj)."""
    patches = jax.lax.conv_general_dilated_patches(
        x, (kh, kw), (stride, stride), pad,
        dimension_numbers=("NHWC", "HWIO", "NHWC"))
    B, Ho, Wo, K = patches.shape
    return patches.reshape(B * Ho * Wo, K), (B, Ho, Wo)


def conv2d_pallas(x, w_hwio, mask, shift, *, stride=1, pad=((0, 0), (0, 0)),
                  has_abs=False, relu6=False, out_dtype=jnp.bfloat16):
    kh, kw, cin, cout = w_hwio.shape
    if kh == 1 and kw == 1 and stride == 1 and pad == ((0, 0), (0, 0)):
        B, H, W, C = x.shape                       # 1x1 conv: no patch copy
        patches, dims = x.reshape(B * H * W, C), (B, H, W)
    else:
        patches, dims = extract_patches(x, kh, kw, stride, pad)
    # K ordered (c, ki, kj) to match extract_patches
    w_kmat = jnp.transpose(w_hwio, (2, 0, 1, 3)).reshape(cin * kh * kw, cout)
    y = gemm_epilogue(patches, w_kmat, mask, shift,
                      has_abs=has_abs, relu6=relu6, out_dtype=out_dtype)
    B, Ho, Wo = dims
    return y.reshape(B, Ho, Wo, cout)


def conv_transpose2d_s2_pallas(x, w_hwio, shift, *, relu6=True,
                               out_dtype=jnp.bfloat16):
    """ConvTranspose2d(k=3, stride=2, padding=1, output_padding=1) via subpixel
    (phase) decomposition: one GEMM over 2x2 input patches yields all four
    output phases, which are then interleaved into the 2Hx2W output."""
    B, H, W, cin = x.shape
    cout = w_hwio.shape[-1]
    wf = w_hwio[::-1, ::-1]                        # spatially flipped 3x3 HWIO
    # Combined weight: rows ordered (c, di, dj) [matches patches], cols
    # ordered (phase, n).  Output phase (di_o, dj_o) at (2u+di_o, 2v+dj_o)
    # reads x[u+i_off, v+j_off] through tap wf[2*i_off+1-di_o, 2*j_off+1-dj_o].
    wb = jnp.zeros((cin, 4, 4, cout), w_hwio.dtype)
    for di_o in (0, 1):
        for dj_o in (0, 1):
            p = di_o * 2 + dj_o
            for i_off in (0, 1):
                a = 2 * i_off + 1 - di_o
                if not (0 <= a <= 2):
                    continue
                for j_off in (0, 1):
                    b = 2 * j_off + 1 - dj_o
                    if not (0 <= b <= 2):
                        continue
                    wb = wb.at[:, i_off * 2 + j_off, p, :].set(wf[a, b])
    w_big = wb.reshape(cin * 4, 4 * cout)
    patches, _ = extract_patches(x, 2, 2, 1, ((0, 1), (0, 1)))
    y = gemm_epilogue(patches, w_big,
                      jnp.zeros((4 * cout,), jnp.float32), jnp.tile(shift, 4),
                      has_abs=False, relu6=relu6, out_dtype=out_dtype)
    y = y.reshape(B, H, W, 2, 2, cout)
    y = jnp.transpose(y, (0, 1, 3, 2, 4, 5)).reshape(B, 2 * H, 2 * W, cout)
    return y


# ----------------------------------------------------------------------------
# Deterministic parameter construction
# ----------------------------------------------------------------------------
def scattering_filter_bank(J, L=8, A=4):
    """Deterministic Gabor/Gaussian bank, (1 + L*J*A, k, k) float32."""
    k = 2 * (2 ** J) + 1
    r = np.arange(k, dtype=np.float64) - k // 2
    yy, xx = np.meshgrid(r, r, indexing="ij")
    filters = []
    sigma0 = 0.8 * (2 ** J)
    g = np.exp(-(xx ** 2 + yy ** 2) / (2.0 * sigma0 ** 2))
    filters.append(g / g.sum())                      # order-0 low-pass
    for j in range(J):
        sigma = 0.8 * (2 ** j)
        xi = 3.0 * np.pi / 4.0 / (2 ** j)
        env = np.exp(-(xx ** 2 + yy ** 2) / (2.0 * sigma ** 2))
        for l in range(L):
            theta = np.pi * l / L
            u = xx * np.cos(theta) + yy * np.sin(theta)
            for a in range(A):
                phase = np.pi * a / A
                w = env * np.cos(xi * u + phase)
                w = w - env * (w.sum() / env.sum())  # zero mean
                filters.append(w / (np.abs(w).sum() + 1e-8))
    bank = np.stack(filters, axis=0).astype(np.float32)
    assert bank.shape[0] == wavelet_scattering_size(J, 1, L, A)
    return jnp.asarray(bank)


def init_conv(key, kh, kw, cin, cout):
    kw_, kb_ = jax.random.split(key)
    fan = kh * kw * cin
    w = jax.random.normal(kw_, (kh, kw, cin, cout), jnp.float32) / np.sqrt(fan)
    b = 0.01 * jax.random.normal(kb_, (cout,), jnp.float32)
    return {"w": w, "b": b}


def init_bn(key, c):
    k1, k2, k3, k4 = jax.random.split(key, 4)
    return {
        "gamma": 1.0 + 0.1 * jax.random.normal(k1, (c,), jnp.float32),
        "beta": 0.1 * jax.random.normal(k2, (c,), jnp.float32),
        "mean": 0.1 * jax.random.normal(k3, (c,), jnp.float32),
        "var": 1.0 + 0.1 * jnp.abs(jax.random.normal(k4, (c,), jnp.float32)),
    }


def fold_bn(bias, bn, eps=1e-5):
    """Inference BatchNorm folded onto (conv + bias): y = conv*scale + shift."""
    scale = bn["gamma"] / jnp.sqrt(bn["var"] + eps)
    shift = (bias - bn["mean"]) * scale + bn["beta"]
    return scale, shift


def init_decode_block(key, cin, cout):
    mid = cin // 4
    ks = jax.random.split(key, 6)
    return {
        "conv_a": init_conv(ks[0], 1, 1, cin, mid), "bn_a": init_bn(ks[1], mid),
        "convt": init_conv(ks[2], 3, 3, mid, mid), "bn_t": init_bn(ks[3], mid),
        "conv_b": init_conv(ks[4], 1, 1, mid, cout), "bn_b": init_bn(ks[5], cout),
    }


def init_params(key):
    L, A = 8, 4
    size1 = wavelet_scattering_size(1, 1, L, A)   # 33
    size2 = wavelet_scattering_size(2, 1, L, A)   # 65
    size3 = wavelet_scattering_size(3, 1, L, A)   # 97
    ks = jax.random.split(key, 4)
    return {
        "bank1": scattering_filter_bank(1, L, A),
        "bank2": scattering_filter_bank(2, L, A),
        "bank3": scattering_filter_bank(3, L, A),
        # data-flow-consistent in_channels (see TODO(synk) at top of file)
        "decode3": init_decode_block(ks[0], size3, 64),
        "decode2": init_decode_block(ks[1], 64 + size2, 32),
        "decode1": init_decode_block(ks[2], 32 + size1, 16),
        "res": init_conv(ks[3], 3, 3, 16, 11),
    }


# ----------------------------------------------------------------------------
# Model forward (NHWC internally, NCHW at the interface)
# ----------------------------------------------------------------------------
def scattering_apply(x_nhwc, bank, J):
    Nf, k, _ = bank.shape
    w_hwio = jnp.transpose(bank, (1, 2, 0))[:, :, None, :]    # (k,k,1,Nf)
    mask = jnp.ones((Nf,), jnp.float32).at[0].set(0.0)        # |.| on order-1
    shift = jnp.zeros((Nf,), jnp.float32)
    s, p = 2 ** J, k // 2
    return conv2d_pallas(x_nhwc, w_hwio, mask, shift,
                         stride=s, pad=((p, p), (p, p)),
                         has_abs=True, relu6=False)


def _conv1x1_bn_relu6(x, conv, bn):
    scale, shift = fold_bn(conv["b"], bn)
    w_scaled = conv["w"] * scale[None, None, None, :]   # fold BN scale (no |.|)
    cout = conv["w"].shape[-1]
    return conv2d_pallas(x, w_scaled, jnp.zeros((cout,), jnp.float32), shift,
                         relu6=True)


def decode_block(x, p):
    x = _conv1x1_bn_relu6(x, p["conv_a"], p["bn_a"])          # 1x1 + BN + ReLU6
    scale, shift = fold_bn(p["convt"]["b"], p["bn_t"])
    x = conv_transpose2d_s2_pallas(                           # ConvT s2 + BN + ReLU6
        x, p["convt"]["w"] * scale[None, None, None, :], shift, relu6=True)
    x = _conv1x1_bn_relu6(x, p["conv_b"], p["bn_b"])          # 1x1 + BN + ReLU6
    return x


def model_forward(x_nchw, params):
    x = jnp.transpose(x_nchw, (0, 2, 3, 1)).astype(jnp.bfloat16)  # NCHW -> NHWC
    e1 = scattering_apply(x, params["bank1"], 1)              # (B, H/2, W/2, 33)
    e2 = scattering_apply(x, params["bank2"], 2)              # (B, H/4, W/4, 65)
    e3 = scattering_apply(x, params["bank3"], 3)              # (B, H/8, W/8, 97)
    d3 = jnp.concatenate([decode_block(e3, params["decode3"]), e2], axis=-1)
    d2 = jnp.concatenate([decode_block(d3, params["decode2"]), e1], axis=-1)
    d1 = decode_block(d2, params["decode1"])                  # (B, H, W, 16)
    cout = params["res"]["w"].shape[-1]
    res = conv2d_pallas(d1, params["res"]["w"],
                        jnp.zeros((cout,), jnp.float32), params["res"]["b"],
                        stride=1, pad=((1, 1), (1, 1)), relu6=False,
                        out_dtype=jnp.float32)
    return jnp.transpose(res, (0, 3, 1, 2))                   # NHWC -> NCHW


# ----------------------------------------------------------------------------
if __name__ == "__main__":
    key = jax.random.PRNGKey(0)
    kx, kp = jax.random.split(key)
    B, H, W = 2, 32, 32                      # small, divisible by 2^3 for J=3
    x = jax.random.normal(kx, (B, 1, H, W), jnp.float32)   # NCHW like PyTorch
    params = init_params(kp)

    fwd = jax.jit(lambda inp: model_forward(inp, params))
    out = jax.block_until_ready(fwd(x))

    assert out.shape == (B, 11, H, W), out.shape
    assert bool(jnp.all(jnp.isfinite(out)))
    print("KERNEL_OK")
</pallas_src>

<mosaic_0001>
module attributes {stable_mosaic.version = 11 : i64} {
  func.func @_gemm_epilogue_kernel(%arg0: i32, %arg1: i32, %arg2: memref<32x289xbf16, #tpu.memory_space<vmem>>, %arg3: memref<289x128xbf16, #tpu.memory_space<vmem>>, %arg4: memref<2x128xf32, #tpu.memory_space<vmem>>, %arg5: memref<32x128xbf16, #tpu.memory_space<vmem>>) attributes {dimension_semantics = [#tpu.dimension_semantics<parallel>, #tpu.dimension_semantics<parallel>], iteration_bounds = array<i64: 1, 1>, scalar_prefetch = 0 : i64, scratch_operands = 0 : i64, tpu.core_type = #tpu.core_type<tc>, window_params = [{transform_indices = @transform_0, window_bounds = array<i64: 32, 289>}, {transform_indices = @transform_1, window_bounds = array<i64: 289, 128>}, {transform_indices = @transform_2, window_bounds = array<i64: 2, 128>}, {transform_indices = @transform_3, window_bounds = array<i64: 32, 128>}]} {
    %c0 = arith.constant 0 : index
    %c0_0 = arith.constant 0 : index
    %0 = vector.load %arg2[%c0, %c0_0] : memref<32x289xbf16, #tpu.memory_space<vmem>>, vector<32x289xbf16>
    %c0_1 = arith.constant 0 : index
    %c0_2 = arith.constant 0 : index
    %1 = vector.load %arg3[%c0_1, %c0_2] : memref<289x128xbf16, #tpu.memory_space<vmem>>, vector<289x128xbf16>
    %cst = arith.constant dense<0.000000e+00> : vector<32x128xf32>
    %2 = tpu.matmul %0, %1, %cst {dimension_numbers = #tpu.dot_dimension_numbers<[1], [0], [0], [1], [0, 0, 1, 1], [], []>} : vector<32x289xbf16>, vector<289x128xbf16>, vector<32x128xf32> -> vector<32x128xf32>
    %c0_3 = arith.constant 0 : index
    %c0_4 = arith.constant 0 : index
    %3 = vector.load %arg4[%c0_3, %c0_4] : memref<2x128xf32, #tpu.memory_space<vmem>>, vector<2x128xf32>
    %4 = vector.extract_strided_slice %3 {offsets = [0, 0], sizes = [1, 128], strides = [1, 1]} : vector<2x128xf32> to vector<1x128xf32>
    %cst_5 = arith.constant 0.000000e+00 : f32
    %5 = vector.broadcast %cst_5 : f32 to vector<1x128xf32>
    %6 = arith.cmpf one, %4, %5 : vector<1x128xf32>
    %7 = math.absf %2 : vector<32x128xf32>
    %8 = vector.shape_cast %6 : vector<1x128xi1> to vector<1x128xi1>
    %9 = vector.broadcast %8 : vector<1x128xi1> to vector<32x128xi1>
    %10 = arith.select %9, %7, %2 : vector<32x128xi1>, vector<32x128xf32>
    %11 = vector.extract_strided_slice %3 {offsets = [1, 0], sizes = [1, 128], strides = [1, 1]} : vector<2x128xf32> to vector<1x128xf32>
    %12 = vector.broadcast %11 : vector<1x128xf32> to vector<32x128xf32>
    %13 = arith.addf %10, %12 : vector<32x128xf32>
    %14 = arith.truncf %13 : vector<32x128xf32> to vector<32x128xbf16>
    %c0_6 = arith.constant 0 : index
    %c0_7 = arith.constant 0 : index
    %15 = vector.load %arg5[%c0_6, %c0_7] : memref<32x128xbf16, #tpu.memory_space<vmem>>, vector<32x128xbf16>
    tpu.vector_store %arg5[%c0_6, %c0_7], %14 {strides = array<i32>} : memref<32x128xbf16, #tpu.memory_space<vmem>>, vector<32x128xbf16>,
    return
  }
  func.func @transform_0(%arg0: i32, %arg1: i32) -> (i32, i32) {
    %c0_i32 = arith.constant 0 : i32
    %c0_i32_0 = arith.constant 0 : i32
    return %arg0, %c0_i32 : i32, i32
  }
  func.func @transform_1(%arg0: i32, %arg1: i32) -> (i32, i32) {
    %c0_i32 = arith.constant 0 : i32
    %c0_i32_0 = arith.constant 0 : i32
    return %c0_i32, %arg1 : i32, i32
  }
  func.func @transform_2(%arg0: i32, %arg1: i32) -> (i32, i32) {
    %c0_i32 = arith.constant 0 : i32
    %c0_i32_0 = arith.constant 0 : i32
    return %c0_i32, %arg1 : i32, i32
  }
  func.func @transform_3(%arg0: i32, %arg1: i32) -> (i32, i32) {
    %c0_i32 = arith.constant 0 : i32
    return %arg0, %arg1 : i32, i32
  }
}

module attributes {stable_mosaic.version = 11 : i64} {
  func.func @_gemm_epilogue_kernel(%arg0: i32, %arg1: i32, %arg2: memref<32x97xbf16, #tpu.memory_space<vmem>>, %arg3: memref<97x128xbf16, #tpu.memory_space<vmem>>, %arg4: memref<2x128xf32, #tpu.memory_space<vmem>>, %arg5: memref<32x128xbf16, #tpu.memory_space<vmem>>) attributes {dimension_semantics = [#tpu.dimension_semantics<parallel>, #tpu.dimension_semantics<parallel>], iteration_bounds = array<i64: 1, 1>, scalar_prefetch = 0 : i64, scratch_operands = 0 : i64, tpu.core_type = #tpu.core_type<tc>, window_params = [{transform_indices = @transform_0, window_bounds = array<i64: 32, 97>}, {transform_indices = @transform_1, window_bounds = array<i64: 97, 128>}, {transform_indices = @transform_2, window_bounds = array<i64: 2, 128>}, {transform_indices = @transform_3, window_bounds = array<i64: 32, 128>}]} {
    %c0 = arith.constant 0 : index
    %c0_0 = arith.constant 0 : index
    %0 = vector.load %arg2[%c0, %c0_0] : memref<32x97xbf16, #tpu.memory_space<vmem>>, vector<32x97xbf16>
    %c0_1 = arith.constant 0 : index
    %c0_2 = arith.constant 0 : index
    %1 = vector.load %arg3[%c0_1, %c0_2] : memref<97x128xbf16, #tpu.memory_space<vmem>>, vector<97x128xbf16>
    %cst = arith.constant dense<0.000000e+00> : vector<32x128xf32>
    %2 = tpu.matmul %0, %1, %cst {dimension_numbers = #tpu.dot_dimension_numbers<[1], [0], [0], [1], [0, 0, 1, 1], [], []>} : vector<32x97xbf16>, vector<97x128xbf16>, vector<32x128xf32> -> vector<32x128xf32>
    %c0_3 = arith.constant 0 : index
    %c0_4 = arith.constant 0 : index
    %3 = vector.load %arg4[%c0_3, %c0_4] : memref<2x128xf32, #tpu.memory_space<vmem>>, vector<2x128xf32>
    %4 = vector.extract_strided_slice %3 {offsets = [1, 0], sizes = [1, 128], strides = [1, 1]} : vector<2x128xf32> to vector<1x128xf32>
    %5 = vector.broadcast %4 : vector<1x128xf32> to vector<32x128xf32>
    %6 = arith.addf %2, %5 : vector<32x128xf32>
    %cst_5 = arith.constant 0.000000e+00 : f32
    %cst_6 = arith.constant 6.000000e+00 : f32
    %7 = vector.broadcast %cst_5 : f32 to vector<32x128xf32>
    %8 = arith.maximumf %7, %6 : vector<32x128xf32>
    %9 = vector.broadcast %cst_6 : f32 to vector<32x128xf32>
    %10 = arith.minimumf %9, %8 : vector<32x128xf32>
    %11 = arith.truncf %10 : vector<32x128xf32> to vector<32x128xbf16>
    %c0_7 = arith.constant 0 : index
    %c0_8 = arith.constant 0 : index
    %12 = vector.load %arg5[%c0_7, %c0_8] : memref<32x128xbf16, #tpu.memory_space<vmem>>, vector<32x128xbf16>
    tpu.vector_store %arg5[%c0_7, %c0_8], %11 {strides = array<i32>} : memref<32x128xbf16, #tpu.memory_space<vmem>>, vector<32x128xbf16>,
    return
  }
  func.func @transform_0(%arg0: i32, %arg1: i32) -> (i32, i32) {
    %c0_i32 = arith.constant 0 : i32
    %c0_i32_0 = arith.constant 0 : i32
    return %arg0, %c0_i32 : i32, i32
  }
  func.func @transform_1(%arg0: i32, %arg1: i32) -> (i32, i32) {
    %c0_i32 = arith.constant 0 : i32
    %c0_i32_0 = arith.constant 0 : i32
    return %c0_i32, %arg1 : i32, i32
  }
  func.func @transform_2(%arg0: i32, %arg1: i32) -> (i32, i32) {
    %c0_i32 = arith.constant 0 : i32
    %c0_i32_0 = arith.constant 0 : i32
    return %c0_i32, %arg1 : i32, i32
  }
  func.func @transform_3(%arg0: i32, %arg1: i32) -> (i32, i32) {
    %c0_i32 = arith.constant 0 : i32
    return %arg0, %arg1 : i32, i32
  }
}

module attributes {stable_mosaic.version = 11 : i64} {
  func.func @_gemm_epilogue_kernel(%arg0: i32, %arg1: i32, %arg2: memref<32x96xbf16, #tpu.memory_space<vmem>>, %arg3: memref<96x128xbf16, #tpu.memory_space<vmem>>, %arg4: memref<2x128xf32, #tpu.memory_space<vmem>>, %arg5: memref<32x128xbf16, #tpu.memory_space<vmem>>) attributes {dimension_semantics = [#tpu.dimension_semantics<parallel>, #tpu.dimension_semantics<parallel>], iteration_bounds = array<i64: 1, 1>, scalar_prefetch = 0 : i64, scratch_operands = 0 : i64, tpu.core_type = #tpu.core_type<tc>, window_params = [{transform_indices = @transform_0, window_bounds = array<i64: 32, 96>}, {transform_indices = @transform_1, window_bounds = array<i64: 96, 128>}, {transform_indices = @transform_2, window_bounds = array<i64: 2, 128>}, {transform_indices = @transform_3, window_bounds = array<i64: 32, 128>}]} {
    %c0 = arith.constant 0 : index
    %c0_0 = arith.constant 0 : index
    %0 = vector.load %arg2[%c0, %c0_0] : memref<32x96xbf16, #tpu.memory_space<vmem>>, vector<32x96xbf16>
    %c0_1 = arith.constant 0 : index
    %c0_2 = arith.constant 0 : index
    %1 = vector.load %arg3[%c0_1, %c0_2] : memref<96x128xbf16, #tpu.memory_space<vmem>>, vector<96x128xbf16>
    %cst = arith.constant dense<0.000000e+00> : vector<32x128xf32>
    %2 = tpu.matmul %0, %1, %cst {dimension_numbers = #tpu.dot_dimension_numbers<[1], [0], [0], [1], [0, 0, 1, 1], [], []>} : vector<32x96xbf16>, vector<96x128xbf16>, vector<32x128xf32> -> vector<32x128xf32>
    %c0_3 = arith.constant 0 : index
    %c0_4 = arith.constant 0 : index
    %3 = vector.load %arg4[%c0_3, %c0_4] : memref<2x128xf32, #tpu.memory_space<vmem>>, vector<2x128xf32>
    %4 = vector.extract_strided_slice %3 {offsets = [1, 0], sizes = [1, 128], strides = [1, 1]} : vector<2x128xf32> to vector<1x128xf32>
    %5 = vector.broadcast %4 : vector<1x128xf32> to vector<32x128xf32>
    %6 = arith.addf %2, %5 : vector<32x128xf32>
    %cst_5 = arith.constant 0.000000e+00 : f32
    %cst_6 = arith.constant 6.000000e+00 : f32
    %7 = vector.broadcast %cst_5 : f32 to vector<32x128xf32>
    %8 = arith.maximumf %7, %6 : vector<32x128xf32>
    %9 = vector.broadcast %cst_6 : f32 to vector<32x128xf32>
    %10 = arith.minimumf %9, %8 : vector<32x128xf32>
    %11 = arith.truncf %10 : vector<32x128xf32> to vector<32x128xbf16>
    %c0_7 = arith.constant 0 : index
    %c0_8 = arith.constant 0 : index
    %12 = vector.load %arg5[%c0_7, %c0_8] : memref<32x128xbf16, #tpu.memory_space<vmem>>, vector<32x128xbf16>
    tpu.vector_store %arg5[%c0_7, %c0_8], %11 {strides = array<i32>} : memref<32x128xbf16, #tpu.memory_space<vmem>>, vector<32x128xbf16>,
    return
  }
  func.func @transform_0(%arg0: i32, %arg1: i32) -> (i32, i32) {
    %c0_i32 = arith.constant 0 : i32
    %c0_i32_0 = arith.constant 0 : i32
    return %arg0, %c0_i32 : i32, i32
  }
  func.func @transform_1(%arg0: i32, %arg1: i32) -> (i32, i32) {
    %c0_i32 = arith.constant 0 : i32
    %c0_i32_0 = arith.constant 0 : i32
    return %c0_i32, %arg1 : i32, i32
  }
  func.func @transform_2(%arg0: i32, %arg1: i32) -> (i32, i32) {
    %c0_i32 = arith.constant 0 : i32
    %c0_i32_0 = arith.constant 0 : i32
    return %c0_i32, %arg1 : i32, i32
  }
  func.func @transform_3(%arg0: i32, %arg1: i32) -> (i32, i32) {
    %c0_i32 = arith.constant 0 : i32
    return %arg0, %arg1 : i32, i32
  }
}

module attributes {stable_mosaic.version = 11 : i64} {
  func.func @_gemm_epilogue_kernel(%arg0: i32, %arg1: i32, %arg2: memref<128x24xbf16, #tpu.memory_space<vmem>>, %arg3: memref<24x128xbf16, #tpu.memory_space<vmem>>, %arg4: memref<2x128xf32, #tpu.memory_space<vmem>>, %arg5: memref<128x128xbf16, #tpu.memory_space<vmem>>) attributes {dimension_semantics = [#tpu.dimension_semantics<parallel>, #tpu.dimension_semantics<parallel>], iteration_bounds = array<i64: 1, 1>, scalar_prefetch = 0 : i64, scratch_operands = 0 : i64, tpu.core_type = #tpu.core_type<tc>, window_params = [{transform_indices = @transform_0, window_bounds = array<i64: 128, 24>}, {transform_indices = @transform_1, window_bounds = array<i64: 24, 128>}, {transform_indices = @transform_2, window_bounds = array<i64: 2, 128>}, {transform_indices = @transform_3, window_bounds = array<i64: 128, 128>}]} {
    %c0 = arith.constant 0 : index
    %c0_0 = arith.constant 0 : index
    %0 = vector.load %arg2[%c0, %c0_0] : memref<128x24xbf16, #tpu.memory_space<vmem>>, vector<128x24xbf16>
    %c0_1 = arith.constant 0 : index
    %c0_2 = arith.constant 0 : index
    %1 = vector.load %arg3[%c0_1, %c0_2] : memref<24x128xbf16, #tpu.memory_space<vmem>>, vector<24x128xbf16>
    %cst = arith.constant dense<0.000000e+00> : vector<128x128xf32>
    %2 = tpu.matmul %0, %1, %cst {dimension_numbers = #tpu.dot_dimension_numbers<[1], [0], [0], [1], [0, 0, 1, 1], [], []>} : vector<128x24xbf16>, vector<24x128xbf16>, vector<128x128xf32> -> vector<128x128xf32>
    %c0_3 = arith.constant 0 : index
    %c0_4 = arith.constant 0 : index
    %3 = vector.load %arg4[%c0_3, %c0_4] : memref<2x128xf32, #tpu.memory_space<vmem>>, vector<2x128xf32>
    %4 = vector.extract_strided_slice %3 {offsets = [1, 0], sizes = [1, 128], strides = [1, 1]} : vector<2x128xf32> to vector<1x128xf32>
    %5 = vector.broadcast %4 : vector<1x128xf32> to vector<128x128xf32>
    %6 = arith.addf %2, %5 : vector<128x128xf32>
    %cst_5 = arith.constant 0.000000e+00 : f32
    %cst_6 = arith.constant 6.000000e+00 : f32
    %7 = vector.broadcast %cst_5 : f32 to vector<128x128xf32>
    %8 = arith.maximumf %7, %6 : vector<128x128xf32>
    %9 = vector.broadcast %cst_6 : f32 to vector<128x128xf32>
    %10 = arith.minimumf %9, %8 : vector<128x128xf32>
    %11 = arith.truncf %10 : vector<128x128xf32> to vector<128x128xbf16>
    %c0_7 = arith.constant 0 : index
    %c0_8 = arith.constant 0 : index
    %12 = vector.load %arg5[%c0_7, %c0_8] : memref<128x128xbf16, #tpu.memory_space<vmem>>, vector<128x128xbf16>
    tpu.vector_store %arg5[%c0_7, %c0_8], %11 {strides = array<i32>} : memref<128x128xbf16, #tpu.memory_space<vmem>>, vector<128x128xbf16>,
    return
  }
  func.func @transform_0(%arg0: i32, %arg1: i32) -> (i32, i32) {
    %c0_i32 = arith.constant 0 : i32
    %c0_i32_0 = arith.constant 0 : i32
    return %arg0, %c0_i32 : i32, i32
  }
  func.func @transform_1(%arg0: i32, %arg1: i32) -> (i32, i32) {
    %c0_i32 = arith.constant 0 : i32
    %c0_i32_0 = arith.constant 0 : i32
    return %c0_i32, %arg1 : i32, i32
  }
  func.func @transform_2(%arg0: i32, %arg1: i32) -> (i32, i32) {
    %c0_i32 = arith.constant 0 : i32
    %c0_i32_0 = arith.constant 0 : i32
    return %c0_i32, %arg1 : i32, i32
  }
  func.func @transform_3(%arg0: i32, %arg1: i32) -> (i32, i32) {
    %c0_i32 = arith.constant 0 : i32
    return %arg0, %arg1 : i32, i32
  }
}

module attributes {stable_mosaic.version = 11 : i64} {
  func.func @_gemm_epilogue_kernel(%arg0: i32, %arg1: i32, %arg2: memref<256x25xbf16, #tpu.memory_space<vmem>>, %arg3: memref<25x128xbf16, #tpu.memory_space<vmem>>, %arg4: memref<2x128xf32, #tpu.memory_space<vmem>>, %arg5: memref<256x128xbf16, #tpu.memory_space<vmem>>) attributes {dimension_semantics = [#tpu.dimension_semantics<parallel>, #tpu.dimension_semantics<parallel>], iteration_bounds = array<i64: 2, 1>, scalar_prefetch = 0 : i64, scratch_operands = 0 : i64, tpu.core_type = #tpu.core_type<tc>, window_params = [{transform_indices = @transform_0, window_bounds = array<i64: 256, 25>}, {transform_indices = @transform_1, window_bounds = array<i64: 25, 128>}, {transform_indices = @transform_2, window_bounds = array<i64: 2, 128>}, {transform_indices = @transform_3, window_bounds = array<i64: 256, 128>}]} {
    %c0 = arith.constant 0 : index
    %c0_0 = arith.constant 0 : index
    %0 = vector.load %arg2[%c0, %c0_0] : memref<256x25xbf16, #tpu.memory_space<vmem>>, vector<256x25xbf16>
    %c0_1 = arith.constant 0 : index
    %c0_2 = arith.constant 0 : index
    %1 = vector.load %arg3[%c0_1, %c0_2] : memref<25x128xbf16, #tpu.memory_space<vmem>>, vector<25x128xbf16>
    %cst = arith.constant dense<0.000000e+00> : vector<256x128xf32>
    %2 = tpu.matmul %0, %1, %cst {dimension_numbers = #tpu.dot_dimension_numbers<[1], [0], [0], [1], [0, 0, 1, 1], [], []>} : vector<256x25xbf16>, vector<25x128xbf16>, vector<256x128xf32> -> vector<256x128xf32>
    %c0_3 = arith.constant 0 : index
    %c0_4 = arith.constant 0 : index
    %3 = vector.load %arg4[%c0_3, %c0_4] : memref<2x128xf32, #tpu.memory_space<vmem>>, vector<2x128xf32>
    %4 = vector.extract_strided_slice %3 {offsets = [0, 0], sizes = [1, 128], strides = [1, 1]} : vector<2x128xf32> to vector<1x128xf32>
    %cst_5 = arith.constant 0.000000e+00 : f32
    %5 = vector.broadcast %cst_5 : f32 to vector<1x128xf32>
    %6 = arith.cmpf one, %4, %5 : vector<1x128xf32>
    %7 = math.absf %2 : vector<256x128xf32>
    %8 = vector.shape_cast %6 : vector<1x128xi1> to vector<1x128xi1>
    %9 = vector.broadcast %8 : vector<1x128xi1> to vector<256x128xi1>
    %10 = arith.select %9, %7, %2 : vector<256x128xi1>, vector<256x128xf32>
    %11 = vector.extract_strided_slice %3 {offsets = [1, 0], sizes = [1, 128], strides = [1, 1]} : vector<2x128xf32> to vector<1x128xf32>
    %12 = vector.broadcast %11 : vector<1x128xf32> to vector<256x128xf32>
    %13 = arith.addf %10, %12 : vector<256x128xf32>
    %14 = arith.truncf %13 : vector<256x128xf32> to vector<256x128xbf16>
    %c0_6 = arith.constant 0 : index
    %c0_7 = arith.constant 0 : index
    %15 = vector.load %arg5[%c0_6, %c0_7] : memref<256x128xbf16, #tpu.memory_space<vmem>>, vector<256x128xbf16>
    tpu.vector_store %arg5[%c0_6, %c0_7], %14 {strides = array<i32>} : memref<256x128xbf16, #tpu.memory_space<vmem>>, vector<256x128xbf16>,
    return
  }
  func.func @transform_0(%arg0: i32, %arg1: i32) -> (i32, i32) {
    %c0_i32 = arith.constant 0 : i32
    %c0_i32_0 = arith.constant 0 : i32
    return %arg0, %c0_i32 : i32, i32
  }
  func.func @transform_1(%arg0: i32, %arg1: i32) -> (i32, i32) {
    %c0_i32 = arith.constant 0 : i32
    %c0_i32_0 = arith.constant 0 : i32
    return %c0_i32, %arg1 : i32, i32
  }
  func.func @transform_2(%arg0: i32, %arg1: i32) -> (i32, i32) {
    %c0_i32 = arith.constant 0 : i32
    %c0_i32_0 = arith.constant 0 : i32
    return %c0_i32, %arg1 : i32, i32
  }
  func.func @transform_3(%arg0: i32, %arg1: i32) -> (i32, i32) {
    %c0_i32 = arith.constant 0 : i32
    return %arg0, %arg1 : i32, i32
  }
}

module attributes {stable_mosaic.version = 11 : i64} {
  func.func @_gemm_epilogue_kernel(%arg0: i32, %arg1: i32, %arg2: memref<128x81xbf16, #tpu.memory_space<vmem>>, %arg3: memref<81x128xbf16, #tpu.memory_space<vmem>>, %arg4: memref<2x128xf32, #tpu.memory_space<vmem>>, %arg5: memref<128x128xbf16, #tpu.memory_space<vmem>>) attributes {dimension_semantics = [#tpu.dimension_semantics<parallel>, #tpu.dimension_semantics<parallel>], iteration_bounds = array<i64: 1, 1>, scalar_prefetch = 0 : i64, scratch_operands = 0 : i64, tpu.core_type = #tpu.core_type<tc>, window_params = [{transform_indices = @transform_0, window_bounds = array<i64: 128, 81>}, {transform_indices = @transform_1, window_bounds = array<i64: 81, 128>}, {transform_indices = @transform_2, window_bounds = array<i64: 2, 128>}, {transform_indices = @transform_3, window_bounds = array<i64: 128, 128>}]} {
    %c0 = arith.constant 0 : index
    %c0_0 = arith.constant 0 : index
    %0 = vector.load %arg2[%c0, %c0_0] : memref<128x81xbf16, #tpu.memory_space<vmem>>, vector<128x81xbf16>
    %c0_1 = arith.constant 0 : index
    %c0_2 = arith.constant 0 : index
    %1 = vector.load %arg3[%c0_1, %c0_2] : memref<81x128xbf16, #tpu.memory_space<vmem>>, vector<81x128xbf16>
    %cst = arith.constant dense<0.000000e+00> : vector<128x128xf32>
    %2 = tpu.matmul %0, %1, %cst {dimension_numbers = #tpu.dot_dimension_numbers<[1], [0], [0], [1], [0, 0, 1, 1], [], []>} : vector<128x81xbf16>, vector<81x128xbf16>, vector<128x128xf32> -> vector<128x128xf32>
    %c0_3 = arith.constant 0 : index
    %c0_4 = arith.constant 0 : index
    %3 = vector.load %arg4[%c0_3, %c0_4] : memref<2x128xf32, #tpu.memory_space<vmem>>, vector<2x128xf32>
    %4 = vector.extract_strided_slice %3 {offsets = [0, 0], sizes = [1, 128], strides = [1, 1]} : vector<2x128xf32> to vector<1x128xf32>
    %cst_5 = arith.constant 0.000000e+00 : f32
    %5 = vector.broadcast %cst_5 : f32 to vector<1x128xf32>
    %6 = arith.cmpf one, %4, %5 : vector<1x128xf32>
    %7 = math.absf %2 : vector<128x128xf32>
    %8 = vector.shape_cast %6 : vector<1x128xi1> to vector<1x128xi1>
    %9 = vector.broadcast %8 : vector<1x128xi1> to vector<128x128xi1>
    %10 = arith.select %9, %7, %2 : vector<128x128xi1>, vector<128x128xf32>
    %11 = vector.extract_strided_slice %3 {offsets = [1, 0], sizes = [1, 128], strides = [1, 1]} : vector<2x128xf32> to vector<1x128xf32>
    %12 = vector.broadcast %11 : vector<1x128xf32> to vector<128x128xf32>
    %13 = arith.addf %10, %12 : vector<128x128xf32>
    %14 = arith.truncf %13 : vector<128x128xf32> to vector<128x128xbf16>
    %c0_6 = arith.constant 0 : index
    %c0_7 = arith.constant 0 : index
    %15 = vector.load %arg5[%c0_6, %c0_7] : memref<128x128xbf16, #tpu.memory_space<vmem>>, vector<128x128xbf16>
    tpu.vector_store %arg5[%c0_6, %c0_7], %14 {strides = array<i32>} : memref<128x128xbf16, #tpu.memory_space<vmem>>, vector<128x128xbf16>,
    return
  }
  func.func @transform_0(%arg0: i32, %arg1: i32) -> (i32, i32) {
    %c0_i32 = arith.constant 0 : i32
    %c0_i32_0 = arith.constant 0 : i32
    return %arg0, %c0_i32 : i32, i32
  }
  func.func @transform_1(%arg0: i32, %arg1: i32) -> (i32, i32) {
    %c0_i32 = arith.constant 0 : i32
    %c0_i32_0 = arith.constant 0 : i32
    return %c0_i32, %arg1 : i32, i32
  }
  func.func @transform_2(%arg0: i32, %arg1: i32) -> (i32, i32) {
    %c0_i32 = arith.constant 0 : i32
    %c0_i32_0 = arith.constant 0 : i32
    return %c0_i32, %arg1 : i32, i32
  }
  func.func @transform_3(%arg0: i32, %arg1: i32) -> (i32, i32) {
    %c0_i32 = arith.constant 0 : i32
    return %arg0, %arg1 : i32, i32
  }
}

module attributes {stable_mosaic.version = 11 : i64} {
  func.func @_gemm_epilogue_kernel(%arg0: i32, %arg1: i32, %arg2: memref<128x129xbf16, #tpu.memory_space<vmem>>, %arg3: memref<129x128xbf16, #tpu.memory_space<vmem>>, %arg4: memref<2x128xf32, #tpu.memory_space<vmem>>, %arg5: memref<128x128xbf16, #tpu.memory_space<vmem>>) attributes {dimension_semantics = [#tpu.dimension_semantics<parallel>, #tpu.dimension_semantics<parallel>], iteration_bounds = array<i64: 1, 1>, scalar_prefetch = 0 : i64, scratch_operands = 0 : i64, tpu.core_type = #tpu.core_type<tc>, window_params = [{transform_indices = @transform_0, window_bounds = array<i64: 128, 129>}, {transform_indices = @transform_1, window_bounds = array<i64: 129, 128>}, {transform_indices = @transform_2, window_bounds = array<i64: 2, 128>}, {transform_indices = @transform_3, window_bounds = array<i64: 128, 128>}]} {
    %c0 = arith.constant 0 : index
    %c0_0 = arith.constant 0 : index
    %0 = vector.load %arg2[%c0, %c0_0] : memref<128x129xbf16, #tpu.memory_space<vmem>>, vector<128x129xbf16>
    %c0_1 = arith.constant 0 : index
    %c0_2 = arith.constant 0 : index
    %1 = vector.load %arg3[%c0_1, %c0_2] : memref<129x128xbf16, #tpu.memory_space<vmem>>, vector<129x128xbf16>
    %cst = arith.constant dense<0.000000e+00> : vector<128x128xf32>
    %2 = tpu.matmul %0, %1, %cst {dimension_numbers = #tpu.dot_dimension_numbers<[1], [0], [0], [1], [0, 0, 1, 1], [], []>} : vector<128x129xbf16>, vector<129x128xbf16>, vector<128x128xf32> -> vector<128x128xf32>
    %c0_3 = arith.constant 0 : index
    %c0_4 = arith.constant 0 : index
    %3 = vector.load %arg4[%c0_3, %c0_4] : memref<2x128xf32, #tpu.memory_space<vmem>>, vector<2x128xf32>
    %4 = vector.extract_strided_slice %3 {offsets = [1, 0], sizes = [1, 128], strides = [1, 1]} : vector<2x128xf32> to vector<1x128xf32>
    %5 = vector.broadcast %4 : vector<1x128xf32> to vector<128x128xf32>
    %6 = arith.addf %2, %5 : vector<128x128xf32>
    %cst_5 = arith.constant 0.000000e+00 : f32
    %cst_6 = arith.constant 6.000000e+00 : f32
    %7 = vector.broadcast %cst_5 : f32 to vector<128x128xf32>
    %8 = arith.maximumf %7, %6 : vector<128x128xf32>
    %9 = vector.broadcast %cst_6 : f32 to vector<128x128xf32>
    %10 = arith.minimumf %9, %8 : vector<128x128xf32>
    %11 = arith.truncf %10 : vector<128x128xf32> to vector<128x128xbf16>
    %c0_7 = arith.constant 0 : index
    %c0_8 = arith.constant 0 : index
    %12 = vector.load %arg5[%c0_7, %c0_8] : memref<128x128xbf16, #tpu.memory_space<vmem>>, vector<128x128xbf16>
    tpu.vector_store %arg5[%c0_7, %c0_8], %11 {strides = array<i32>} : memref<128x128xbf16, #tpu.memory_space<vmem>>, vector<128x128xbf16>,
    return
  }
  func.func @transform_0(%arg0: i32, %arg1: i32) -> (i32, i32) {
    %c0_i32 = arith.constant 0 : i32
    %c0_i32_0 = arith.constant 0 : i32
    return %arg0, %c0_i32 : i32, i32
  }
  func.func @transform_1(%arg0: i32, %arg1: i32) -> (i32, i32) {
    %c0_i32 = arith.constant 0 : i32
    %c0_i32_0 = arith.constant 0 : i32
    return %c0_i32, %arg1 : i32, i32
  }
  func.func @transform_2(%arg0: i32, %arg1: i32) -> (i32, i32) {
    %c0_i32 = arith.constant 0 : i32
    %c0_i32_0 = arith.constant 0 : i32
    return %c0_i32, %arg1 : i32, i32
  }
  func.func @transform_3(%arg0: i32, %arg1: i32) -> (i32, i32) {
    %c0_i32 = arith.constant 0 : i32
    return %arg0, %arg1 : i32, i32
  }
}

module attributes {stable_mosaic.version = 11 : i64} {
  func.func @_gemm_epilogue_kernel(%arg0: i32, %arg1: i32, %arg2: memref<128x128xbf16, #tpu.memory_space<vmem>>, %arg3: memref<128x128xbf16, #tpu.memory_space<vmem>>, %arg4: memref<2x128xf32, #tpu.memory_space<vmem>>, %arg5: memref<128x128xbf16, #tpu.memory_space<vmem>>) attributes {dimension_semantics = [#tpu.dimension_semantics<parallel>, #tpu.dimension_semantics<parallel>], iteration_bounds = array<i64: 1, 1>, scalar_prefetch = 0 : i64, scratch_operands = 0 : i64, tpu.core_type = #tpu.core_type<tc>, window_params = [{transform_indices = @transform_0, window_bounds = array<i64: 128, 128>}, {transform_indices = @transform_1, window_bounds = array<i64: 128, 128>}, {transform_indices = @transform_2, window_bounds = array<i64: 2, 128>}, {transform_indices = @transform_3, window_bounds = array<i64: 128, 128>}]} {
    %c0 = arith.constant 0 : index
    %c0_0 = arith.constant 0 : index
    %0 = vector.load %arg2[%c0, %c0_0] : memref<128x128xbf16, #tpu.memory_space<vmem>>, vector<128x128xbf16>
    %c0_1 = arith.constant 0 : index
    %c0_2 = arith.constant 0 : index
    %1 = vector.load %arg3[%c0_1, %c0_2] : memref<128x128xbf16, #tpu.memory_space<vmem>>, vector<128x128xbf16>
    %cst = arith.constant dense<0.000000e+00> : vector<128x128xf32>
    %2 = tpu.matmul %0, %1, %cst {dimension_numbers = #tpu.dot_dimension_numbers<[1], [0], [0], [1], [0, 0, 1, 1], [], []>} : vector<128x128xbf16>, vector<128x128xbf16>, vector<128x128xf32> -> vector<128x128xf32>
    %c0_3 = arith.constant 0 : index
    %c0_4 = arith.constant 0 : index
    %3 = vector.load %arg4[%c0_3, %c0_4] : memref<2x128xf32, #tpu.memory_space<vmem>>, vector<2x128xf32>
    %4 = vector.extract_strided_slice %3 {offsets = [1, 0], sizes = [1, 128], strides = [1, 1]} : vector<2x128xf32> to vector<1x128xf32>
    %5 = vector.broadcast %4 : vector<1x128xf32> to vector<128x128xf32>
    %6 = arith.addf %2, %5 : vector<128x128xf32>
    %cst_5 = arith.constant 0.000000e+00 : f32
    %cst_6 = arith.constant 6.000000e+00 : f32
    %7 = vector.broadcast %cst_5 : f32 to vector<128x128xf32>
    %8 = arith.maximumf %7, %6 : vector<128x128xf32>
    %9 = vector.broadcast %cst_6 : f32 to vector<128x128xf32>
    %10 = arith.minimumf %9, %8 : vector<128x128xf32>
    %11 = arith.truncf %10 : vector<128x128xf32> to vector<128x128xbf16>
    %c0_7 = arith.constant 0 : index
    %c0_8 = arith.constant 0 : index
    %12 = vector.load %arg5[%c0_7, %c0_8] : memref<128x128xbf16, #tpu.memory_space<vmem>>, vector<128x128xbf16>
    tpu.vector_store %arg5[%c0_7, %c0_8], %11 {strides = array<i32>} : memref<128x128xbf16, #tpu.memory_space<vmem>>, vector<128x128xbf16>,
    return
  }
  func.func @transform_0(%arg0: i32, %arg1: i32) -> (i32, i32) {
    %c0_i32 = arith.constant 0 : i32
    %c0_i32_0 = arith.constant 0 : i32
    return %arg0, %c0_i32 : i32, i32
  }
  func.func @transform_1(%arg0: i32, %arg1: i32) -> (i32, i32) {
    %c0_i32 = arith.constant 0 : i32
    %c0_i32_0 = arith.constant 0 : i32
    return %c0_i32, %arg1 : i32, i32
  }
  func.func @transform_2(%arg0: i32, %arg1: i32) -> (i32, i32) {
    %c0_i32 = arith.constant 0 : i32
    %c0_i32_0 = arith.constant 0 : i32
    return %c0_i32, %arg1 : i32, i32
  }
  func.func @transform_3(%arg0: i32, %arg1: i32) -> (i32, i32) {
    %c0_i32 = arith.constant 0 : i32
    return %arg0, %arg1 : i32, i32
  }
}

module attributes {stable_mosaic.version = 11 : i64} {
  func.func @_gemm_epilogue_kernel(%arg0: i32, %arg1: i32, %arg2: memref<256x32xbf16, #tpu.memory_space<vmem>>, %arg3: memref<32x128xbf16, #tpu.memory_space<vmem>>, %arg4: memref<2x128xf32, #tpu.memory_space<vmem>>, %arg5: memref<256x128xbf16, #tpu.memory_space<vmem>>) attributes {dimension_semantics = [#tpu.dimension_semantics<parallel>, #tpu.dimension_semantics<parallel>], iteration_bounds = array<i64: 2, 1>, scalar_prefetch = 0 : i64, scratch_operands = 0 : i64, tpu.core_type = #tpu.core_type<tc>, window_params = [{transform_indices = @transform_0, window_bounds = array<i64: 256, 32>}, {transform_indices = @transform_1, window_bounds = array<i64: 32, 128>}, {transform_indices = @transform_2, window_bounds = array<i64: 2, 128>}, {transform_indices = @transform_3, window_bounds = array<i64: 256, 128>}]} {
    %c0 = arith.constant 0 : index
    %c0_0 = arith.constant 0 : index
    %0 = vector.load %arg2[%c0, %c0_0] : memref<256x32xbf16, #tpu.memory_space<vmem>>, vector<256x32xbf16>
    %c0_1 = arith.constant 0 : index
    %c0_2 = arith.constant 0 : index
    %1 = vector.load %arg3[%c0_1, %c0_2] : memref<32x128xbf16, #tpu.memory_space<vmem>>, vector<32x128xbf16>
    %cst = arith.constant dense<0.000000e+00> : vector<256x128xf32>
    %2 = tpu.matmul %0, %1, %cst {dimension_numbers = #tpu.dot_dimension_numbers<[1], [0], [0], [1], [0, 0, 1, 1], [], []>} : vector<256x32xbf16>, vector<32x128xbf16>, vector<256x128xf32> -> vector<256x128xf32>
    %c0_3 = arith.constant 0 : index
    %c0_4 = arith.constant 0 : index
    %3 = vector.load %arg4[%c0_3, %c0_4] : memref<2x128xf32, #tpu.memory_space<vmem>>, vector<2x128xf32>
    %4 = vector.extract_strided_slice %3 {offsets = [1, 0], sizes = [1, 128], strides = [1, 1]} : vector<2x128xf32> to vector<1x128xf32>
    %5 = vector.broadcast %4 : vector<1x128xf32> to vector<256x128xf32>
    %6 = arith.addf %2, %5 : vector<256x128xf32>
    %cst_5 = arith.constant 0.000000e+00 : f32
    %cst_6 = arith.constant 6.000000e+00 : f32
    %7 = vector.broadcast %cst_5 : f32 to vector<256x128xf32>
    %8 = arith.maximumf %7, %6 : vector<256x128xf32>
    %9 = vector.broadcast %cst_6 : f32 to vector<256x128xf32>
    %10 = arith.minimumf %9, %8 : vector<256x128xf32>
    %11 = arith.truncf %10 : vector<256x128xf32> to vector<256x128xbf16>
    %c0_7 = arith.constant 0 : index
    %c0_8 = arith.constant 0 : index
    %12 = vector.load %arg5[%c0_7, %c0_8] : memref<256x128xbf16, #tpu.memory_space<vmem>>, vector<256x128xbf16>
    tpu.vector_store %arg5[%c0_7, %c0_8], %11 {strides = array<i32>} : memref<256x128xbf16, #tpu.memory_space<vmem>>, vector<256x128xbf16>,
    return
  }
  func.func @transform_0(%arg0: i32, %arg1: i32) -> (i32, i32) {
    %c0_i32 = arith.constant 0 : i32
    %c0_i32_0 = arith.constant 0 : i32
    return %arg0, %c0_i32 : i32, i32
  }
  func.func @transform_1(%arg0: i32, %arg1: i32) -> (i32, i32) {
    %c0_i32 = arith.constant 0 : i32
    %c0_i32_0 = arith.constant 0 : i32
    return %c0_i32, %arg1 : i32, i32
  }
  func.func @transform_2(%arg0: i32, %arg1: i32) -> (i32, i32) {
    %c0_i32 = arith.constant 0 : i32
    %c0_i32_0 = arith.constant 0 : i32
    return %c0_i32, %arg1 : i32, i32
  }
  func.func @transform_3(%arg0: i32, %arg1: i32) -> (i32, i32) {
    %c0_i32 = arith.constant 0 : i32
    return %arg0, %arg1 : i32, i32
  }
}

module attributes {stable_mosaic.version = 11 : i64} {
  func.func @_gemm_epilogue_kernel(%arg0: i32, %arg1: i32, %arg2: memref<256x65xbf16, #tpu.memory_space<vmem>>, %arg3: memref<65x128xbf16, #tpu.memory_space<vmem>>, %arg4: memref<2x128xf32, #tpu.memory_space<vmem>>, %arg5: memref<256x128xbf16, #tpu.memory_space<vmem>>) attributes {dimension_semantics = [#tpu.dimension_semantics<parallel>, #tpu.dimension_semantics<parallel>], iteration_bounds = array<i64: 2, 1>, scalar_prefetch = 0 : i64, scratch_operands = 0 : i64, tpu.core_type = #tpu.core_type<tc>, window_params = [{transform_indices = @transform_0, window_bounds = array<i64: 256, 65>}, {transform_indices = @transform_1, window_bounds = array<i64: 65, 128>}, {transform_indices = @transform_2, window_bounds = array<i64: 2, 128>}, {transform_indices = @transform_3, window_bounds = array<i64: 256, 128>}]} {
    %c0 = arith.constant 0 : index
    %c0_0 = arith.constant 0 : index
    %0 = vector.load %arg2[%c0, %c0_0] : memref<256x65xbf16, #tpu.memory_space<vmem>>, vector<256x65xbf16>
    %c0_1 = arith.constant 0 : index
    %c0_2 = arith.constant 0 : index
    %1 = vector.load %arg3[%c0_1, %c0_2] : memref<65x128xbf16, #tpu.memory_space<vmem>>, vector<65x128xbf16>
    %cst = arith.constant dense<0.000000e+00> : vector<256x128xf32>
    %2 = tpu.matmul %0, %1, %cst {dimension_numbers = #tpu.dot_dimension_numbers<[1], [0], [0], [1], [0, 0, 1, 1], [], []>} : vector<256x65xbf16>, vector<65x128xbf16>, vector<256x128xf32> -> vector<256x128xf32>
    %c0_3 = arith.constant 0 : index
    %c0_4 = arith.constant 0 : index
    %3 = vector.load %arg4[%c0_3, %c0_4] : memref<2x128xf32, #tpu.memory_space<vmem>>, vector<2x128xf32>
    %4 = vector.extract_strided_slice %3 {offsets = [1, 0], sizes = [1, 128], strides = [1, 1]} : vector<2x128xf32> to vector<1x128xf32>
    %5 = vector.broadcast %4 : vector<1x128xf32> to vector<256x128xf32>
    %6 = arith.addf %2, %5 : vector<256x128xf32>
    %cst_5 = arith.constant 0.000000e+00 : f32
    %cst_6 = arith.constant 6.000000e+00 : f32
    %7 = vector.broadcast %cst_5 : f32 to vector<256x128xf32>
    %8 = arith.maximumf %7, %6 : vector<256x128xf32>
    %9 = vector.broadcast %cst_6 : f32 to vector<256x128xf32>
    %10 = arith.minimumf %9, %8 : vector<256x128xf32>
    %11 = arith.truncf %10 : vector<256x128xf32> to vector<256x128xbf16>
    %c0_7 = arith.constant 0 : index
    %c0_8 = arith.constant 0 : index
    %12 = vector.load %arg5[%c0_7, %c0_8] : memref<256x128xbf16, #tpu.memory_space<vmem>>, vector<256x128xbf16>
    tpu.vector_store %arg5[%c0_7, %c0_8], %11 {strides = array<i32>} : memref<256x128xbf16, #tpu.memory_space<vmem>>, vector<256x128xbf16>,
    return
  }
  func.func @transform_0(%arg0: i32, %arg1: i32) -> (i32, i32) {
    %c0_i32 = arith.constant 0 : i32
    %c0_i32_0 = arith.constant 0 : i32
    return %arg0, %c0_i32 : i32, i32
  }
  func.func @transform_1(%arg0: i32, %arg1: i32) -> (i32, i32) {
    %c0_i32 = arith.constant 0 : i32
    %c0_i32_0 = arith.constant 0 : i32
    return %c0_i32, %arg1 : i32, i32
  }
  func.func @transform_2(%arg0: i32, %arg1: i32) -> (i32, i32) {
    %c0_i32 = arith.constant 0 : i32
    %c0_i32_0 = arith.constant 0 : i32
    return %c0_i32, %arg1 : i32, i32
  }
  func.func @transform_3(%arg0: i32, %arg1: i32) -> (i32, i32) {
    %c0_i32 = arith.constant 0 : i32
    return %arg0, %arg1 : i32, i32
  }
}

module attributes {stable_mosaic.version = 11 : i64} {
  func.func @_gemm_epilogue_kernel(%arg0: i32, %arg1: i32, %arg2: memref<256x64xbf16, #tpu.memory_space<vmem>>, %arg3: memref<64x128xbf16, #tpu.memory_space<vmem>>, %arg4: memref<2x128xf32, #tpu.memory_space<vmem>>, %arg5: memref<256x128xbf16, #tpu.memory_space<vmem>>) attributes {dimension_semantics = [#tpu.dimension_semantics<parallel>, #tpu.dimension_semantics<parallel>], iteration_bounds = array<i64: 2, 1>, scalar_prefetch = 0 : i64, scratch_operands = 0 : i64, tpu.core_type = #tpu.core_type<tc>, window_params = [{transform_indices = @transform_0, window_bounds = array<i64: 256, 64>}, {transform_indices = @transform_1, window_bounds = array<i64: 64, 128>}, {transform_indices = @transform_2, window_bounds = array<i64: 2, 128>}, {transform_indices = @transform_3, window_bounds = array<i64: 256, 128>}]} {
    %c0 = arith.constant 0 : index
    %c0_0 = arith.constant 0 : index
    %0 = vector.load %arg2[%c0, %c0_0] : memref<256x64xbf16, #tpu.memory_space<vmem>>, vector<256x64xbf16>
    %c0_1 = arith.constant 0 : index
    %c0_2 = arith.constant 0 : index
    %1 = vector.load %arg3[%c0_1, %c0_2] : memref<64x128xbf16, #tpu.memory_space<vmem>>, vector<64x128xbf16>
    %cst = arith.constant dense<0.000000e+00> : vector<256x128xf32>
    %2 = tpu.matmul %0, %1, %cst {dimension_numbers = #tpu.dot_dimension_numbers<[1], [0], [0], [1], [0, 0, 1, 1], [], []>} : vector<256x64xbf16>, vector<64x128xbf16>, vector<256x128xf32> -> vector<256x128xf32>
    %c0_3 = arith.constant 0 : index
    %c0_4 = arith.constant 0 : index
    %3 = vector.load %arg4[%c0_3, %c0_4] : memref<2x128xf32, #tpu.memory_space<vmem>>, vector<2x128xf32>
    %4 = vector.extract_strided_slice %3 {offsets = [1, 0], sizes = [1, 128], strides = [1, 1]} : vector<2x128xf32> to vector<1x128xf32>
    %5 = vector.broadcast %4 : vector<1x128xf32> to vector<256x128xf32>
    %6 = arith.addf %2, %5 : vector<256x128xf32>
    %cst_5 = arith.constant 0.000000e+00 : f32
    %cst_6 = arith.constant 6.000000e+00 : f32
    %7 = vector.broadcast %cst_5 : f32 to vector<256x128xf32>
    %8 = arith.maximumf %7, %6 : vector<256x128xf32>
    %9 = vector.broadcast %cst_6 : f32 to vector<256x128xf32>
    %10 = arith.minimumf %9, %8 : vector<256x128xf32>
    %11 = arith.truncf %10 : vector<256x128xf32> to vector<256x128xbf16>
    %c0_7 = arith.constant 0 : index
    %c0_8 = arith.constant 0 : index
    %12 = vector.load %arg5[%c0_7, %c0_8] : memref<256x128xbf16, #tpu.memory_space<vmem>>, vector<256x128xbf16>
    tpu.vector_store %arg5[%c0_7, %c0_8], %11 {strides = array<i32>} : memref<256x128xbf16, #tpu.memory_space<vmem>>, vector<256x128xbf16>,
    return
  }
  func.func @transform_0(%arg0: i32, %arg1: i32) -> (i32, i32) {
    %c0_i32 = arith.constant 0 : i32
    %c0_i32_0 = arith.constant 0 : i32
    return %arg0, %c0_i32 : i32, i32
  }
  func.func @transform_1(%arg0: i32, %arg1: i32) -> (i32, i32) {
    %c0_i32 = arith.constant 0 : i32
    %c0_i32_0 = arith.constant 0 : i32
    return %c0_i32, %arg1 : i32, i32
  }
  func.func @transform_2(%arg0: i32, %arg1: i32) -> (i32, i32) {
    %c0_i32 = arith.constant 0 : i32
    %c0_i32_0 = arith.constant 0 : i32
    return %c0_i32, %arg1 : i32, i32
  }
  func.func @transform_3(%arg0: i32, %arg1: i32) -> (i32, i32) {
    %c0_i32 = arith.constant 0 : i32
    return %arg0, %arg1 : i32, i32
  }
}

module attributes {stable_mosaic.version = 11 : i64} {
  func.func @_gemm_epilogue_kernel(%arg0: i32, %arg1: i32, %arg2: memref<512x16xbf16, #tpu.memory_space<vmem>>, %arg3: memref<16x128xbf16, #tpu.memory_space<vmem>>, %arg4: memref<2x128xf32, #tpu.memory_space<vmem>>, %arg5: memref<512x128xbf16, #tpu.memory_space<vmem>>) attributes {dimension_semantics = [#tpu.dimension_semantics<parallel>, #tpu.dimension_semantics<parallel>], iteration_bounds = array<i64: 4, 1>, scalar_prefetch = 0 : i64, scratch_operands = 0 : i64, tpu.core_type = #tpu.core_type<tc>, window_params = [{transform_indices = @transform_0, window_bounds = array<i64: 512, 16>}, {transform_indices = @transform_1, window_bounds = array<i64: 16, 128>}, {transform_indices = @transform_2, window_bounds = array<i64: 2, 128>}, {transform_indices = @transform_3, window_bounds = array<i64: 512, 128>}]} {
    %c0 = arith.constant 0 : index
    %c0_0 = arith.constant 0 : index
    %0 = vector.load %arg2[%c0, %c0_0] : memref<512x16xbf16, #tpu.memory_space<vmem>>, vector<512x16xbf16>
    %c0_1 = arith.constant 0 : index
    %c0_2 = arith.constant 0 : index
    %1 = vector.load %arg3[%c0_1, %c0_2] : memref<16x128xbf16, #tpu.memory_space<vmem>>, vector<16x128xbf16>
    %cst = arith.constant dense<0.000000e+00> : vector<512x128xf32>
    %2 = tpu.matmul %0, %1, %cst {dimension_numbers = #tpu.dot_dimension_numbers<[1], [0], [0], [1], [0, 0, 1, 1], [], []>} : vector<512x16xbf16>, vector<16x128xbf16>, vector<512x128xf32> -> vector<512x128xf32>
    %c0_3 = arith.constant 0 : index
    %c0_4 = arith.constant 0 : index
    %3 = vector.load %arg4[%c0_3, %c0_4] : memref<2x128xf32, #tpu.memory_space<vmem>>, vector<2x128xf32>
    %4 = vector.extract_strided_slice %3 {offsets = [1, 0], sizes = [1, 128], strides = [1, 1]} : vector<2x128xf32> to vector<1x128xf32>
    %5 = vector.broadcast %4 : vector<1x128xf32> to vector<512x128xf32>
    %6 = arith.addf %2, %5 : vector<512x128xf32>
    %cst_5 = arith.constant 0.000000e+00 : f32
    %cst_6 = arith.constant 6.000000e+00 : f32
    %7 = vector.broadcast %cst_5 : f32 to vector<512x128xf32>
    %8 = arith.maximumf %7, %6 : vector<512x128xf32>
    %9 = vector.broadcast %cst_6 : f32 to vector<512x128xf32>
    %10 = arith.minimumf %9, %8 : vector<512x128xf32>
    %11 = arith.truncf %10 : vector<512x128xf32> to vector<512x128xbf16>
    %c0_7 = arith.constant 0 : index
    %c0_8 = arith.constant 0 : index
    %12 = vector.load %arg5[%c0_7, %c0_8] : memref<512x128xbf16, #tpu.memory_space<vmem>>, vector<512x128xbf16>
    tpu.vector_store %arg5[%c0_7, %c0_8], %11 {strides = array<i32>} : memref<512x128xbf16, #tpu.memory_space<vmem>>, vector<512x128xbf16>,
    return
  }
  func.func @transform_0(%arg0: i32, %arg1: i32) -> (i32, i32) {
    %c0_i32 = arith.constant 0 : i32
    %c0_i32_0 = arith.constant 0 : i32
    return %arg0, %c0_i32 : i32, i32
  }
  func.func @transform_1(%arg0: i32, %arg1: i32) -> (i32, i32) {
    %c0_i32 = arith.constant 0 : i32
    %c0_i32_0 = arith.constant 0 : i32
    return %c0_i32, %arg1 : i32, i32
  }
  func.func @transform_2(%arg0: i32, %arg1: i32) -> (i32, i32) {
    %c0_i32 = arith.constant 0 : i32
    %c0_i32_0 = arith.constant 0 : i32
    return %c0_i32, %arg1 : i32, i32
  }
  func.func @transform_3(%arg0: i32, %arg1: i32) -> (i32, i32) {
    %c0_i32 = arith.constant 0 : i32
    return %arg0, %arg1 : i32, i32
  }
}

module attributes {stable_mosaic.version = 11 : i64} {
  func.func @_gemm_epilogue_kernel(%arg0: i32, %arg1: i32, %arg2: memref<512x144xbf16, #tpu.memory_space<vmem>>, %arg3: memref<144x128xbf16, #tpu.memory_space<vmem>>, %arg4: memref<2x128xf32, #tpu.memory_space<vmem>>, %arg5: memref<512x128xf32, #tpu.memory_space<vmem>>) attributes {dimension_semantics = [#tpu.dimension_semantics<parallel>, #tpu.dimension_semantics<parallel>], iteration_bounds = array<i64: 4, 1>, scalar_prefetch = 0 : i64, scratch_operands = 0 : i64, tpu.core_type = #tpu.core_type<tc>, window_params = [{transform_indices = @transform_0, window_bounds = array<i64: 512, 144>}, {transform_indices = @transform_1, window_bounds = array<i64: 144, 128>}, {transform_indices = @transform_2, window_bounds = array<i64: 2, 128>}, {transform_indices = @transform_3, window_bounds = array<i64: 512, 128>}]} {
    %c0 = arith.constant 0 : index
    %c0_0 = arith.constant 0 : index
    %0 = vector.load %arg2[%c0, %c0_0] : memref<512x144xbf16, #tpu.memory_space<vmem>>, vector<512x144xbf16>
    %c0_1 = arith.constant 0 : index
    %c0_2 = arith.constant 0 : index
    %1 = vector.load %arg3[%c0_1, %c0_2] : memref<144x128xbf16, #tpu.memory_space<vmem>>, vector<144x128xbf16>
    %cst = arith.constant dense<0.000000e+00> : vector<512x128xf32>
    %2 = tpu.matmul %0, %1, %cst {dimension_numbers = #tpu.dot_dimension_numbers<[1], [0], [0], [1], [0, 0, 1, 1], [], []>} : vector<512x144xbf16>, vector<144x128xbf16>, vector<512x128xf32> -> vector<512x128xf32>
    %c0_3 = arith.constant 0 : index
    %c0_4 = arith.constant 0 : index
    %3 = vector.load %arg4[%c0_3, %c0_4] : memref<2x128xf32, #tpu.memory_space<vmem>>, vector<2x128xf32>
    %4 = vector.extract_strided_slice %3 {offsets = [1, 0], sizes = [1, 128], strides = [1, 1]} : vector<2x128xf32> to vector<1x128xf32>
    %5 = vector.broadcast %4 : vector<1x128xf32> to vector<512x128xf32>
    %6 = arith.addf %2, %5 : vector<512x128xf32>
    %c0_5 = arith.constant 0 : index
    %c0_6 = arith.constant 0 : index
    %7 = vector.load %arg5[%c0_5, %c0_6] : memref<512x128xf32, #tpu.memory_space<vmem>>, vector<512x128xf32>
    tpu.vector_store %arg5[%c0_5, %c0_6], %6 {strides = array<i32>} : memref<512x128xf32, #tpu.memory_space<vmem>>, vector<512x128xf32>,
    return
  }
  func.func @transform_0(%arg0: i32, %arg1: i32) -> (i32, i32) {
    %c0_i32 = arith.constant 0 : i32
    %c0_i32_0 = arith.constant 0 : i32
    return %arg0, %c0_i32 : i32, i32
  }
  func.func @transform_1(%arg0: i32, %arg1: i32) -> (i32, i32) {
    %c0_i32 = arith.constant 0 : i32
    %c0_i32_0 = arith.constant 0 : i32
    return %c0_i32, %arg1 : i32, i32
  }
  func.func @transform_2(%arg0: i32, %arg1: i32) -> (i32, i32) {
    %c0_i32 = arith.constant 0 : i32
    %c0_i32_0 = arith.constant 0 : i32
    return %c0_i32, %arg1 : i32, i32
  }
  func.func @transform_3(%arg0: i32, %arg1: i32) -> (i32, i32) {
    %c0_i32 = arith.constant 0 : i32
    return %arg0, %arg1 : i32, i32
  }
}

</mosaic_0001>

<bundles_post_ra>
// kernel: tile.14
= control target key start
LH: loop header
LB: loop body
LE: loop exit
PB: predicated region body
PF: predicated region fallthrough
CT: control target
= control target key end

     0   :  { %s22_s0 = inlined_call_operand.vmem [shape: f32[24], index: 0, kind: input, shape index: {}]   ;;  %s23_s1 = inlined_call_operand.vmem [shape: f32[4,24], index: 1, kind: output, shape index: {}]  }
   0x1   :  { %v4_v0 = vld [vmem:[%s22_s0] ss:$0 sm:$0xff] }
   0x2   :  { %5 = vst [vmem:[%s23_s1] sm:$0xf] %v4_v0 }

// kernel: tile.15
= control target key start
LH: loop header
LB: loop body
LE: loop exit
PB: predicated region body
PF: predicated region fallthrough
CT: control target
= control target key end

     0   :  { %vm7_vm0 = vcmask 195584   ;;  %s37_s8 = smov 24   ;;  %s38_s9 = smov 48   ;;  %vm13_vm1 = vcmask 785984   ;;  %vm19_vm2 = vcmask 589184   ;;  %vm25_vm3 = vcmask 392384   ;;  %s55_s0 = inlined_call_operand.vmem [shape: f32[4,24], index: 0, kind: input, shape index: {}]   ;;  %s56_s1 = inlined_call_operand.vmem [shape: f32[96], index: 1, kind: output, shape index: {}]  }
   0x1   :  { %v4_v0 = vld [vmem:[%s55_s0] sm:$0xf]  ;;  %s36_s0 = smov 72  }
   0x2   :  { %5 = vst [vmem:[#allocation1] sm:$0xf] %v4_v0 }
   0x9   :  { %v10_v1 = vld [vmem:[#allocation1 + $0x3] sm:$0x1]   ;;  %v22_v2 = vld [vmem:[#allocation1 + $0x1] sm:$0x1]   ;;  %v6_v3 = vld [vmem:[#allocation1] sm:$0x1]  }
   0xa   :  { %11 = vrot.lane.b32.xlu0 %v10_v1, %s36_s0  ;;  %23 = vrot.lane.b32.xlu1 %v22_v2, %s37_s8  ;;  %v16_v4 = vld [vmem:[#allocation1 + $0x2] sm:$0x1]   ;;  %8 = vst.msk [vmem:[#allocation0] sm:$0x1] %vm7_vm0, %v6_v3  }
   0xe   :  { %17 = vrot.lane.b32.xlu0 %v16_v4, %s38_s9 }
  0x7c   :  { %v12_v5 = vpop.permute.xlu0 %11   ;;  %v24_v6 = vpop.permute.xlu1 %23  }
  0x7d   :  { %14 = vst.msk [vmem:[#allocation0] sm:$0x1] %vm13_vm1, %v12_v5  }
  0x80   :  { %v18_v7 = vpop.permute.xlu0 %17  }
  0x81   :  { %20 = vst.msk [vmem:[#allocation0] sm:$0x1] %vm19_vm2, %v18_v7  }
  0x82   :  { %26 = vst.msk [vmem:[#allocation0] sm:$0x1] %vm25_vm3, %v24_v6  }
  0x89   :  { %v30_v8 = vld [vmem:[#allocation0] sm:$0x1] }
  0x8a   :  { %32 = vst [vmem:[%s56_s1] sm:$0x1] %v30_v8 }

// kernel: tile.18
= control target key start
LH: loop header
LB: loop body
LE: loop exit
PB: predicated region body
PF: predicated region fallthrough
CT: control target
= control target key end

     0   :  { %s22_s0 = inlined_call_operand.vmem [shape: f32[32], index: 0, kind: input, shape index: {}]   ;;  %s23_s1 = inlined_call_operand.vmem [shape: f32[4,32], index: 1, kind: output, shape index: {}]  }
   0x1   :  { %v4_v0 = vld [vmem:[%s22_s0] ss:$0 sm:$0xff] }
   0x2   :  { %5 = vst [vmem:[%s23_s1] sm:$0xf] %v4_v0 }

// kernel: tile.22
= control target key start
LH: loop header
LB: loop body
LE: loop exit
PB: predicated region body
PF: predicated region fallthrough
CT: control target
= control target key end

     0   :  { %s22_s0 = inlined_call_operand.vmem [shape: f32[16], index: 0, kind: input, shape index: {}]   ;;  %s23_s1 = inlined_call_operand.vmem [shape: f32[4,16], index: 1, kind: output, shape index: {}]  }
   0x1   :  { %v4_v0 = vld [vmem:[%s22_s0] ss:$0 sm:$0xff] }
   0x2   :  { %5 = vst [vmem:[%s23_s1] sm:$0xf] %v4_v0 }

// kernel: tile.23
= control target key start
LH: loop header
LB: loop body
LE: loop exit
PB: predicated region body
PF: predicated region fallthrough
CT: control target
= control target key end

     0   :  { %vm7_vm0 = vcmask 130048   ;;  %s37_s8 = smov 16   ;;  %s38_s9 = smov 32   ;;  %vm13_vm1 = vcmask 523648   ;;  %vm19_vm2 = vcmask 392448   ;;  %vm25_vm3 = vcmask 261248   ;;  %s55_s0 = inlined_call_operand.vmem [shape: f32[4,16], index: 0, kind: input, shape index: {}]   ;;  %s56_s1 = inlined_call_operand.vmem [shape: f32[64], index: 1, kind: output, shape index: {}]  }
   0x1   :  { %v4_v0 = vld [vmem:[%s55_s0] sm:$0xf]  ;;  %s36_s0 = smov 48  }
   0x2   :  { %5 = vst [vmem:[#allocation1] sm:$0xf] %v4_v0 }
   0x9   :  { %v10_v1 = vld [vmem:[#allocation1 + $0x3] sm:$0x1]   ;;  %v22_v2 = vld [vmem:[#allocation1 + $0x1] sm:$0x1]   ;;  %v6_v3 = vld [vmem:[#allocation1] sm:$0x1]  }
   0xa   :  { %11 = vrot.lane.b32.xlu0 %v10_v1, %s36_s0  ;;  %23 = vrot.lane.b32.xlu1 %v22_v2, %s37_s8  ;;  %v16_v4 = vld [vmem:[#allocation1 + $0x2] sm:$0x1]   ;;  %8 = vst.msk [vmem:[#allocation0] sm:$0x1] %vm7_vm0, %v6_v3  }
   0xe   :  { %17 = vrot.lane.b32.xlu0 %v16_v4, %s38_s9 }
  0x7c   :  { %v12_v5 = vpop.permute.xlu0 %11   ;;  %v24_v6 = vpop.permute.xlu1 %23  }
  0x7d   :  { %14 = vst.msk [vmem:[#allocation0] sm:$0x1] %vm13_vm1, %v12_v5  }
  0x80   :  { %v18_v7 = vpop.permute.xlu0 %17  }
  0x81   :  { %20 = vst.msk [vmem:[#allocation0] sm:$0x1] %vm19_vm2, %v18_v7  }
  0x82   :  { %26 = vst.msk [vmem:[#allocation0] sm:$0x1] %vm25_vm3, %v24_v6  }
  0x89   :  { %v30_v8 = vld [vmem:[#allocation0] sm:$0x1] }
  0x8a   :  { %32 = vst [vmem:[%s56_s1] sm:$0x1] %v30_v8 }

// kernel: _lambda_.16
= control target key start
LH: loop header
LB: loop body
LE: loop exit
PB: predicated region body
PF: predicated region fallthrough
CT: control target
= control target key end

     0   :  { %vm86_vm0 = vcmask 793600   ;;  %vm93_vm1 = vcmask 1040384   ;;  %v247_v8 = vmov 0   ;;  %v33_v12 = vlaneseq  ;;  %s306_s1 = inlined_call_operand.vmem [shape: bf16[97,128], index: 1, kind: input, shape index: {}]   ;;  %s307_s0 = inlined_call_operand.vmem [shape: bf16[32,97], index: 0, kind: input, shape index: {}]   ;;  %s308_s2 = inlined_call_operand.vmem [shape: f32[2,128], index: 2, kind: input, shape index: {}]   ;;  %s309_s3 = inlined_call_operand.vmem [shape: bf16[32,128], index: 3, kind: output, shape index: {}]  }
   0x1   :  { %v238_v0 = vld [vmem:[%s306_s1] sm:$0xff]   ;;  %v239_v1 = vld [vmem:[%s306_s1 + $0x8] sm:$0xff]   ;;  %v240_v2 = vld [vmem:[%s306_s1 + $0x10] sm:$0xff]   ;;  %v95_v9 = vsel %vm93_vm1, 65535, %v247_v8 }
   0x2   :  { %219 = vmatprep.subr.bf16.mxu0 %v238_v0  ;;  %v245_v3 = vld [vmem:[%s307_s0] sm:$0xff]   ;;  %v241_v4 = vld [vmem:[%s306_s1 + $0x18] sm:$0xff]   ;;  %v243_v6 = vld [vmem:[%s306_s1 + $0x28] sm:$0xff]   ;;  %v34_v13 = vshrl.u32 %v33_v12, 7 }
   0x3   :  { %220 = vmatpush3.bf16.msra.mxu0 %v238_v0  ;;  %233 = vmatprep.mubr.msk.bf16.mxu0 %vm86_vm0, %v245_v3  ;;  %v242_v5 = vld [vmem:[%s306_s1 + $0x20] sm:$0xff]   ;;  %v244_v7 = vld [vmem:[%s306_s1 + $0x30] ss:$0 sps:$4 sm:$0x11]   ;;  %v246_v11 = vld [vmem:[%s307_s0 + $0x8] sm:$0xff]  }
   0x4   :  { %221 = vmatprep.subr.bf16.mxu0 %v239_v1  ;;  %v97_v10 = vand.u32 %v244_v7, %v95_v9  ;;  %v35_v14 = vsub.s32 1, %v34_v13  ;;  %v32_v15 = vld [vmem:[%s308_s2] sm:$0x3] }
   0x6   :  { %v36_v16 = vrot.slane %v32_v15, %v35_v14 }
   0x7   :  { %222 = vmatpush3.bf16.msra.mxu0 %v239_v1 }
   0x8   :  { %223 = vmatprep.subr.bf16.mxu0 %v240_v2 }
   0xb   :  { %224 = vmatpush3.bf16.msra.mxu0 %v240_v2 }
   0xc   :  { %225 = vmatprep.subr.bf16.mxu0 %v241_v4 }
   0xf   :  { %226 = vmatpush3.bf16.msra.mxu0 %v241_v4 }
  0x10   :  { %227 = vmatprep.subr.bf16.mxu0 %v242_v5 }
  0x13   :  { %228 = vmatpush3.bf16.msra.mxu0 %v242_v5 }
  0x14   :  { %229 = vmatprep.subr.bf16.mxu0 %v243_v6 }
  0x17   :  { %230 = vmatpush3.bf16.msra.mxu0 %v243_v6 }
  0x18   :  { %231 = vmatprep.subr.bf16.mxu0 %v97_v10 }
  0x1b   :  { %232 = vmatpush3.bf16.msra.mxu0 %v97_v10 }
  0x1e   :  { %234 = vmatmul.mubr.msk.bf16.vlgmr.msra.gmra.mrb[0].mxu0 %vm86_vm0, %v246_v11 }
  0xf1   :  { %v235_v17 = vpop.f32.mrb[0].mxu0 }
  0xf2   :  { %v142_v18 = vadd.f32 %v235_v17, %v36_v16  ;;  %v133_v19 = vpop.f32.mrb[1].mxu0 }
  0xf3   :  { %v134_v20 = vadd.f32 %v133_v19, %v36_v16  ;;  %v236_v21 = vpop.f32.mrb[2].mxu0 }
  0xf4   :  { %v150_v22 = vmax.f32 %v142_v18, 0.0  ;;  %v145_v23 = vadd.f32 %v236_v21, %v36_v16  ;;  %v136_v24 = vpop.f32.mrb[3].mxu0 }
  0xf5   :  { %v148_v25 = vmax.f32 %v134_v20, 0.0  ;;  %v137_v26 = vadd.f32 %v136_v24, %v36_v16 }
  0xf6   :  { %v151_v27 = vmax.f32 %v145_v23, 0.0  ;;  %v154_v29 = vmin.f32 %v150_v22, 6.0 }
  0xf7   :  { %v149_v28 = vmax.f32 %v137_v26, 0.0  ;;  %v152_v31 = vmin.f32 %v148_v25, 6.0 }
  0xf8   :  { %v155_v30 = vmin.f32 %v151_v27, 6.0 }
  0xf9   :  { %v153_v32 = vmin.f32 %v149_v28, 6.0 }
  0xfa   :  { %v207_v33 = vpack.c.bf16 %v155_v30, %v154_v29 }
  0xfb   :  { %v202_v34 = vpack.c.bf16 %v153_v32, %v152_v31 }
  0xfc   :  { %209 = vst [vmem:[%s309_s3 + $0x8] sm:$0xff] %v207_v33  }
  0xfd   :  { %203 = vst [vmem:[%s309_s3] sm:$0xff] %v202_v34  }

// kernel: _lambda_.15
= control target key start
LH: loop header
LB: loop body
LE: loop exit
PB: predicated region body
PF: predicated region fallthrough
CT: control target
= control target key end

     0   :  { %vm208_vm0 = vcmask 1040384   ;;  %v477_v13 = vmov 0   ;;  %vm201_vm1 = vcmask 269312   ;;  %v319_v28 = vlaneseq  ;;  %s586_s1 = inlined_call_operand.vmem [shape: bf16[289,128], index: 1, kind: input, shape index: {}]   ;;  %s587_s0 = inlined_call_operand.vmem [shape: bf16[32,289], index: 0, kind: input, shape index: {}]   ;;  %s588_s2 = inlined_call_operand.vmem [shape: f32[2,128], index: 2, kind: input, shape index: {}]   ;;  %s589_s3 = inlined_call_operand.vmem [shape: bf16[32,128], index: 3, kind: output, shape index: {}]  }
   0x1   :  { %v450_v0 = vld [vmem:[%s586_s1 + $0x40] sm:$0xff]   ;;  %v452_v2 = vld [vmem:[%s586_s1 + $0x48] sm:$0xff]   ;;  %v454_v4 = vld [vmem:[%s586_s1 + $0x50] sm:$0xff]   ;;  %v210_v14 = vsel %vm208_vm0, 65535, %v477_v13 }
   0x2   :  { %v451_v1 = vld [vmem:[%s586_s1] sm:$0xff]   ;;  %406 = vmatprep.subr.bf16.mxu0 %v450_v0  ;;  %v453_v3 = vld [vmem:[%s586_s1 + $0x8] sm:$0xff]   ;;  %v455_v5 = vld [vmem:[%s586_s1 + $0x10] sm:$0xff]   ;;  %v320_v31 = vshrl.u32 %v319_v28, 7 }
   0x3   :  { %407 = vmatpush3.bf16.msra.mxu0 %v451_v1  ;;  %v456_v6 = vld [vmem:[%s586_s1 + $0x58] sm:$0xff]   ;;  %v458_v8 = vld [vmem:[%s586_s1 + $0x60] sm:$0xff]   ;;  %v465_v11 = vld [vmem:[%s586_s1 + $0x88] sm:$0xff]  }
   0x4   :  { %408 = vmatprep.subr.bf16.mxu0 %v452_v2  ;;  %v457_v7 = vld [vmem:[%s586_s1 + $0x18] sm:$0xff]   ;;  %v462_v9 = vld [vmem:[%s586_s1 + $0x80] sm:$0xff]   ;;  %v460_v12 = vld [vmem:[%s586_s1 + $0x68] sm:$0xff]   ;;  %v321_v35 = vsub.s32 0, %v320_v31  ;;  %v330_v42 = vsub.s32 1, %v320_v31 }
   0x5   :  { %v459_v10 = vld [vmem:[%s586_s1 + $0x20] sm:$0xff]   ;;  %439 = vmatprep.subr.bf16.mxu1 %v462_v9  ;;  %v468_v15 = vld [vmem:[%s586_s1 + $0x90] ss:$0 sps:$4 sm:$0x11]   ;;  %v461_v16 = vld [vmem:[%s586_s1 + $0x28] sm:$0xff]  }
   0x6   :  { %440 = vmatpush3.bf16.msra.mxu1 %v462_v9  ;;  %v463_v17 = vld [vmem:[%s586_s1 + $0x70] sm:$0xff]   ;;  %v212_v18 = vand.u32 %v468_v15, %v210_v14  ;;  %v473_v21 = vld [vmem:[%s587_s0 + $0x20] ss:$12 sps:$4 sm:$0xff]   ;;  %v466_v23 = vld [vmem:[%s586_s1 + $0x78] sm:$0xff]  }
   0x7   :  { %409 = vmatpush3.bf16.msra.mxu0 %v453_v3  ;;  %441 = vmatprep.subr.bf16.mxu1 %v465_v11  ;;  %v471_v19 = vld [vmem:[%s587_s0 + $0x4] ss:$12 sps:$4 sm:$0xff]   ;;  %v472_v20 = vld [vmem:[%s587_s0 + $0x8] ss:$12 sps:$4 sm:$0xff]   ;;  %v467_v24 = vld [vmem:[%s586_s1 + $0x38] sm:$0xff]  }
   0x8   :  { %410 = vmatprep.subr.bf16.mxu0 %v454_v4  ;;  %246 = vmatprep.mubr.bf16.mxu0 %v471_v19  ;;  %v464_v22 = vld [vmem:[%s586_s1 + $0x30] sm:$0xff]   ;;  %v469_v25 = vld [vmem:[%s587_s0] ss:$12 sps:$4 sm:$0xff]   ;;  %v474_v26 = vld [vmem:[%s587_s0 + $0x1c] ss:$12 sps:$4 sm:$0xff]  }
   0x9   :  { %445 = vmatprep.mubr.msk.bf16.mxu1 %vm201_vm1, %v472_v20  ;;  %v476_v27 = vld [vmem:[%s587_s0 + $0x18] ss:$12 sps:$4 sm:$0xff]   ;;  %v312_v29 = vld [vmem:[%s588_s2] sm:$0x3] }
   0xa   :  { %442 = vmatpush3.bf16.msra.mxu1 %v465_v11  ;;  %vm313_vm2 = vcmp.ne.f32.partialorder %v312_v29, 0.0  ;;  %v331_v48 = vrot.slane %v312_v29, %v330_v42 }
   0xb   :  { %411 = vmatpush3.bf16.msra.mxu0 %v455_v5  ;;  %443 = vmatprep.subr.bf16.mxu1 %v212_v18  ;;  %v318_v36 = vsel %vm313_vm2, 1, %v477_v13 }
   0xc   :  { %412 = vmatprep.subr.bf16.mxu0 %v456_v6  ;;  %v322_v38 = vrot.slane %v318_v36, %v321_v35 }
   0xe   :  { %444 = vmatpush3.bf16.msra.mxu1 %v212_v18  ;;  %vm323_vm3 = vcmp.eq.s32.totalorder %v322_v38, 1 }
   0xf   :  { %413 = vmatpush3.bf16.msra.mxu0 %v457_v7 }
  0x10   :  { %414 = vmatprep.subr.bf16.mxu0 %v458_v8 }
  0x11   :  { %446 = vmatmul.mubr.msk.bf16.vlgmr.msra.gmra.mrb[0].mxu1 %vm201_vm1, %v473_v21 }
  0x13   :  { %415 = vmatpush3.bf16.msra.mxu0 %v459_v10 }
  0x14   :  { %416 = vmatprep.subr.bf16.mxu0 %v460_v12 }
  0x17   :  { %417 = vmatpush3.bf16.msra.mxu0 %v461_v16 }
  0x18   :  { %418 = vmatprep.subr.bf16.mxu0 %v463_v17 }
  0x1b   :  { %419 = vmatpush3.bf16.msra.mxu0 %v464_v22 }
  0x1c   :  { %420 = vmatprep.subr.bf16.mxu0 %v466_v23 }
  0x1f   :  { %421 = vmatpush3.bf16.msra.mxu0 %v467_v24 }
  0x22   :  { %247 = vmatmul.mubr.bf16.vlgmr.msra.gmra.mrb[0].mxu0 %v469_v25 }
  0x23   :  { %254 = vmatprep.mubr.bf16.mxu0 %v474_v26 }
  0x2a   :  { %255 = vmatmul.mubr.bf16.gmra.mrb[4].mxu0 %v476_v27 }
  0xe4   :  { %v447_v30 = vpop.f32.mrb[0].mxu1 }
  0xe5   :  { %v297_v32 = vpop.f32.mrb[1].mxu1 }
  0xe6   :  { %v448_v33 = vpop.f32.mrb[2].mxu1 }
  0xe7   :  { %v300_v34 = vpop.f32.mrb[3].mxu1 }
  0xf5   :  { %v422_v37 = vpop.f32.mrb[0].mxu0 }
  0xf6   :  { %v423_v39 = vpop.f32.mrb[1].mxu0 }
  0xf7   :  { %v424_v40 = vadd.f32 %v423_v39, %v422_v37  ;;  %v425_v41 = vpop.f32.mrb[2].mxu0 }
  0xf8   :  { %v426_v43 = vpop.f32.mrb[3].mxu0 }
  0xf9   :  { %v427_v44 = vadd.f32 %v426_v43, %v425_v41  ;;  %v298_v45 = vadd.f32 %v424_v40, %v297_v32 }
  0xfb   :  { %v314_v46 = vand.u32 2147483647, %v298_v45  ;;  %v301_v47 = vadd.f32 %v427_v44, %v300_v34 }
  0xfd   :  { %v324_v49 = vsel %vm323_vm3, %v314_v46, %v298_v45  ;;  %v315_v50 = vand.u32 2147483647, %v301_v47  ;;  %v428_v51 = vpop.f32.mrb[4].mxu0 }
  0xfe   :  { %v429_v52 = vpop.f32.mrb[5].mxu0  ;;  %v332_v56 = vadd.f32 %v331_v48, %v324_v49 }
  0xff   :  { %v325_v53 = vsel %vm323_vm3, %v315_v50, %v301_v47  ;;  %v430_v54 = vadd.f32 %v429_v52, %v428_v51  ;;  %v431_v55 = vpop.f32.mrb[6].mxu0 }
 0x100   :  { %v333_v57 = vadd.f32 %v331_v48, %v325_v53  ;;  %v432_v58 = vpop.f32.mrb[7].mxu0 }
 0x101   :  { %v306_v59 = vadd.f32 %v447_v30, %v430_v54  ;;  %v433_v60 = vadd.f32 %v432_v58, %v431_v55 }
 0x102   :  { %v398_v61 = vpack.c.bf16 %v333_v57, %v332_v56 }
 0x103   :  { %v316_v62 = vand.u32 2147483647, %v306_v59  ;;  %v309_v63 = vadd.f32 %v448_v33, %v433_v60 }
 0x104   :  { %399 = vst [vmem:[%s589_s3] sm:$0xff] %v398_v61  }
 0x105   :  { %v326_v0 = vsel %vm323_vm3, %v316_v62, %v306_v59  ;;  %v317_v1 = vand.u32 2147483647, %v309_v63 }
 0x106   :  { %v334_v3 = vadd.f32 %v331_v48, %v326_v0 }
 0x107   :  { %v327_v2 = vsel %vm323_vm3, %v317_v1, %v309_v63 }
 0x108   :  { %v335_v4 = vadd.f32 %v331_v48, %v327_v2 }
 0x10a   :  { %v403_v5 = vpack.c.bf16 %v335_v4, %v334_v3 }
 0x10c   :  { %405 = vst [vmem:[%s589_s3 + $0x8] sm:$0xff] %v403_v5  }

// kernel: _lambda_.17
= control target key start
LH: loop header
LB: loop body
LE: loop exit
PB: predicated region body
PF: predicated region fallthrough
CT: control target
= control target key end

     0   :  { %vm82_vm0 = vcmask 785408   ;;  %v32_v8 = vlaneseq  ;;  %s286_s1 = inlined_call_operand.vmem [shape: bf16[96,128], index: 1, kind: input, shape index: {}]   ;;  %s287_s0 = inlined_call_operand.vmem [shape: bf16[32,96], index: 0, kind: input, shape index: {}]   ;;  %s288_s2 = inlined_call_operand.vmem [shape: f32[2,128], index: 2, kind: input, shape index: {}]   ;;  %s289_s3 = inlined_call_operand.vmem [shape: bf16[32,128], index: 3, kind: output, shape index: {}]  }
   0x1   :  { %v223_v0 = vld [vmem:[%s286_s1] sm:$0xff]   ;;  %v224_v1 = vld [vmem:[%s286_s1 + $0x8] sm:$0xff]   ;;  %v225_v2 = vld [vmem:[%s286_s1 + $0x10] sm:$0xff]  }
   0x2   :  { %207 = vmatprep.subr.bf16.mxu0 %v223_v0  ;;  %v229_v3 = vld [vmem:[%s287_s0] sm:$0xff]   ;;  %v226_v4 = vld [vmem:[%s286_s1 + $0x18] sm:$0xff]   ;;  %v228_v6 = vld [vmem:[%s286_s1 + $0x28] sm:$0xff]   ;;  %v33_v9 = vshrl.u32 %v32_v8, 7 }
   0x3   :  { %208 = vmatpush3.bf16.msra.mxu0 %v223_v0  ;;  %219 = vmatprep.mubr.msk.bf16.mxu0 %vm82_vm0, %v229_v3  ;;  %v227_v5 = vld [vmem:[%s286_s1 + $0x20] sm:$0xff]   ;;  %v230_v7 = vld [vmem:[%s287_s0 + $0x8] sm:$0xff]  }
   0x4   :  { %209 = vmatprep.subr.bf16.mxu0 %v224_v1  ;;  %v34_v10 = vsub.s32 1, %v33_v9  ;;  %v31_v11 = vld [vmem:[%s288_s2] sm:$0x3] }
   0x6   :  { %v35_v12 = vrot.slane %v31_v11, %v34_v10 }
   0x7   :  { %210 = vmatpush3.bf16.msra.mxu0 %v224_v1 }
   0x8   :  { %211 = vmatprep.subr.bf16.mxu0 %v225_v2 }
   0xb   :  { %212 = vmatpush3.bf16.msra.mxu0 %v225_v2 }
   0xc   :  { %213 = vmatprep.subr.bf16.mxu0 %v226_v4 }
   0xf   :  { %214 = vmatpush3.bf16.msra.mxu0 %v226_v4 }
  0x10   :  { %215 = vmatprep.subr.bf16.mxu0 %v227_v5 }
  0x13   :  { %216 = vmatpush3.bf16.msra.mxu0 %v227_v5 }
  0x14   :  { %217 = vmatprep.subr.bf16.mxu0 %v228_v6 }
  0x17   :  { %218 = vmatpush3.bf16.msra.mxu0 %v228_v6 }
  0x1a   :  { %220 = vmatmul.mubr.msk.bf16.vlgmr.msra.gmra.mrb[0].mxu0 %vm82_vm0, %v230_v7 }
  0xed   :  { %v221_v13 = vpop.f32.mrb[0].mxu0 }
  0xee   :  { %v132_v14 = vadd.f32 %v221_v13, %v35_v12  ;;  %v123_v15 = vpop.f32.mrb[1].mxu0 }
  0xef   :  { %v124_v16 = vadd.f32 %v123_v15, %v35_v12  ;;  %v222_v17 = vpop.f32.mrb[2].mxu0 }
  0xf0   :  { %v140_v18 = vmax.f32 %v132_v14, 0.0  ;;  %v135_v19 = vadd.f32 %v222_v17, %v35_v12  ;;  %v126_v20 = vpop.f32.mrb[3].mxu0 }
  0xf1   :  { %v138_v21 = vmax.f32 %v124_v16, 0.0  ;;  %v127_v22 = vadd.f32 %v126_v20, %v35_v12 }
  0xf2   :  { %v141_v23 = vmax.f32 %v135_v19, 0.0  ;;  %v144_v25 = vmin.f32 %v140_v18, 6.0 }
  0xf3   :  { %v139_v24 = vmax.f32 %v127_v22, 0.0  ;;  %v142_v27 = vmin.f32 %v138_v21, 6.0 }
  0xf4   :  { %v145_v26 = vmin.f32 %v141_v23, 6.0 }
  0xf5   :  { %v143_v28 = vmin.f32 %v139_v24, 6.0 }
  0xf6   :  { %v196_v29 = vpack.c.bf16 %v145_v26, %v144_v25 }
  0xf7   :  { %v191_v30 = vpack.c.bf16 %v143_v28, %v142_v27 }
  0xf8   :  { %198 = vst [vmem:[%s289_s3 + $0x8] sm:$0xff] %v196_v29  }
  0xf9   :  { %192 = vst [vmem:[%s289_s3] sm:$0xff] %v191_v30  }

// kernel: _lambda_.18
= control target key start
LH: loop header
LB: loop body
LE: loop exit
PB: predicated region body
PF: predicated region fallthrough
CT: control target
= control target key end

     0   :  { %vm113_vm0 = vcmask 1043456   ;;  %vm88_vm1 = vcmask 195584   ;;  %v35_v11 = vlaneseq  ;;  %s558_s1 = inlined_call_operand.vmem [shape: bf16[24,128], index: 1, kind: input, shape index: {}]   ;;  %s559_s0 = inlined_call_operand.vmem [shape: bf16[128,24], index: 0, kind: input, shape index: {}]   ;;  %s560_s2 = inlined_call_operand.vmem [shape: f32[2,128], index: 2, kind: input, shape index: {}]   ;;  %s561_s3 = inlined_call_operand.vmem [shape: bf16[128,128], index: 3, kind: output, shape index: {}]  }
   0x1   :  { %v463_v0 = vld [vmem:[%s558_s1] sm:$0xff]   ;;  %v464_v1 = vld [vmem:[%s558_s1 + $0x8] ss:$0 sps:$4 sm:$0xff]   ;;  %v469_v7 = vld [vmem:[%s559_s0 + $0x10] sm:$0xff]  }
   0x2   :  { %437 = vmatprep.subr.bf16.mxu0 %v463_v0  ;;  %457 = vmatprep.subr.bf16.mxu1 %v463_v0  ;;  %v465_v2 = vld [vmem:[%s559_s0] sm:$0xff]   ;;  %v115_v4 = vsel %vm113_vm0, %v464_v1, 0  ;;  %v467_v5 = vld [vmem:[%s559_s0 + $0x8] sm:$0xff]   ;;  %v470_v8 = vld [vmem:[%s559_s0 + $0x30] sm:$0xff]   ;;  %v36_v12 = vshrl.u32 %v35_v11, 7 }
   0x3   :  { %438 = vmatpush3.bf16.msra.mxu0 %v463_v0  ;;  %459 = vmatpush3.bf16.msra.mxu1 %v463_v0  ;;  %v466_v3 = vld [vmem:[%s559_s0 + $0x20] sm:$0xff]   ;;  %v468_v6 = vld [vmem:[%s559_s0 + $0x28] sm:$0xff]   ;;  %v471_v9 = vld [vmem:[%s559_s0 + $0x18] sm:$0xff]  }
   0x4   :  { %461 = vmatprep.subr.msk.bf16.mxu0 %vm113_vm0, %v464_v1  ;;  %462 = vmatprep.subr.msk.bf16.mxu1 %vm113_vm0, %v464_v1  ;;  %v472_v10 = vld [vmem:[%s559_s0 + $0x38] sm:$0xff]   ;;  %v37_v13 = vsub.s32 1, %v36_v12  ;;  %v34_v14 = vld [vmem:[%s560_s2] sm:$0x3] }
   0x5   :  { %441 = vmatprep.mubr.msk.bf16.mxu0 %vm88_vm1, %v465_v2  ;;  %449 = vmatprep.mubr.msk.bf16.mxu1 %vm88_vm1, %v466_v3 }
   0x6   :  { %v38_v15 = vrot.slane %v34_v14, %v37_v13 }
   0x7   :  { %440 = vmatpush3.bf16.msra.mxu0 %v115_v4  ;;  %460 = vmatpush3.bf16.msra.mxu1 %v115_v4 }
   0xa   :  { %442 = vmatmul.mubr.msk.bf16.vlgmr.msra.gmra.mrb[0].mxu0 %vm88_vm1, %v467_v5  ;;  %450 = vmatmul.mubr.msk.bf16.vlgmr.msra.gmra.mrb[0].mxu1 %vm88_vm1, %v468_v6 }
   0xb   :  { %445 = vmatprep.mubr.msk.bf16.mxu0 %vm88_vm1, %v469_v7  ;;  %453 = vmatprep.mubr.msk.bf16.mxu1 %vm88_vm1, %v470_v8 }
  0x12   :  { %446 = vmatmul.mubr.msk.bf16.gmra.mrb[4].mxu0 %vm88_vm1, %v471_v9  ;;  %454 = vmatmul.mubr.msk.bf16.gmra.mrb[4].mxu1 %vm88_vm1, %v472_v10 }
  0xdd   :  { %v443_v16 = vpop.f32.mrb[0].mxu0  ;;  %v451_v17 = vpop.f32.mrb[0].mxu1 }
  0xde   :  { %v160_v18 = vadd.f32 %v443_v16, %v38_v15  ;;  %v192_v19 = vadd.f32 %v451_v17, %v38_v15  ;;  %v151_v20 = vpop.f32.mrb[1].mxu0  ;;  %v183_v21 = vpop.f32.mrb[1].mxu1 }
  0xdf   :  { %v152_v22 = vadd.f32 %v151_v20, %v38_v15  ;;  %v184_v23 = vadd.f32 %v183_v21, %v38_v15  ;;  %v444_v24 = vpop.f32.mrb[2].mxu0  ;;  %v452_v25 = vpop.f32.mrb[2].mxu1 }
  0xe0   :  { %v216_v26 = vmax.f32 %v160_v18, 0.0  ;;  %v224_v27 = vmax.f32 %v192_v19, 0.0  ;;  %v163_v28 = vadd.f32 %v444_v24, %v38_v15  ;;  %v195_v29 = vadd.f32 %v452_v25, %v38_v15  ;;  %v154_v30 = vpop.f32.mrb[3].mxu0  ;;  %v186_v31 = vpop.f32.mrb[3].mxu1 }
  0xe1   :  { %v214_v32 = vmax.f32 %v152_v22, 0.0  ;;  %v222_v33 = vmax.f32 %v184_v23, 0.0  ;;  %v155_v34 = vadd.f32 %v154_v30, %v38_v15  ;;  %v187_v35 = vadd.f32 %v186_v31, %v38_v15 }
  0xe2   :  { %v217_v36 = vmax.f32 %v163_v28, 0.0  ;;  %v225_v37 = vmax.f32 %v195_v29, 0.0  ;;  %v232_v40 = vmin.f32 %v216_v26, 6.0  ;;  %v240_v41 = vmin.f32 %v224_v27, 6.0 }
  0xe3   :  { %v215_v38 = vmax.f32 %v155_v34, 0.0  ;;  %v223_v39 = vmax.f32 %v187_v35, 0.0  ;;  %v230_v44 = vmin.f32 %v214_v32, 6.0  ;;  %v238_v45 = vmin.f32 %v222_v33, 6.0 }
  0xe4   :  { %v233_v42 = vmin.f32 %v217_v36, 6.0  ;;  %v241_v43 = vmin.f32 %v225_v37, 6.0 }
  0xe5   :  { %v231_v46 = vmin.f32 %v215_v38, 6.0  ;;  %v239_v47 = vmin.f32 %v223_v39, 6.0  ;;  %v447_v48 = vpop.f32.mrb[4].mxu0  ;;  %v455_v49 = vpop.f32.mrb[4].mxu1 }
  0xe6   :  { %v388_v50 = vpack.c.bf16 %v233_v42, %v232_v40  ;;  %v408_v51 = vpack.c.bf16 %v241_v43, %v240_v41  ;;  %v176_v52 = vadd.f32 %v447_v48, %v38_v15  ;;  %v208_v53 = vadd.f32 %v455_v49, %v38_v15  ;;  %v167_v54 = vpop.f32.mrb[5].mxu0  ;;  %v199_v55 = vpop.f32.mrb[5].mxu1 }
  0xe7   :  { %v383_v56 = vpack.c.bf16 %v231_v46, %v230_v44  ;;  %v403_v57 = vpack.c.bf16 %v239_v47, %v238_v45  ;;  %v168_v58 = vadd.f32 %v167_v54, %v38_v15  ;;  %v200_v59 = vadd.f32 %v199_v55, %v38_v15  ;;  %v448_v60 = vpop.f32.mrb[6].mxu0  ;;  %v456_v61 = vpop.f32.mrb[6].mxu1 }
  0xe8   :  { %420 = vst [vmem:[%s561_s3 + $0x8] sm:$0xff] %v388_v50   ;;  %424 = vst [vmem:[%s561_s3 + $0x28] sm:$0xff] %v408_v51   ;;  %v220_v62 = vmax.f32 %v176_v52, 0.0  ;;  %v228_v63 = vmax.f32 %v208_v53, 0.0  ;;  %v179_v0 = vadd.f32 %v448_v60, %v38_v15  ;;  %v211_v1 = vadd.f32 %v456_v61, %v38_v15  ;;  %v170_v2 = vpop.f32.mrb[7].mxu0  ;;  %v202_v3 = vpop.f32.mrb[7].mxu1 }
  0xe9   :  { %384 = vst [vmem:[%s561_s3] sm:$0xff] %v383_v56   ;;  %423 = vst [vmem:[%s561_s3 + $0x20] sm:$0xff] %v403_v57   ;;  %v218_v4 = vmax.f32 %v168_v58, 0.0  ;;  %v226_v5 = vmax.f32 %v200_v59, 0.0  ;;  %v171_v6 = vadd.f32 %v170_v2, %v38_v15  ;;  %v203_v7 = vadd.f32 %v202_v3, %v38_v15 }
  0xea   :  { %v221_v8 = vmax.f32 %v179_v0, 0.0  ;;  %v229_v9 = vmax.f32 %v211_v1, 0.0  ;;  %v236_v12 = vmin.f32 %v220_v62, 6.0  ;;  %v244_v13 = vmin.f32 %v228_v63, 6.0 }
  0xeb   :  { %v219_v10 = vmax.f32 %v171_v6, 0.0  ;;  %v227_v11 = vmax.f32 %v203_v7, 0.0  ;;  %v234_v17 = vmin.f32 %v218_v4, 6.0  ;;  %v242_v18 = vmin.f32 %v226_v5, 6.0 }
  0xec   :  { %v237_v14 = vmin.f32 %v221_v8, 6.0  ;;  %v245_v16 = vmin.f32 %v229_v9, 6.0 }
  0xed   :  { %v235_v19 = vmin.f32 %v219_v10, 6.0  ;;  %v243_v20 = vmin.f32 %v227_v11, 6.0 }
  0xee   :  { %v398_v21 = vpack.c.bf16 %v237_v14, %v236_v12  ;;  %v418_v22 = vpack.c.bf16 %v245_v16, %v244_v13 }
  0xef   :  { %v393_v23 = vpack.c.bf16 %v235_v19, %v234_v17  ;;  %v413_v24 = vpack.c.bf16 %v243_v20, %v242_v18 }
  0xf0   :  { %422 = vst [vmem:[%s561_s3 + $0x18] sm:$0xff] %v398_v21   ;;  %426 = vst [vmem:[%s561_s3 + $0x38] sm:$0xff] %v418_v22  }
  0xf1   :  { %421 = vst [vmem:[%s561_s3 + $0x10] sm:$0xff] %v393_v23   ;;  %425 = vst [vmem:[%s561_s3 + $0x30] sm:$0xff] %v413_v24  }

// kernel: _lambda_.13
= control target key start
LH: loop header
LB: loop body
LE: loop exit
PB: predicated region body
PF: predicated region fallthrough
CT: control target
= control target key end

     0   :  { %s1300_s12 = smov 0   ;;  %s1302_s13 = smov 0   ;;  %s1502_s0 = inlined_call_operand.vmem [shape: bf16[512,25], index: 0, kind: input, shape index: {}]   ;;  %s1503_s1 = inlined_call_operand.vmem [shape: bf16[25,128], index: 1, kind: input, shape index: {}]   ;;  %s1504_s2 = inlined_call_operand.vmem [shape: f32[2,128], index: 2, kind: input, shape index: {}]   ;;  %s1505_s3 = inlined_call_operand.vmem [shape: bf16[512,128], index: 3, kind: output, shape index: {}]  }
   0x1   :  { %s1304_s14 = smov 0  }
   0x2 LB: > { %s25_s15 = sadd.s32 1, %s1272_s13  ;;  %p952_p0 = scmp.ge.s32.totalorder %s1276_s14, 1  ;;  %s1276_s14 = sphi %s1304_s14, %s13_s14   ;;  %s1272_s13 = sphi %s1302_s13, %s1507_s13   ;;  %s1268_s12 = sphi %s1300_s12, %s1506_s12  }
   0x3   : > { %p27_p1 = scmp.ge.s32.totalorder %s25_s15, 2  ;;  %p170_p2 = scmp.lt.s32.totalorder %s1276_s14, 3 }
   0x5   : > { %s1509_s15 = smov (%p27_p1, %s25_s15), 0  ;;  %p171_p3 = pnand %p952_p0, %p170_p2 }
   0x6   : > { %v1236_v0 = vld [vmem:[%s1503_s1] sm:$0xff] (!%p171_p3)   ;;  %vm405_vm0 = vcmask (!%p171_p3), 1043456   ;;  %v1237_v1 = vld [vmem:[%s1503_s1 + $0x8] sm:$0x1f] (!%p171_p3)   ;;  %vm406_vm1 = vcmask (!%p171_p3), 1044480   ;;  %s953_s20 = sshll.u32 (!%p171_p3), %s1268_s12, 5  ;;  %v608_v22 = vlaneseq (!%p171_p3) }
   0x7   : > { %174 = sbr.rel (%p171_p3) target bundleno = 268 (0x10c), region = 32  ;;  %1170 = vmatprep.subr.bf16.mxu0 (!%p171_p3), %v1236_v0  ;;  %1206 = vmatprep.subr.bf16.mxu1 (!%p171_p3), %v1236_v0  ;;  %v1278_v2 = vmov (!%p171_p3), 65535   ;;  %p206_p4 = scmp.lt.s32.totalorder (!%p171_p3), %s953_s20, 63  ;;  %vm356_vm2 = vcmask (!%p171_p3), 203776   ;;  %v573_v23 = vld [vmem:[%s1504_s2] sm:$0x3] (!%p171_p3) }
   0x8   : > { %1171 = vmatpush3.bf16.msra.mxu0 (!%p171_p3), %v1236_v0  ;;  %1208 = vmatpush3.bf16.msra.mxu1 (!%p171_p3), %v1236_v0  ;;  %v407_v3 = vsel (!%p171_p3), %vm405_vm0, 4294967295, %v1278_v2  ;;  %v609_v24 = vshrl.u32 (!%p171_p3), %v608_v22, 7  ;;  %vm574_vm3 = vcmp.ne.f32.partialorder (!%p171_p3), %v573_v23, 0.0  ;;  %v1279_v26 = vmov (!%p171_p3), 0  }
   0x9   : > { %v408_v4 = vsel (!%p171_p3), %vm406_vm1, %v407_v3, 0  ;;  %v607_v27 = vsel (!%p171_p3), %vm574_vm3, 1, %v1279_v26 }
   0xa   : > { %v410_v5 = vand.u32 (!%p171_p3), %v1237_v1, %v408_v4  ;;  %v610_v25 = vsub.s32 (!%p171_p3), 0, %v609_v24  ;;  %v647_v29 = vsub.s32 (!%p171_p3), 1, %v609_v24 }
   0xc   : > { %1172 = vmatprep.subr.bf16.mxu0 (!%p171_p3), %v410_v5  ;;  %1207 = vmatprep.subr.bf16.mxu1 (!%p171_p3), %v410_v5  ;;  %v1369_v28 = vrot.slane (!%p171_p3), %v607_v27, %v610_v25  ;;  %v1372_v34 = vrot.slane (!%p171_p3), %v573_v23, %v647_v29 }
   0xd   : > { %1173 = vmatpush3.bf16.msra.mxu0 (!%p171_p3), %v410_v5  ;;  %1209 = vmatpush3.bf16.msra.mxu1 (!%p171_p3), %v410_v5 }
   0xe   : > { %s1511_s20 = smov (!%p206_p4, %s953_s20), 63  ;;  %vm612_vm4 = vcmp.eq.s32.totalorder %v1369_v28, 1 }
   0xf   : > { %s954_s21 = sshll.u32 %s1511_s20, 2 }
  0x10   : > { %s1332_s24 = scalar_lea.vmem %s1502_s0, %s954_s21  ;;  %s1394_s29 = scalar_lea.vmem %s1505_s3, %s954_s21 }
  0x11   : > { %v1238_v6 = vld [vmem:[%s1332_s24] sm:$0xff]   ;;  %v1240_v8 = vld [vmem:[%s1332_s24 + $0x8] sm:$0xff]   ;;  %v1242_v10 = vld [vmem:[%s1332_s24 + $0x10] sm:$0xff]  }
  0x12   : > { %v1239_v7 = vld [vmem:[%s1332_s24 + $0x40] sm:$0xff]   ;;  %1174 = vmatprep.mubr.msk.bf16.mxu0 %vm356_vm2, %v1238_v6  ;;  %v1241_v9 = vld [vmem:[%s1332_s24 + $0x48] sm:$0xff]   ;;  %v1243_v11 = vld [vmem:[%s1332_s24 + $0x50] sm:$0xff]  }
  0x13   : > { %1190 = vmatprep.mubr.msk.bf16.mxu1 %vm356_vm2, %v1239_v7  ;;  %1175 = vmatmul.mubr.msk.bf16.vlgmr.msra.gmra.mrb[0].mxu0 %vm356_vm2, %v1240_v8  ;;  %v1244_v12 = vld [vmem:[%s1332_s24 + $0x18] sm:$0xff]   ;;  %v1246_v14 = vld [vmem:[%s1332_s24 + $0x20] sm:$0xff]   ;;  %v1248_v16 = vld [vmem:[%s1332_s24 + $0x28] sm:$0xff]  }
  0x14   : > { %1191 = vmatmul.mubr.msk.bf16.vlgmr.msra.gmra.mrb[0].mxu1 %vm356_vm2, %v1241_v9  ;;  %1178 = vmatprep.mubr.msk.bf16.mxu0 %vm356_vm2, %v1242_v10  ;;  %v1245_v13 = vld [vmem:[%s1332_s24 + $0x58] sm:$0xff]   ;;  %v1247_v15 = vld [vmem:[%s1332_s24 + $0x60] sm:$0xff]   ;;  %v1249_v17 = vld [vmem:[%s1332_s24 + $0x68] sm:$0xff]  }
  0x15   : > { %1194 = vmatprep.mubr.msk.bf16.mxu1 %vm356_vm2, %v1243_v11  ;;  %v1250_v18 = vld [vmem:[%s1332_s24 + $0x30] sm:$0xff]   ;;  %v1252_v20 = vld [vmem:[%s1332_s24 + $0x38] sm:$0xff]  }
  0x16   : > { %v1251_v19 = vld [vmem:[%s1332_s24 + $0x70] sm:$0xff]   ;;  %v1253_v21 = vld [vmem:[%s1332_s24 + $0x78] sm:$0xff]  }
  0x1b   : > { %1179 = vmatmul.mubr.msk.bf16.gmra.mrb[4].mxu0 %vm356_vm2, %v1244_v12 }
  0x1c   : > { %1195 = vmatmul.mubr.msk.bf16.gmra.mrb[4].mxu1 %vm356_vm2, %v1245_v13  ;;  %1182 = vmatprep.mubr.msk.bf16.mxu0 %vm356_vm2, %v1246_v14 }
  0x1d   : > { %1198 = vmatprep.mubr.msk.bf16.mxu1 %vm356_vm2, %v1247_v15 }
  0x23   : > { %1183 = vmatmul.mubr.msk.bf16.gmra.mrb[8].mxu0 %vm356_vm2, %v1248_v16 }
  0x24   : > { %1199 = vmatmul.mubr.msk.bf16.gmra.mrb[8].mxu1 %vm356_vm2, %v1249_v17  ;;  %1186 = vmatprep.mubr.msk.bf16.mxu0 %vm356_vm2, %v1250_v18 }
  0x25   : > { %1202 = vmatprep.mubr.msk.bf16.mxu1 %vm356_vm2, %v1251_v19 }
  0x2b   : > { %1187 = vmatmul.mubr.msk.bf16.gmra.mrb[12].mxu0 %vm356_vm2, %v1252_v20 }
  0x2c   : > { %1203 = vmatmul.mubr.msk.bf16.gmra.mrb[12].mxu1 %vm356_vm2, %v1253_v21 }
  0xe6   : > { %v1176_v30 = vpop.f32.mrb[0].mxu0 }
  0xe7   : > { %v577_v31 = vand.u32 2147483647, %v1176_v30  ;;  %v1192_v32 = vpop.f32.mrb[0].mxu1  ;;  %v446_v33 = vpop.f32.mrb[1].mxu0 }
  0xe8   : > { %v593_v35 = vand.u32 2147483647, %v1192_v32  ;;  %v575_v36 = vand.u32 2147483647, %v446_v33  ;;  %v510_v37 = vpop.f32.mrb[1].mxu1  ;;  %v1177_v38 = vpop.f32.mrb[2].mxu0 }
  0xe9   : > { %v615_v39 = vsel %vm612_vm4, %v577_v31, %v1176_v30  ;;  %v591_v40 = vand.u32 2147483647, %v510_v37  ;;  %v578_v41 = vand.u32 2147483647, %v1177_v38  ;;  %v1193_v42 = vpop.f32.mrb[2].mxu1  ;;  %v449_v43 = vpop.f32.mrb[3].mxu0 }
  0xea   : > { %v631_v44 = vsel %vm612_vm4, %v593_v35, %v1192_v32  ;;  %v594_v45 = vand.u32 2147483647, %v1193_v42  ;;  %v513_v46 = vpop.f32.mrb[3].mxu1  ;;  %v613_v47 = vsel %vm612_vm4, %v575_v36, %v446_v33  ;;  %v651_v49 = vadd.f32 %v1372_v34, %v615_v39 }
  0xeb   : > { %v616_v48 = vsel %vm612_vm4, %v578_v41, %v1177_v38  ;;  %v576_v52 = vand.u32 2147483647, %v449_v43  ;;  %v667_v53 = vadd.f32 %v1372_v34, %v631_v44  ;;  %v629_v54 = vsel %vm612_vm4, %v591_v40, %v510_v37 }
  0xec   : > { %v652_v50 = vadd.f32 %v1372_v34, %v616_v48  ;;  %v632_v51 = vsel %vm612_vm4, %v594_v45, %v1193_v42  ;;  %v592_v56 = vand.u32 2147483647, %v513_v46  ;;  %v649_v57 = vadd.f32 %v1372_v34, %v613_v47 }
  0xed   : > { %v668_v55 = vadd.f32 %v1372_v34, %v632_v51  ;;  %v614_v59 = vsel %vm612_vm4, %v576_v52, %v449_v43  ;;  %v665_v3 = vadd.f32 %v1372_v34, %v629_v54 }
  0xee   : > { %v1065_v58 = vpack.c.bf16 %v652_v50, %v651_v49  ;;  %v1180_v60 = vpop.f32.mrb[4].mxu0  ;;  %v650_v62 = vadd.f32 %v1372_v34, %v614_v59  ;;  %v630_v63 = vsel %vm612_vm4, %v592_v56, %v513_v46 }
  0xef   : > { %v1105_v61 = vpack.c.bf16 %v668_v55, %v667_v53  ;;  %v581_v0 = vand.u32 2147483647, %v1180_v60  ;;  %v1196_v1 = vpop.f32.mrb[4].mxu1  ;;  %v462_v2 = vpop.f32.mrb[5].mxu0  ;;  %v666_v4 = vadd.f32 %v1372_v34, %v630_v63 }
  0xf0   : > { %1137 = vst [vmem:[%s1394_s29 + $0x8] sm:$0xff] %v1065_v58   ;;  %v597_v5 = vand.u32 2147483647, %v1196_v1  ;;  %v579_v6 = vand.u32 2147483647, %v462_v2  ;;  %v526_v7 = vpop.f32.mrb[5].mxu1  ;;  %v1060_v9 = vpack.c.bf16 %v650_v62, %v649_v57 }
  0xf1   : > { %v1181_v8 = vpop.f32.mrb[6].mxu0  ;;  %1145 = vst [vmem:[%s1394_s29 + $0x48] sm:$0xff] %v1105_v61   ;;  %v619_v10 = vsel %vm612_vm4, %v581_v0, %v1180_v60  ;;  %v595_v11 = vand.u32 2147483647, %v526_v7  ;;  %v1197_v13 = vpop.f32.mrb[6].mxu1  ;;  %v1100_v15 = vpack.c.bf16 %v666_v4, %v665_v3 }
  0xf2   : > { %v582_v12 = vand.u32 2147483647, %v1181_v8  ;;  %v465_v14 = vpop.f32.mrb[7].mxu0  ;;  %v635_v16 = vsel %vm612_vm4, %v597_v5, %v1196_v1  ;;  %v529_v17 = vpop.f32.mrb[7].mxu1  ;;  %1061 = vst [vmem:[%s1394_s29] sm:$0xff] %v1060_v9   ;;  %v617_v18 = vsel %vm612_vm4, %v579_v6, %v462_v2  ;;  %v655_v20 = vadd.f32 %v1372_v34, %v619_v10 }
  0xf3   : > { %1144 = vst [vmem:[%s1394_s29 + $0x40] sm:$0xff] %v1100_v15   ;;  %v598_v22 = vand.u32 2147483647, %v1197_v13  ;;  %v580_v23 = vand.u32 2147483647, %v465_v14  ;;  %v671_v24 = vadd.f32 %v1372_v34, %v635_v16  ;;  %v633_v25 = vsel %vm612_vm4, %v595_v11, %v526_v7 }
  0xf4   : > { %v620_v19 = vsel %vm612_vm4, %v582_v12, %v1181_v8  ;;  %v596_v26 = vand.u32 2147483647, %v529_v17  ;;  %v653_v27 = vadd.f32 %v1372_v34, %v617_v18  ;;  %v669_v40 = vadd.f32 %v1372_v34, %v633_v25 }
  0xf5   : > { %v656_v21 = vadd.f32 %v1372_v34, %v620_v19  ;;  %v636_v30 = vsel %vm612_vm4, %v598_v22, %v1197_v13  ;;  %v618_v31 = vsel %vm612_vm4, %v580_v23, %v465_v14 }
  0xf6   : > { %v1184_v32 = vpop.f32.mrb[8].mxu0  ;;  %v672_v33 = vadd.f32 %v1372_v34, %v636_v30  ;;  %v654_v35 = vadd.f32 %v1372_v34, %v618_v31  ;;  %v634_v36 = vsel %vm612_vm4, %v596_v26, %v529_v17 }
  0xf7   : > { %v1075_v29 = vpack.c.bf16 %v656_v21, %v655_v20  ;;  %v585_v37 = vand.u32 2147483647, %v1184_v32  ;;  %v1200_v38 = vpop.f32.mrb[8].mxu1  ;;  %v478_v39 = vpop.f32.mrb[9].mxu0  ;;  %v670_v41 = vadd.f32 %v1372_v34, %v634_v36 }
  0xf8   : > { %v601_v42 = vand.u32 2147483647, %v1200_v38  ;;  %v583_v43 = vand.u32 2147483647, %v478_v39  ;;  %v542_v44 = vpop.f32.mrb[9].mxu1  ;;  %v1185_v45 = vpop.f32.mrb[10].mxu0  ;;  %v1115_v46 = vpack.c.bf16 %v672_v33, %v671_v24  ;;  %v1070_v47 = vpack.c.bf16 %v654_v35, %v653_v27 }
  0xf9   : > { %1139 = vst [vmem:[%s1394_s29 + $0x18] sm:$0xff] %v1075_v29   ;;  %v623_v48 = vsel %vm612_vm4, %v585_v37, %v1184_v32  ;;  %v599_v49 = vand.u32 2147483647, %v542_v44  ;;  %v1201_v50 = vpop.f32.mrb[10].mxu1  ;;  %v481_v51 = vpop.f32.mrb[11].mxu0  ;;  %v1110_v52 = vpack.c.bf16 %v670_v41, %v669_v40 }
  0xfa   : > { %v639_v53 = vsel %vm612_vm4, %v601_v42, %v1200_v38  ;;  %v621_v54 = vsel %vm612_vm4, %v583_v43, %v478_v39  ;;  %v545_v55 = vpop.f32.mrb[11].mxu1  ;;  %1147 = vst [vmem:[%s1394_s29 + $0x58] sm:$0xff] %v1115_v46   ;;  %1138 = vst [vmem:[%s1394_s29 + $0x10] sm:$0xff] %v1070_v47   ;;  %v586_v57 = vand.u32 2147483647, %v1185_v45  ;;  %v659_v58 = vadd.f32 %v1372_v34, %v623_v48 }
  0xfb   : > { %v637_v56 = vsel %vm612_vm4, %v599_v49, %v542_v44  ;;  %1146 = vst [vmem:[%s1394_s29 + $0x50] sm:$0xff] %v1110_v52   ;;  %v602_v59 = vand.u32 2147483647, %v1201_v50  ;;  %v584_v60 = vand.u32 2147483647, %v481_v51  ;;  %v675_v62 = vadd.f32 %v1372_v34, %v639_v53 }
  0xfc   : > { %v600_v61 = vand.u32 2147483647, %v545_v55  ;;  %v657_v63 = vadd.f32 %v1372_v34, %v621_v54  ;;  %v673_v0 = vadd.f32 %v1372_v34, %v637_v56  ;;  %v624_v1 = vsel %vm612_vm4, %v586_v57, %v1185_v45 }
  0xfd   : > { %v660_v2 = vadd.f32 %v1372_v34, %v624_v1  ;;  %v640_v3 = vsel %vm612_vm4, %v602_v59, %v1201_v50  ;;  %v622_v4 = vsel %vm612_vm4, %v584_v60, %v481_v51 }
  0xfe   : > { %v638_v5 = vsel %vm612_vm4, %v600_v61, %v545_v55  ;;  %v1188_v6 = vpop.f32.mrb[12].mxu0  ;;  %v676_v7 = vadd.f32 %v1372_v34, %v640_v3  ;;  %v658_v8 = vadd.f32 %v1372_v34, %v622_v4 }
  0xff   : > { %v674_v9 = vadd.f32 %v1372_v34, %v638_v5  ;;  %v589_v10 = vand.u32 2147483647, %v1188_v6  ;;  %v1204_v11 = vpop.f32.mrb[12].mxu1  ;;  %v494_v12 = vpop.f32.mrb[13].mxu0  ;;  %v1085_v13 = vpack.c.bf16 %v660_v2, %v659_v58 }
 0x100   : > { %v605_v14 = vand.u32 2147483647, %v1204_v11  ;;  %v587_v15 = vand.u32 2147483647, %v494_v12  ;;  %v558_v16 = vpop.f32.mrb[13].mxu1  ;;  %v1189_v17 = vpop.f32.mrb[14].mxu0  ;;  %v1125_v18 = vpack.c.bf16 %v676_v7, %v675_v62  ;;  %v1080_v19 = vpack.c.bf16 %v658_v8, %v657_v63 }
 0x101   : > { %v1120_v20 = vpack.c.bf16 %v674_v9, %v673_v0  ;;  %v1205_v21 = vpop.f32.mrb[14].mxu1  ;;  %v497_v22 = vpop.f32.mrb[15].mxu0  ;;  %1141 = vst [vmem:[%s1394_s29 + $0x28] sm:$0xff] %v1085_v13   ;;  %v627_v23 = vsel %vm612_vm4, %v589_v10, %v1188_v6  ;;  %v603_v25 = vand.u32 2147483647, %v558_v16 }
 0x102   : > { %v643_v24 = vsel %vm612_vm4, %v605_v14, %v1204_v11  ;;  %v561_v26 = vpop.f32.mrb[15].mxu1  ;;  %1149 = vst [vmem:[%s1394_s29 + $0x68] sm:$0xff] %v1125_v18   ;;  %1140 = vst [vmem:[%s1394_s29 + $0x20] sm:$0xff] %v1080_v19   ;;  %v590_v27 = vand.u32 2147483647, %v1189_v17  ;;  %v625_v30 = vsel %vm612_vm4, %v587_v15, %v494_v12  ;;  %v663_v35 = vadd.f32 %v1372_v34, %v627_v23 }
 0x103   : > { %1148 = vst [vmem:[%s1394_s29 + $0x60] sm:$0xff] %v1120_v20   ;;  %v606_v29 = vand.u32 2147483647, %v1205_v21  ;;  %v641_v31 = vsel %vm612_vm4, %v603_v25, %v558_v16  ;;  %v588_v32 = vand.u32 2147483647, %v497_v22  ;;  %v679_v36 = vadd.f32 %v1372_v34, %v643_v24 }
 0x104   : > { %v604_v33 = vand.u32 2147483647, %v561_v26  ;;  %v628_v37 = vsel %vm612_vm4, %v590_v27, %v1189_v17  ;;  %v661_v43 = vadd.f32 %v1372_v34, %v625_v30  ;;  %v677_v44 = vadd.f32 %v1372_v34, %v641_v31 }
 0x105   : > { %v644_v38 = vsel %vm612_vm4, %v606_v29, %v1205_v21  ;;  %v664_v39 = vadd.f32 %v1372_v34, %v628_v37  ;;  %v626_v41 = vsel %vm612_vm4, %v588_v32, %v497_v22 }
 0x106   : > { %v680_v40 = vadd.f32 %v1372_v34, %v644_v38  ;;  %v642_v42 = vsel %vm612_vm4, %v604_v33, %v561_v26  ;;  %v662_v45 = vadd.f32 %v1372_v34, %v626_v41 }
 0x107   : > { %v678_v46 = vadd.f32 %v1372_v34, %v642_v42  ;;  %v1095_v47 = vpack.c.bf16 %v664_v39, %v663_v35 }
 0x108   : > { %v1135_v48 = vpack.c.bf16 %v680_v40, %v679_v36  ;;  %v1090_v49 = vpack.c.bf16 %v662_v45, %v661_v43 }
 0x109   : > { %v1130_v50 = vpack.c.bf16 %v678_v46, %v677_v44  ;;  %1143 = vst [vmem:[%s1394_s29 + $0x38] sm:$0xff] %v1095_v47  }
 0x10a   : > { %1151 = vst [vmem:[%s1394_s29 + $0x78] sm:$0xff] %v1135_v48   ;;  %1142 = vst [vmem:[%s1394_s29 + $0x30] sm:$0xff] %v1090_v49  }
 0x10b   : > { %1150 = vst [vmem:[%s1394_s29 + $0x70] sm:$0xff] %v1130_v50  }
 0x10c PF: > { %s13_s14 = sadd.s32 1, %s1276_s14   ;;  %s1506_s12 = smov %s1272_s13 }
 0x10d   : > { %p10_p5 = scmp.ge.s32.totalorder %s13_s14, 4   ;;  %s1507_s13 = smov %s1509_s15 }
 0x10f   :  { %12 = sbr.rel (!%p10_p5) target bundleno = 2 (0x2), region = 68 }

// kernel: _lambda_.14
= control target key start
LH: loop header
LB: loop body
LE: loop exit
PB: predicated region body
PF: predicated region fallthrough
CT: control target
= control target key end

     0   :  { %vm115_vm0 = vcmask 662528   ;;  %vm140_vm1 = vcmask 1040384   ;;  %v557_v8 = vmov 0   ;;  %v262_v17 = vlaneseq  ;;  %s708_s1 = inlined_call_operand.vmem [shape: bf16[81,128], index: 1, kind: input, shape index: {}]   ;;  %s709_s0 = inlined_call_operand.vmem [shape: bf16[128,81], index: 0, kind: input, shape index: {}]   ;;  %s710_s2 = inlined_call_operand.vmem [shape: f32[2,128], index: 2, kind: input, shape index: {}]   ;;  %s711_s3 = inlined_call_operand.vmem [shape: bf16[128,128], index: 3, kind: output, shape index: {}]  }
   0x1   :  { %v543_v0 = vld [vmem:[%s708_s1] sm:$0xff]   ;;  %v544_v1 = vld [vmem:[%s708_s1 + $0x8] sm:$0xff]   ;;  %v545_v2 = vld [vmem:[%s708_s1 + $0x10] sm:$0xff]   ;;  %v142_v9 = vsel %vm140_vm1, 65535, %v557_v8 }
   0x2   :  { %502 = vmatprep.subr.bf16.mxu0 %v543_v0  ;;  %530 = vmatprep.subr.bf16.mxu1 %v543_v0  ;;  %v549_v3 = vld [vmem:[%s709_s0] sm:$0xff]   ;;  %v546_v5 = vld [vmem:[%s708_s1 + $0x18] sm:$0xff]   ;;  %v548_v6 = vld [vmem:[%s708_s1 + $0x28] ss:$0 sps:$4 sm:$0x11]   ;;  %v263_v19 = vshrl.u32 %v262_v17, 7 }
   0x3   :  { %503 = vmatpush3.bf16.msra.mxu0 %v543_v0  ;;  %536 = vmatpush3.bf16.msra.mxu1 %v543_v0  ;;  %v550_v4 = vld [vmem:[%s709_s0 + $0x20] sm:$0xff]   ;;  %v144_v10 = vand.u32 %v548_v6, %v142_v9  ;;  %v551_v11 = vld [vmem:[%s709_s0 + $0x8] sm:$0xff]   ;;  %v553_v13 = vld [vmem:[%s709_s0 + $0x10] sm:$0xff]  }
   0x4   :  { %504 = vmatprep.subr.bf16.mxu0 %v544_v1  ;;  %531 = vmatprep.subr.bf16.mxu1 %v544_v1  ;;  %v547_v7 = vld [vmem:[%s708_s1 + $0x20] sm:$0xff]   ;;  %v552_v12 = vld [vmem:[%s709_s0 + $0x28] sm:$0xff]   ;;  %v554_v14 = vld [vmem:[%s709_s0 + $0x30] sm:$0xff]   ;;  %v264_v20 = vsub.s32 0, %v263_v19  ;;  %v285_v23 = vsub.s32 1, %v263_v19 }
   0x5   :  { %514 = vmatprep.mubr.msk.bf16.mxu0 %vm115_vm0, %v549_v3  ;;  %522 = vmatprep.mubr.msk.bf16.mxu1 %vm115_vm0, %v550_v4  ;;  %v555_v15 = vld [vmem:[%s709_s0 + $0x18] sm:$0xff]   ;;  %v243_v18 = vld [vmem:[%s710_s2] sm:$0x3] }
   0x6   :  { %v556_v16 = vld [vmem:[%s709_s0 + $0x38] sm:$0xff]   ;;  %vm244_vm2 = vcmp.ne.f32.partialorder %v243_v18, 0.0  ;;  %v634_v26 = vrot.slane %v243_v18, %v285_v23 }
   0x7   :  { %505 = vmatpush3.bf16.msra.mxu0 %v544_v1  ;;  %537 = vmatpush3.bf16.msra.mxu1 %v544_v1  ;;  %v261_v21 = vsel %vm244_vm2, 1, %v557_v8 }
   0x8   :  { %506 = vmatprep.subr.bf16.mxu0 %v545_v2  ;;  %532 = vmatprep.subr.bf16.mxu1 %v545_v2  ;;  %v631_v22 = vrot.slane %v261_v21, %v264_v20 }
   0xa   :  { %vm266_vm3 = vcmp.eq.s32.totalorder %v631_v22, 1 }
   0xb   :  { %507 = vmatpush3.bf16.msra.mxu0 %v545_v2  ;;  %538 = vmatpush3.bf16.msra.mxu1 %v545_v2 }
   0xc   :  { %508 = vmatprep.subr.bf16.mxu0 %v546_v5  ;;  %533 = vmatprep.subr.bf16.mxu1 %v546_v5 }
   0xf   :  { %509 = vmatpush3.bf16.msra.mxu0 %v546_v5  ;;  %539 = vmatpush3.bf16.msra.mxu1 %v546_v5 }
  0x10   :  { %510 = vmatprep.subr.bf16.mxu0 %v547_v7  ;;  %534 = vmatprep.subr.bf16.mxu1 %v547_v7 }
  0x13   :  { %511 = vmatpush3.bf16.msra.mxu0 %v547_v7  ;;  %540 = vmatpush3.bf16.msra.mxu1 %v547_v7 }
  0x14   :  { %512 = vmatprep.subr.bf16.mxu0 %v144_v10  ;;  %535 = vmatprep.subr.bf16.mxu1 %v144_v10 }
  0x17   :  { %513 = vmatpush3.bf16.msra.mxu0 %v144_v10  ;;  %541 = vmatpush3.bf16.msra.mxu1 %v144_v10 }
  0x1a   :  { %515 = vmatmul.mubr.msk.bf16.vlgmr.msra.gmra.mrb[0].mxu0 %vm115_vm0, %v551_v11  ;;  %523 = vmatmul.mubr.msk.bf16.vlgmr.msra.gmra.mrb[0].mxu1 %vm115_vm0, %v552_v12 }
  0x1b   :  { %518 = vmatprep.mubr.msk.bf16.mxu0 %vm115_vm0, %v553_v13  ;;  %526 = vmatprep.mubr.msk.bf16.mxu1 %vm115_vm0, %v554_v14 }
  0x22   :  { %519 = vmatmul.mubr.msk.bf16.gmra.mrb[4].mxu0 %vm115_vm0, %v555_v15  ;;  %527 = vmatmul.mubr.msk.bf16.gmra.mrb[4].mxu1 %vm115_vm0, %v556_v16 }
  0xed   :  { %v516_v24 = vpop.f32.mrb[0].mxu0  ;;  %v524_v25 = vpop.f32.mrb[0].mxu1 }
  0xee   :  { %v247_v27 = vand.u32 2147483647, %v516_v24  ;;  %v255_v28 = vand.u32 2147483647, %v524_v25  ;;  %v180_v29 = vpop.f32.mrb[1].mxu0  ;;  %v212_v30 = vpop.f32.mrb[1].mxu1 }
  0xef   :  { %v245_v31 = vand.u32 2147483647, %v180_v29  ;;  %v253_v32 = vand.u32 2147483647, %v212_v30  ;;  %v517_v33 = vpop.f32.mrb[2].mxu0  ;;  %v525_v34 = vpop.f32.mrb[2].mxu1 }
  0xf0   :  { %v269_v35 = vsel %vm266_vm3, %v247_v27, %v516_v24  ;;  %v277_v36 = vsel %vm266_vm3, %v255_v28, %v524_v25  ;;  %v248_v37 = vand.u32 2147483647, %v517_v33  ;;  %v256_v38 = vand.u32 2147483647, %v525_v34  ;;  %v183_v39 = vpop.f32.mrb[3].mxu0  ;;  %v215_v40 = vpop.f32.mrb[3].mxu1 }
  0xf1   :  { %v267_v41 = vsel %vm266_vm3, %v245_v31, %v180_v29  ;;  %v275_v42 = vsel %vm266_vm3, %v253_v32, %v212_v30  ;;  %v289_v43 = vadd.f32 %v634_v26, %v269_v35  ;;  %v297_v44 = vadd.f32 %v634_v26, %v277_v36 }
  0xf2   :  { %v270_v45 = vsel %vm266_vm3, %v248_v37, %v517_v33  ;;  %v278_v46 = vsel %vm266_vm3, %v256_v38, %v525_v34  ;;  %v246_v49 = vand.u32 2147483647, %v183_v39  ;;  %v254_v50 = vand.u32 2147483647, %v215_v40 }
  0xf3   :  { %v290_v47 = vadd.f32 %v634_v26, %v270_v45  ;;  %v298_v48 = vadd.f32 %v634_v26, %v278_v46  ;;  %v287_v51 = vadd.f32 %v634_v26, %v267_v41  ;;  %v295_v52 = vadd.f32 %v634_v26, %v275_v42 }
  0xf4   :  { %v268_v55 = vsel %vm266_vm3, %v246_v49, %v183_v39  ;;  %v276_v56 = vsel %vm266_vm3, %v254_v50, %v215_v40 }
  0xf5   :  { %v449_v53 = vpack.c.bf16 %v290_v47, %v289_v43  ;;  %v469_v54 = vpack.c.bf16 %v298_v48, %v297_v44  ;;  %v520_v57 = vpop.f32.mrb[4].mxu0  ;;  %v528_v58 = vpop.f32.mrb[4].mxu1  ;;  %v288_v59 = vadd.f32 %v634_v26, %v268_v55  ;;  %v296_v60 = vadd.f32 %v634_v26, %v276_v56 }
  0xf6   :  { %v251_v61 = vand.u32 2147483647, %v520_v57  ;;  %v259_v62 = vand.u32 2147483647, %v528_v58  ;;  %v196_v63 = vpop.f32.mrb[5].mxu0  ;;  %v228_v0 = vpop.f32.mrb[5].mxu1 }
  0xf7   :  { %481 = vst [vmem:[%s711_s3 + $0x8] sm:$0xff] %v449_v53   ;;  %485 = vst [vmem:[%s711_s3 + $0x28] sm:$0xff] %v469_v54   ;;  %v249_v1 = vand.u32 2147483647, %v196_v63  ;;  %v257_v2 = vand.u32 2147483647, %v228_v0  ;;  %v444_v5 = vpack.c.bf16 %v288_v59, %v287_v51  ;;  %v464_v6 = vpack.c.bf16 %v296_v60, %v295_v52 }
  0xf8   :  { %v521_v3 = vpop.f32.mrb[6].mxu0  ;;  %v529_v4 = vpop.f32.mrb[6].mxu1  ;;  %v273_v7 = vsel %vm266_vm3, %v251_v61, %v520_v57  ;;  %v281_v8 = vsel %vm266_vm3, %v259_v62, %v528_v58 }
  0xf9   :  { %v199_v9 = vpop.f32.mrb[7].mxu0  ;;  %v231_v10 = vpop.f32.mrb[7].mxu1  ;;  %v271_v11 = vsel %vm266_vm3, %v249_v1, %v196_v63  ;;  %v279_v12 = vsel %vm266_vm3, %v257_v2, %v228_v0  ;;  %445 = vst [vmem:[%s711_s3] sm:$0xff] %v444_v5   ;;  %484 = vst [vmem:[%s711_s3 + $0x20] sm:$0xff] %v464_v6   ;;  %v252_v13 = vand.u32 2147483647, %v521_v3  ;;  %v293_v17 = vadd.f32 %v634_v26, %v273_v7 }
  0xfa   :  { %v260_v14 = vand.u32 2147483647, %v529_v4  ;;  %v250_v15 = vand.u32 2147483647, %v199_v9  ;;  %v258_v16 = vand.u32 2147483647, %v231_v10  ;;  %v301_v18 = vadd.f32 %v634_v26, %v281_v8 }
  0xfb   :  { %v274_v19 = vsel %vm266_vm3, %v252_v13, %v521_v3  ;;  %v291_v27 = vadd.f32 %v634_v26, %v271_v11  ;;  %v299_v28 = vadd.f32 %v634_v26, %v279_v12 }
  0xfc   :  { %v282_v20 = vsel %vm266_vm3, %v260_v14, %v529_v4  ;;  %v294_v21 = vadd.f32 %v634_v26, %v274_v19  ;;  %v272_v24 = vsel %vm266_vm3, %v250_v15, %v199_v9  ;;  %v280_v25 = vsel %vm266_vm3, %v258_v16, %v231_v10 }
  0xfd   :  { %v302_v23 = vadd.f32 %v634_v26, %v282_v20  ;;  %v292_v29 = vadd.f32 %v634_v26, %v272_v24  ;;  %v300_v30 = vadd.f32 %v634_v26, %v280_v25 }
  0xfe   :  { %v459_v31 = vpack.c.bf16 %v294_v21, %v293_v17 }
  0xff   :  { %v479_v32 = vpack.c.bf16 %v302_v23, %v301_v18  ;;  %v454_v33 = vpack.c.bf16 %v292_v29, %v291_v27  ;;  %v474_v34 = vpack.c.bf16 %v300_v30, %v299_v28 }
 0x100   :  { %483 = vst [vmem:[%s711_s3 + $0x18] sm:$0xff] %v459_v31  }
 0x101   :  { %487 = vst [vmem:[%s711_s3 + $0x38] sm:$0xff] %v479_v32   ;;  %482 = vst [vmem:[%s711_s3 + $0x10] sm:$0xff] %v454_v33  }
 0x102   :  { %486 = vst [vmem:[%s711_s3 + $0x30] sm:$0xff] %v474_v34  }

// kernel: _lambda_.19
= control target key start
LH: loop header
LB: loop body
LE: loop exit
PB: predicated region body
PF: predicated region fallthrough
CT: control target
= control target key end

     0   :  { %v584_v0 = vmov 0   ;;  %vm176_vm0 = vcmask 7168   ;;  %vm201_vm1 = vcmask 1040384   ;;  %v49_v28 = vlaneseq  ;;  %s733_s1 = inlined_call_operand.vmem [shape: bf16[129,128], index: 1, kind: input, shape index: {}]   ;;  %s734_s0 = inlined_call_operand.vmem [shape: bf16[128,129], index: 0, kind: input, shape index: {}]   ;;  %s735_s2 = inlined_call_operand.vmem [shape: f32[2,128], index: 2, kind: input, shape index: {}]   ;;  %s736_s3 = inlined_call_operand.vmem [shape: bf16[128,128], index: 3, kind: output, shape index: {}]  }
   0x1   :  { %207 = vmatprep.subr.bf16.mxu0 %v584_v0  ;;  %532 = vmatprep.subr.bf16.mxu1 %v584_v0  ;;  %v551_v1 = vld [vmem:[%s733_s1] sm:$0xff]   ;;  %v552_v2 = vld [vmem:[%s733_s1 + $0x8] sm:$0xff]   ;;  %v553_v3 = vld [vmem:[%s733_s1 + $0x10] sm:$0xff]   ;;  %v203_v12 = vsel %vm201_vm1, 65535, %v584_v0 }
   0x2   :  { %208 = vmatpush1.bf16.msra.mxu0 %v551_v1  ;;  %541 = vmatpush1.bf16.msra.mxu1 %v551_v1  ;;  %v562_v4 = vld [vmem:[%s734_s0 + $0x4] ss:$8 sps:$4 sm:$0xff]   ;;  %v554_v5 = vld [vmem:[%s733_s1 + $0x18] sm:$0xff]   ;;  %v557_v9 = vld [vmem:[%s733_s1 + $0x30] sm:$0xff]   ;;  %v50_v29 = vshrl.u32 %v49_v28, 7 }
   0x3   :  { %209 = vmatprep.subr.bf16.mxu0 %v584_v0  ;;  %533 = vmatprep.subr.bf16.mxu1 %v584_v0  ;;  %v565_v6 = vld [vmem:[%s734_s0 + $0x44] ss:$8 sps:$4 sm:$0xff]   ;;  %v558_v10 = vld [vmem:[%s733_s1 + $0x38] sm:$0xff]   ;;  %v559_v11 = vld [vmem:[%s733_s1 + $0x40] ss:$0 sps:$4 sm:$0x11]  }
   0x4   :  { %445 = vmatprep.mubr.msk.bf16.mxu0 %vm176_vm0, %v562_v4  ;;  %449 = vmatprep.mubr.msk.bf16.mxu1 %vm176_vm0, %v565_v6  ;;  %v555_v7 = vld [vmem:[%s733_s1 + $0x20] sm:$0xff]   ;;  %v556_v8 = vld [vmem:[%s733_s1 + $0x28] sm:$0xff]   ;;  %v205_v13 = vand.u32 %v559_v11, %v203_v12  ;;  %v566_v16 = vld [vmem:[%s734_s0 + $0x14] ss:$8 sps:$4 sm:$0xff]   ;;  %v51_v30 = vsub.s32 1, %v50_v29 }
   0x5   :  { %v560_v14 = vld [vmem:[%s734_s0] ss:$8 sps:$4 sm:$0xff]   ;;  %v568_v17 = vld [vmem:[%s734_s0 + $0x54] ss:$8 sps:$4 sm:$0xff]   ;;  %v570_v18 = vld [vmem:[%s734_s0 + $0x10] ss:$8 sps:$4 sm:$0xff]  }
   0x6   :  { %210 = vmatpush1.bf16.msra.mxu0 %v552_v2  ;;  %542 = vmatpush1.bf16.msra.mxu1 %v552_v2  ;;  %v563_v15 = vld [vmem:[%s734_s0 + $0x40] ss:$8 sps:$4 sm:$0xff]   ;;  %v571_v19 = vld [vmem:[%s734_s0 + $0x50] ss:$8 sps:$4 sm:$0xff]   ;;  %v572_v20 = vld [vmem:[%s734_s0 + $0x24] ss:$8 sps:$4 sm:$0xff]  }
   0x7   :  { %211 = vmatprep.subr.bf16.mxu0 %v584_v0  ;;  %534 = vmatprep.subr.bf16.mxu1 %v584_v0  ;;  %v574_v21 = vld [vmem:[%s734_s0 + $0x64] ss:$8 sps:$4 sm:$0xff]   ;;  %v576_v22 = vld [vmem:[%s734_s0 + $0x20] ss:$8 sps:$4 sm:$0xff]   ;;  %v578_v24 = vld [vmem:[%s734_s0 + $0x34] ss:$8 sps:$4 sm:$0xff]  }
   0x8   :  { %v577_v23 = vld [vmem:[%s734_s0 + $0x60] ss:$8 sps:$4 sm:$0xff]   ;;  %v580_v25 = vld [vmem:[%s734_s0 + $0x74] ss:$8 sps:$4 sm:$0xff]   ;;  %v582_v26 = vld [vmem:[%s734_s0 + $0x30] ss:$8 sps:$4 sm:$0xff]  }
   0x9   :  { %v583_v27 = vld [vmem:[%s734_s0 + $0x70] ss:$8 sps:$4 sm:$0xff]   ;;  %v48_v31 = vld [vmem:[%s735_s2] sm:$0x3] }
   0xa   :  { %212 = vmatpush1.bf16.msra.mxu0 %v553_v3  ;;  %543 = vmatpush1.bf16.msra.mxu1 %v553_v3  ;;  %v691_v32 = vrot.slane %v48_v31, %v51_v30 }
   0xb   :  { %213 = vmatprep.subr.bf16.mxu0 %v584_v0  ;;  %535 = vmatprep.subr.bf16.mxu1 %v584_v0 }
   0xe   :  { %214 = vmatpush1.bf16.msra.mxu0 %v554_v5  ;;  %544 = vmatpush1.bf16.msra.mxu1 %v554_v5 }
   0xf   :  { %215 = vmatprep.subr.bf16.mxu0 %v584_v0  ;;  %536 = vmatprep.subr.bf16.mxu1 %v584_v0 }
  0x12   :  { %216 = vmatpush1.bf16.msra.mxu0 %v555_v7  ;;  %545 = vmatpush1.bf16.msra.mxu1 %v555_v7 }
  0x13   :  { %217 = vmatprep.subr.bf16.mxu0 %v584_v0  ;;  %537 = vmatprep.subr.bf16.mxu1 %v584_v0 }
  0x16   :  { %218 = vmatpush1.bf16.msra.mxu0 %v556_v8  ;;  %546 = vmatpush1.bf16.msra.mxu1 %v556_v8 }
  0x17   :  { %219 = vmatprep.subr.bf16.mxu0 %v584_v0  ;;  %538 = vmatprep.subr.bf16.mxu1 %v584_v0 }
  0x1a   :  { %220 = vmatpush1.bf16.msra.mxu0 %v557_v9  ;;  %547 = vmatpush1.bf16.msra.mxu1 %v557_v9 }
  0x1b   :  { %221 = vmatprep.subr.bf16.mxu0 %v584_v0  ;;  %539 = vmatprep.subr.bf16.mxu1 %v584_v0 }
  0x1e   :  { %222 = vmatpush1.bf16.msra.mxu0 %v558_v10  ;;  %548 = vmatpush1.bf16.msra.mxu1 %v558_v10 }
  0x1f   :  { %223 = vmatprep.subr.bf16.mxu0 %v584_v0  ;;  %540 = vmatprep.subr.bf16.mxu1 %v584_v0 }
  0x22   :  { %224 = vmatpush1.bf16.msra.mxu0 %v205_v13  ;;  %549 = vmatpush1.bf16.msra.mxu1 %v205_v13 }
  0x25   :  { %240 = vmatmul.mubr.bf16.vlgmr.msra.gmra.mrb[0].mxu0 %v560_v14  ;;  %272 = vmatmul.mubr.bf16.vlgmr.msra.gmra.mrb[0].mxu1 %v563_v15 }
  0x26   :  { %446 = vmatprep.mubr.msk.bf16.mxu0 %vm176_vm0, %v566_v16  ;;  %450 = vmatprep.mubr.msk.bf16.mxu1 %vm176_vm0, %v568_v17 }
  0x2d   :  { %248 = vmatmul.mubr.bf16.gmra.mrb[4].mxu0 %v570_v18  ;;  %280 = vmatmul.mubr.bf16.gmra.mrb[4].mxu1 %v571_v19 }
  0x2e   :  { %447 = vmatprep.mubr.msk.bf16.mxu0 %vm176_vm0, %v572_v20  ;;  %451 = vmatprep.mubr.msk.bf16.mxu1 %vm176_vm0, %v574_v21 }
  0x35   :  { %256 = vmatmul.mubr.bf16.gmra.mrb[8].mxu0 %v576_v22  ;;  %288 = vmatmul.mubr.bf16.gmra.mrb[8].mxu1 %v577_v23 }
  0x36   :  { %448 = vmatprep.mubr.msk.bf16.mxu0 %vm176_vm0, %v578_v24  ;;  %452 = vmatprep.mubr.msk.bf16.mxu1 %vm176_vm0, %v580_v25 }
  0x3d   :  { %264 = vmatmul.mubr.bf16.gmra.mrb[12].mxu0 %v582_v26  ;;  %296 = vmatmul.mubr.bf16.gmra.mrb[12].mxu1 %v583_v27 }
  0xf8   :  { %v241_v33 = vpop.f32.mrb[0].mxu0  ;;  %v273_v34 = vpop.f32.mrb[0].mxu1 }
  0xf9   :  { %v242_v35 = vadd.f32 %v241_v33, %v691_v32  ;;  %v274_v36 = vadd.f32 %v273_v34, %v691_v32  ;;  %v243_v37 = vpop.f32.mrb[1].mxu0  ;;  %v275_v38 = vpop.f32.mrb[1].mxu1 }
  0xfa   :  { %v244_v39 = vpop.f32.mrb[2].mxu0  ;;  %v276_v40 = vpop.f32.mrb[2].mxu1 }
  0xfb   :  { %v304_v41 = vmax.f32 %v242_v35, 0.0  ;;  %v312_v42 = vmax.f32 %v274_v36, 0.0  ;;  %v245_v43 = vadd.f32 %v244_v39, %v691_v32  ;;  %v277_v44 = vadd.f32 %v276_v40, %v691_v32  ;;  %v246_v45 = vpop.f32.mrb[3].mxu0  ;;  %v278_v46 = vpop.f32.mrb[3].mxu1 }
  0xfd   :  { %v305_v47 = vmax.f32 %v245_v43, 0.0  ;;  %v313_v48 = vmax.f32 %v277_v44, 0.0  ;;  %v320_v49 = vmin.f32 %v304_v41, 6.0  ;;  %v328_v50 = vmin.f32 %v312_v42, 6.0 }
  0xff   :  { %v321_v51 = vmin.f32 %v305_v47, 6.0  ;;  %v329_v52 = vmin.f32 %v313_v48, 6.0 }
 0x100   :  { %v249_v53 = vpop.f32.mrb[4].mxu0  ;;  %v281_v54 = vpop.f32.mrb[4].mxu1 }
 0x101   :  { %v488_v55 = vpack.c.bf16 %v321_v51, %v320_v49  ;;  %v508_v56 = vpack.c.bf16 %v329_v52, %v328_v50  ;;  %v250_v57 = vadd.f32 %v249_v53, %v691_v32  ;;  %v282_v58 = vadd.f32 %v281_v54, %v691_v32  ;;  %v251_v59 = vpop.f32.mrb[5].mxu0  ;;  %v283_v60 = vpop.f32.mrb[5].mxu1 }
 0x102   :  { %v252_v61 = vpop.f32.mrb[6].mxu0  ;;  %v284_v62 = vpop.f32.mrb[6].mxu1 }
 0x103   :  { %489 = vst [vmem:[%s736_s3] sm:$0xff] %v488_v55   ;;  %528 = vst [vmem:[%s736_s3 + $0x20] sm:$0xff] %v508_v56   ;;  %v306_v63 = vmax.f32 %v250_v57, 0.0  ;;  %v314_v0 = vmax.f32 %v282_v58, 0.0  ;;  %v253_v1 = vadd.f32 %v252_v61, %v691_v32  ;;  %v285_v2 = vadd.f32 %v284_v62, %v691_v32  ;;  %v254_v3 = vpop.f32.mrb[7].mxu0  ;;  %v286_v4 = vpop.f32.mrb[7].mxu1 }
 0x105   :  { %v307_v5 = vmax.f32 %v253_v1, 0.0  ;;  %v315_v6 = vmax.f32 %v285_v2, 0.0  ;;  %v322_v7 = vmin.f32 %v306_v63, 6.0  ;;  %v330_v8 = vmin.f32 %v314_v0, 6.0 }
 0x107   :  { %v323_v9 = vmin.f32 %v307_v5, 6.0  ;;  %v331_v10 = vmin.f32 %v315_v6, 6.0 }
 0x108   :  { %v257_v11 = vpop.f32.mrb[8].mxu0  ;;  %v289_v12 = vpop.f32.mrb[8].mxu1 }
 0x109   :  { %v493_v13 = vpack.c.bf16 %v323_v9, %v322_v7  ;;  %v513_v14 = vpack.c.bf16 %v331_v10, %v330_v8  ;;  %v258_v15 = vadd.f32 %v257_v11, %v691_v32  ;;  %v290_v16 = vadd.f32 %v289_v12, %v691_v32  ;;  %v259_v17 = vpop.f32.mrb[9].mxu0  ;;  %v291_v18 = vpop.f32.mrb[9].mxu1 }
 0x10a   :  { %v260_v19 = vpop.f32.mrb[10].mxu0  ;;  %v292_v20 = vpop.f32.mrb[10].mxu1 }
 0x10b   :  { %525 = vst [vmem:[%s736_s3 + $0x8] sm:$0xff] %v493_v13   ;;  %529 = vst [vmem:[%s736_s3 + $0x28] sm:$0xff] %v513_v14   ;;  %v308_v21 = vmax.f32 %v258_v15, 0.0  ;;  %v316_v22 = vmax.f32 %v290_v16, 0.0  ;;  %v261_v23 = vadd.f32 %v260_v19, %v691_v32  ;;  %v293_v24 = vadd.f32 %v292_v20, %v691_v32  ;;  %v262_v25 = vpop.f32.mrb[11].mxu0  ;;  %v294_v26 = vpop.f32.mrb[11].mxu1 }
 0x10d   :  { %v309_v27 = vmax.f32 %v261_v23, 0.0  ;;  %v317_v28 = vmax.f32 %v293_v24, 0.0  ;;  %v324_v29 = vmin.f32 %v308_v21, 6.0  ;;  %v332_v30 = vmin.f32 %v316_v22, 6.0 }
 0x10f   :  { %v325_v31 = vmin.f32 %v309_v27, 6.0  ;;  %v333_v33 = vmin.f32 %v317_v28, 6.0 }
 0x110   :  { %v265_v34 = vpop.f32.mrb[12].mxu0  ;;  %v297_v35 = vpop.f32.mrb[12].mxu1 }
 0x111   :  { %v498_v36 = vpack.c.bf16 %v325_v31, %v324_v29  ;;  %v518_v37 = vpack.c.bf16 %v333_v33, %v332_v30  ;;  %v266_v38 = vadd.f32 %v265_v34, %v691_v32  ;;  %v298_v39 = vadd.f32 %v297_v35, %v691_v32  ;;  %v267_v40 = vpop.f32.mrb[13].mxu0  ;;  %v299_v41 = vpop.f32.mrb[13].mxu1 }
 0x112   :  { %v268_v42 = vpop.f32.mrb[14].mxu0  ;;  %v300_v43 = vpop.f32.mrb[14].mxu1 }
 0x113   :  { %526 = vst [vmem:[%s736_s3 + $0x10] sm:$0xff] %v498_v36   ;;  %530 = vst [vmem:[%s736_s3 + $0x30] sm:$0xff] %v518_v37   ;;  %v310_v44 = vmax.f32 %v266_v38, 0.0  ;;  %v318_v45 = vmax.f32 %v298_v39, 0.0  ;;  %v269_v46 = vadd.f32 %v268_v42, %v691_v32  ;;  %v301_v47 = vadd.f32 %v300_v43, %v691_v32  ;;  %v270_v48 = vpop.f32.mrb[15].mxu0  ;;  %v302_v49 = vpop.f32.mrb[15].mxu1 }
 0x115   :  { %v311_v50 = vmax.f32 %v269_v46, 0.0  ;;  %v319_v51 = vmax.f32 %v301_v47, 0.0  ;;  %v326_v52 = vmin.f32 %v310_v44, 6.0  ;;  %v334_v53 = vmin.f32 %v318_v45, 6.0 }
 0x117   :  { %v327_v54 = vmin.f32 %v311_v50, 6.0  ;;  %v335_v55 = vmin.f32 %v319_v51, 6.0 }
 0x119   :  { %v503_v56 = vpack.c.bf16 %v327_v54, %v326_v52  ;;  %v523_v57 = vpack.c.bf16 %v335_v55, %v334_v53 }
 0x11b   :  { %527 = vst [vmem:[%s736_s3 + $0x18] sm:$0xff] %v503_v56   ;;  %531 = vst [vmem:[%s736_s3 + $0x38] sm:$0xff] %v523_v57  }

// kernel: _lambda_.20
= control target key start
LH: loop header
LB: loop body
LE: loop exit
PB: predicated region body
PF: predicated region fallthrough
CT: control target
= control target key end

     0   :  { %v48_v16 = vlaneseq  ;;  %s631_s1 = inlined_call_operand.vmem [shape: bf16[128,128], index: 1, kind: input, shape index: {}]   ;;  %s632_s0 = inlined_call_operand.vmem [shape: bf16[128,128], index: 0, kind: input, shape index: {}]   ;;  %s633_s2 = inlined_call_operand.vmem [shape: f32[2,128], index: 2, kind: input, shape index: {}]   ;;  %s634_s3 = inlined_call_operand.vmem [shape: bf16[128,128], index: 3, kind: output, shape index: {}]  }
   0x1   :  { %v520_v0 = vld [vmem:[%s631_s1] sm:$0xff]   ;;  %v521_v1 = vld [vmem:[%s631_s1 + $0x8] sm:$0xff]   ;;  %v522_v2 = vld [vmem:[%s631_s1 + $0x10] sm:$0xff]  }
   0x2   :  { %472 = vmatprep.subr.bf16.mxu0 %v520_v0  ;;  %504 = vmatprep.subr.bf16.mxu1 %v520_v0  ;;  %v523_v3 = vld [vmem:[%s631_s1 + $0x18] sm:$0xff]   ;;  %v528_v4 = vld [vmem:[%s632_s0] sm:$0xff]   ;;  %v525_v7 = vld [vmem:[%s631_s1 + $0x28] sm:$0xff]   ;;  %v49_v17 = vshrl.u32 %v48_v16, 7 }
   0x3   :  { %473 = vmatpush3.bf16.msra.mxu0 %v520_v0  ;;  %512 = vmatpush3.bf16.msra.mxu1 %v520_v0  ;;  %v529_v5 = vld [vmem:[%s632_s0 + $0x20] sm:$0xff]   ;;  %v526_v8 = vld [vmem:[%s631_s1 + $0x30] sm:$0xff]   ;;  %v527_v9 = vld [vmem:[%s631_s1 + $0x38] sm:$0xff]  }
   0x4   :  { %474 = vmatprep.subr.bf16.mxu0 %v521_v1  ;;  %505 = vmatprep.subr.bf16.mxu1 %v521_v1  ;;  %v524_v6 = vld [vmem:[%s631_s1 + $0x20] sm:$0xff]   ;;  %v530_v10 = vld [vmem:[%s632_s0 + $0x8] sm:$0xff]   ;;  %v532_v12 = vld [vmem:[%s632_s0 + $0x10] sm:$0xff]   ;;  %v50_v18 = vsub.s32 1, %v49_v17 }
   0x5   :  { %488 = vmatprep.mubr.bf16.mxu0 %v528_v4  ;;  %496 = vmatprep.mubr.bf16.mxu1 %v529_v5  ;;  %v531_v11 = vld [vmem:[%s632_s0 + $0x28] sm:$0xff]   ;;  %v533_v13 = vld [vmem:[%s632_s0 + $0x30] sm:$0xff]   ;;  %v534_v14 = vld [vmem:[%s632_s0 + $0x18] sm:$0xff]  }
   0x6   :  { %v535_v15 = vld [vmem:[%s632_s0 + $0x38] sm:$0xff]   ;;  %v47_v19 = vld [vmem:[%s633_s2] sm:$0x3] }
   0x7   :  { %475 = vmatpush3.bf16.msra.mxu0 %v521_v1  ;;  %513 = vmatpush3.bf16.msra.mxu1 %v521_v1  ;;  %v51_v20 = vrot.slane %v47_v19, %v50_v18 }
   0x8   :  { %476 = vmatprep.subr.bf16.mxu0 %v522_v2  ;;  %506 = vmatprep.subr.bf16.mxu1 %v522_v2 }
   0xb   :  { %477 = vmatpush3.bf16.msra.mxu0 %v522_v2  ;;  %514 = vmatpush3.bf16.msra.mxu1 %v522_v2 }
   0xc   :  { %478 = vmatprep.subr.bf16.mxu0 %v523_v3  ;;  %507 = vmatprep.subr.bf16.mxu1 %v523_v3 }
   0xf   :  { %479 = vmatpush3.bf16.msra.mxu0 %v523_v3  ;;  %515 = vmatpush3.bf16.msra.mxu1 %v523_v3 }
  0x10   :  { %480 = vmatprep.subr.bf16.mxu0 %v524_v6  ;;  %508 = vmatprep.subr.bf16.mxu1 %v524_v6 }
  0x13   :  { %481 = vmatpush3.bf16.msra.mxu0 %v524_v6  ;;  %516 = vmatpush3.bf16.msra.mxu1 %v524_v6 }
  0x14   :  { %482 = vmatprep.subr.bf16.mxu0 %v525_v7  ;;  %509 = vmatprep.subr.bf16.mxu1 %v525_v7 }
  0x17   :  { %483 = vmatpush3.bf16.msra.mxu0 %v525_v7  ;;  %517 = vmatpush3.bf16.msra.mxu1 %v525_v7 }
  0x18   :  { %484 = vmatprep.subr.bf16.mxu0 %v526_v8  ;;  %510 = vmatprep.subr.bf16.mxu1 %v526_v8 }
  0x1b   :  { %485 = vmatpush3.bf16.msra.mxu0 %v526_v8  ;;  %518 = vmatpush3.bf16.msra.mxu1 %v526_v8 }
  0x1c   :  { %486 = vmatprep.subr.bf16.mxu0 %v527_v9  ;;  %511 = vmatprep.subr.bf16.mxu1 %v527_v9 }
  0x1f   :  { %487 = vmatpush3.bf16.msra.mxu0 %v527_v9  ;;  %519 = vmatpush3.bf16.msra.mxu1 %v527_v9 }
  0x22   :  { %489 = vmatmul.mubr.bf16.vlgmr.msra.gmra.mrb[0].mxu0 %v530_v10  ;;  %497 = vmatmul.mubr.bf16.vlgmr.msra.gmra.mrb[0].mxu1 %v531_v11 }
  0x23   :  { %492 = vmatprep.mubr.bf16.mxu0 %v532_v12  ;;  %500 = vmatprep.mubr.bf16.mxu1 %v533_v13 }
  0x2a   :  { %493 = vmatmul.mubr.bf16.gmra.mrb[4].mxu0 %v534_v14  ;;  %501 = vmatmul.mubr.bf16.gmra.mrb[4].mxu1 %v535_v15 }
  0xf5   :  { %v490_v21 = vpop.f32.mrb[0].mxu0  ;;  %v498_v22 = vpop.f32.mrb[0].mxu1 }
  0xf6   :  { %v191_v23 = vadd.f32 %v490_v21, %v51_v20  ;;  %v223_v24 = vadd.f32 %v498_v22, %v51_v20  ;;  %v182_v25 = vpop.f32.mrb[1].mxu0  ;;  %v214_v26 = vpop.f32.mrb[1].mxu1 }
  0xf7   :  { %v183_v27 = vadd.f32 %v182_v25, %v51_v20  ;;  %v215_v28 = vadd.f32 %v214_v26, %v51_v20  ;;  %v491_v29 = vpop.f32.mrb[2].mxu0  ;;  %v499_v30 = vpop.f32.mrb[2].mxu1 }
  0xf8   :  { %v247_v31 = vmax.f32 %v191_v23, 0.0  ;;  %v255_v32 = vmax.f32 %v223_v24, 0.0  ;;  %v194_v33 = vadd.f32 %v491_v29, %v51_v20  ;;  %v226_v34 = vadd.f32 %v499_v30, %v51_v20  ;;  %v185_v35 = vpop.f32.mrb[3].mxu0  ;;  %v217_v36 = vpop.f32.mrb[3].mxu1 }
  0xf9   :  { %v245_v37 = vmax.f32 %v183_v27, 0.0  ;;  %v253_v38 = vmax.f32 %v215_v28, 0.0  ;;  %v186_v39 = vadd.f32 %v185_v35, %v51_v20  ;;  %v218_v40 = vadd.f32 %v217_v36, %v51_v20 }
  0xfa   :  { %v248_v41 = vmax.f32 %v194_v33, 0.0  ;;  %v256_v42 = vmax.f32 %v226_v34, 0.0  ;;  %v263_v45 = vmin.f32 %v247_v31, 6.0  ;;  %v271_v46 = vmin.f32 %v255_v32, 6.0 }
  0xfb   :  { %v246_v43 = vmax.f32 %v186_v39, 0.0  ;;  %v254_v44 = vmax.f32 %v218_v40, 0.0  ;;  %v261_v49 = vmin.f32 %v245_v37, 6.0  ;;  %v269_v50 = vmin.f32 %v253_v38, 6.0 }
  0xfc   :  { %v264_v47 = vmin.f32 %v248_v41, 6.0  ;;  %v272_v48 = vmin.f32 %v256_v42, 6.0 }
  0xfd   :  { %v262_v51 = vmin.f32 %v246_v43, 6.0  ;;  %v270_v52 = vmin.f32 %v254_v44, 6.0  ;;  %v494_v53 = vpop.f32.mrb[4].mxu0  ;;  %v502_v54 = vpop.f32.mrb[4].mxu1 }
  0xfe   :  { %v417_v55 = vpack.c.bf16 %v264_v47, %v263_v45  ;;  %v437_v56 = vpack.c.bf16 %v272_v48, %v271_v46  ;;  %v207_v57 = vadd.f32 %v494_v53, %v51_v20  ;;  %v239_v58 = vadd.f32 %v502_v54, %v51_v20  ;;  %v198_v59 = vpop.f32.mrb[5].mxu0  ;;  %v230_v60 = vpop.f32.mrb[5].mxu1 }
  0xff   :  { %v412_v61 = vpack.c.bf16 %v262_v51, %v261_v49  ;;  %v432_v62 = vpack.c.bf16 %v270_v52, %v269_v50  ;;  %v199_v63 = vadd.f32 %v198_v59, %v51_v20  ;;  %v231_v0 = vadd.f32 %v230_v60, %v51_v20  ;;  %v495_v1 = vpop.f32.mrb[6].mxu0  ;;  %v503_v2 = vpop.f32.mrb[6].mxu1 }
 0x100   :  { %449 = vst [vmem:[%s634_s3 + $0x8] sm:$0xff] %v417_v55   ;;  %453 = vst [vmem:[%s634_s3 + $0x28] sm:$0xff] %v437_v56   ;;  %v251_v3 = vmax.f32 %v207_v57, 0.0  ;;  %v259_v4 = vmax.f32 %v239_v58, 0.0  ;;  %v210_v5 = vadd.f32 %v495_v1, %v51_v20  ;;  %v242_v6 = vadd.f32 %v503_v2, %v51_v20  ;;  %v201_v7 = vpop.f32.mrb[7].mxu0  ;;  %v233_v8 = vpop.f32.mrb[7].mxu1 }
 0x101   :  { %413 = vst [vmem:[%s634_s3] sm:$0xff] %v412_v61   ;;  %452 = vst [vmem:[%s634_s3 + $0x20] sm:$0xff] %v432_v62   ;;  %v249_v9 = vmax.f32 %v199_v63, 0.0  ;;  %v257_v10 = vmax.f32 %v231_v0, 0.0  ;;  %v202_v11 = vadd.f32 %v201_v7, %v51_v20  ;;  %v234_v12 = vadd.f32 %v233_v8, %v51_v20 }
 0x102   :  { %v252_v13 = vmax.f32 %v210_v5, 0.0  ;;  %v260_v14 = vmax.f32 %v242_v6, 0.0  ;;  %v267_v17 = vmin.f32 %v251_v3, 6.0  ;;  %v275_v18 = vmin.f32 %v259_v4, 6.0 }
 0x103   :  { %v250_v15 = vmax.f32 %v202_v11, 0.0  ;;  %v258_v16 = vmax.f32 %v234_v12, 0.0  ;;  %v265_v22 = vmin.f32 %v249_v9, 6.0  ;;  %v273_v23 = vmin.f32 %v257_v10, 6.0 }
 0x104   :  { %v268_v19 = vmin.f32 %v252_v13, 6.0  ;;  %v276_v21 = vmin.f32 %v260_v14, 6.0 }
 0x105   :  { %v266_v24 = vmin.f32 %v250_v15, 6.0  ;;  %v274_v25 = vmin.f32 %v258_v16, 6.0 }
 0x106   :  { %v427_v26 = vpack.c.bf16 %v268_v19, %v267_v17  ;;  %v447_v27 = vpack.c.bf16 %v276_v21, %v275_v18 }
 0x107   :  { %v422_v28 = vpack.c.bf16 %v266_v24, %v265_v22  ;;  %v442_v29 = vpack.c.bf16 %v274_v25, %v273_v23 }
 0x108   :  { %451 = vst [vmem:[%s634_s3 + $0x18] sm:$0xff] %v427_v26   ;;  %455 = vst [vmem:[%s634_s3 + $0x38] sm:$0xff] %v447_v27  }
 0x109   :  { %450 = vst [vmem:[%s634_s3 + $0x10] sm:$0xff] %v422_v28   ;;  %454 = vst [vmem:[%s634_s3 + $0x30] sm:$0xff] %v442_v29  }

// kernel: _lambda_.21
= control target key start
LH: loop header
LB: loop body
LE: loop exit
PB: predicated region body
PF: predicated region fallthrough
CT: control target
= control target key end

     0   :  { %s1251_s12 = smov 0   ;;  %s1253_s13 = smov 0   ;;  %s1386_s0 = inlined_call_operand.vmem [shape: bf16[512,32], index: 0, kind: input, shape index: {}]   ;;  %s1387_s1 = inlined_call_operand.vmem [shape: bf16[32,128], index: 1, kind: input, shape index: {}]   ;;  %s1388_s2 = inlined_call_operand.vmem [shape: f32[2,128], index: 2, kind: input, shape index: {}]   ;;  %s1389_s3 = inlined_call_operand.vmem [shape: bf16[512,128], index: 3, kind: output, shape index: {}]  }
   0x1   :  { %s1255_s14 = smov 0  }
   0x2 LB: > { %s25_s15 = sadd.s32 1, %s1225_s13  ;;  %p907_p0 = scmp.ge.s32.totalorder %s1229_s14, 1  ;;  %s1229_s14 = sphi %s1255_s14, %s13_s14   ;;  %s1225_s13 = sphi %s1253_s13, %s1391_s13   ;;  %s1221_s12 = sphi %s1251_s12, %s1390_s12  }
   0x3   : > { %p27_p1 = scmp.ge.s32.totalorder %s25_s15, 2  ;;  %p170_p2 = scmp.lt.s32.totalorder %s1229_s14, 3 }
   0x5   : > { %s1393_s15 = smov (%p27_p1, %s25_s15), 0  ;;  %p171_p3 = pnand %p907_p0, %p170_p2 }
   0x6   : > { %v1189_v0 = vld [vmem:[%s1387_s1] sm:$0xff] (!%p171_p3)   ;;  %s908_s18 = sshll.u32 (!%p171_p3), %s1221_s12, 5  ;;  %v1190_v1 = vld [vmem:[%s1387_s1 + $0x8] sm:$0xff] (!%p171_p3)   ;;  %vm362_vm0 = vcmask (!%p171_p3), 261120   ;;  %v266_v18 = vlaneseq (!%p171_p3) }
   0x7   : > { %174 = sbr.rel (%p171_p3) target bundleno = 268 (0x10c), region = 32  ;;  %p206_p4 = scmp.lt.s32.totalorder (!%p171_p3), %s908_s18, 63  ;;  %1125 = vmatprep.subr.bf16.mxu0 (!%p171_p3), %v1189_v0  ;;  %1161 = vmatprep.subr.bf16.mxu1 (!%p171_p3), %v1189_v0  ;;  %v265_v21 = vld [vmem:[%s1388_s2] sm:$0x3] (!%p171_p3) }
   0x8   : > { %1126 = vmatpush3.bf16.msra.mxu0 (!%p171_p3), %v1189_v0  ;;  %1163 = vmatpush3.bf16.msra.mxu1 (!%p171_p3), %v1189_v0  ;;  %v267_v19 = vshrl.u32 (!%p171_p3), %v266_v18, 7 }
   0x9   : > { %1127 = vmatprep.subr.bf16.mxu0 (!%p171_p3), %v1190_v1  ;;  %1162 = vmatprep.subr.bf16.mxu1 (!%p171_p3), %v1190_v1 }
   0xa   : > { %v268_v20 = vsub.s32 (!%p171_p3), 1, %v267_v19 }
   0xc   : > { %1128 = vmatpush3.bf16.msra.mxu0 (!%p171_p3), %v1190_v1  ;;  %1164 = vmatpush3.bf16.msra.mxu1 (!%p171_p3), %v1190_v1  ;;  %v1320_v22 = vrot.slane (!%p171_p3), %v265_v21, %v268_v20 }
   0xe   : > { %s1395_s18 = smov (!%p206_p4, %s908_s18), 63 }
   0xf   : > { %s909_s21 = sshll.u32 %s1395_s18, 2 }
  0x10   : > { %s1283_s24 = scalar_lea.vmem %s1386_s0, %s909_s21  ;;  %s1335_s29 = scalar_lea.vmem %s1389_s3, %s909_s21 }
  0x11   : > { %v1191_v2 = vld [vmem:[%s1283_s24] sm:$0xff]   ;;  %v1193_v4 = vld [vmem:[%s1283_s24 + $0x8] sm:$0xff]   ;;  %v1195_v6 = vld [vmem:[%s1283_s24 + $0x10] sm:$0xff]  }
  0x12   : > { %v1192_v3 = vld [vmem:[%s1283_s24 + $0x40] sm:$0xff]   ;;  %1129 = vmatprep.mubr.msk.bf16.mxu0 %vm362_vm0, %v1191_v2  ;;  %v1194_v5 = vld [vmem:[%s1283_s24 + $0x48] sm:$0xff]   ;;  %v1196_v7 = vld [vmem:[%s1283_s24 + $0x50] sm:$0xff]  }
  0x13   : > { %1145 = vmatprep.mubr.msk.bf16.mxu1 %vm362_vm0, %v1192_v3  ;;  %1130 = vmatmul.mubr.msk.bf16.vlgmr.msra.gmra.mrb[0].mxu0 %vm362_vm0, %v1193_v4  ;;  %v1197_v8 = vld [vmem:[%s1283_s24 + $0x18] sm:$0xff]   ;;  %v1199_v10 = vld [vmem:[%s1283_s24 + $0x20] sm:$0xff]   ;;  %v1201_v12 = vld [vmem:[%s1283_s24 + $0x28] sm:$0xff]  }
  0x14   : > { %1146 = vmatmul.mubr.msk.bf16.vlgmr.msra.gmra.mrb[0].mxu1 %vm362_vm0, %v1194_v5  ;;  %1133 = vmatprep.mubr.msk.bf16.mxu0 %vm362_vm0, %v1195_v6  ;;  %v1198_v9 = vld [vmem:[%s1283_s24 + $0x58] sm:$0xff]   ;;  %v1200_v11 = vld [vmem:[%s1283_s24 + $0x60] sm:$0xff]   ;;  %v1202_v13 = vld [vmem:[%s1283_s24 + $0x68] sm:$0xff]  }
  0x15   : > { %1149 = vmatprep.mubr.msk.bf16.mxu1 %vm362_vm0, %v1196_v7  ;;  %v1203_v14 = vld [vmem:[%s1283_s24 + $0x30] sm:$0xff]   ;;  %v1205_v16 = vld [vmem:[%s1283_s24 + $0x38] sm:$0xff]  }
  0x16   : > { %v1204_v15 = vld [vmem:[%s1283_s24 + $0x70] sm:$0xff]   ;;  %v1206_v17 = vld [vmem:[%s1283_s24 + $0x78] sm:$0xff]  }
  0x1b   : > { %1134 = vmatmul.mubr.msk.bf16.gmra.mrb[4].mxu0 %vm362_vm0, %v1197_v8 }
  0x1c   : > { %1150 = vmatmul.mubr.msk.bf16.gmra.mrb[4].mxu1 %vm362_vm0, %v1198_v9  ;;  %1137 = vmatprep.mubr.msk.bf16.mxu0 %vm362_vm0, %v1199_v10 }
  0x1d   : > { %1153 = vmatprep.mubr.msk.bf16.mxu1 %vm362_vm0, %v1200_v11 }
  0x23   : > { %1138 = vmatmul.mubr.msk.bf16.gmra.mrb[8].mxu0 %vm362_vm0, %v1201_v12 }
  0x24   : > { %1154 = vmatmul.mubr.msk.bf16.gmra.mrb[8].mxu1 %vm362_vm0, %v1202_v13  ;;  %1141 = vmatprep.mubr.msk.bf16.mxu0 %vm362_vm0, %v1203_v14 }
  0x25   : > { %1157 = vmatprep.mubr.msk.bf16.mxu1 %vm362_vm0, %v1204_v15 }
  0x2b   : > { %1142 = vmatmul.mubr.msk.bf16.gmra.mrb[12].mxu0 %vm362_vm0, %v1205_v16 }
  0x2c   : > { %1158 = vmatmul.mubr.msk.bf16.gmra.mrb[12].mxu1 %vm362_vm0, %v1206_v17 }
  0xe6   : > { %v1131_v23 = vpop.f32.mrb[0].mxu0 }
  0xe7   : > { %v454_v24 = vadd.f32 %v1131_v23, %v1320_v22  ;;  %v1147_v25 = vpop.f32.mrb[0].mxu1  ;;  %v445_v26 = vpop.f32.mrb[1].mxu0 }
  0xe8   : > { %v518_v27 = vadd.f32 %v1147_v25, %v1320_v22  ;;  %v446_v28 = vadd.f32 %v445_v26, %v1320_v22  ;;  %v509_v29 = vpop.f32.mrb[1].mxu1  ;;  %v1132_v30 = vpop.f32.mrb[2].mxu0 }
  0xe9   : > { %v574_v31 = vmax.f32 %v454_v24, 0.0  ;;  %v510_v32 = vadd.f32 %v509_v29, %v1320_v22  ;;  %v457_v33 = vadd.f32 %v1132_v30, %v1320_v22  ;;  %v1148_v34 = vpop.f32.mrb[2].mxu1  ;;  %v448_v35 = vpop.f32.mrb[3].mxu0 }
  0xea   : > { %v590_v36 = vmax.f32 %v518_v27, 0.0  ;;  %v572_v37 = vmax.f32 %v446_v28, 0.0  ;;  %v521_v38 = vadd.f32 %v1148_v34, %v1320_v22  ;;  %v449_v39 = vadd.f32 %v448_v35, %v1320_v22  ;;  %v512_v40 = vpop.f32.mrb[3].mxu1 }
  0xeb   : > { %v588_v41 = vmax.f32 %v510_v32, 0.0  ;;  %v575_v42 = vmax.f32 %v457_v33, 0.0  ;;  %v513_v43 = vadd.f32 %v512_v40, %v1320_v22  ;;  %v606_v46 = vmin.f32 %v574_v31, 6.0 }
  0xec   : > { %v591_v44 = vmax.f32 %v521_v38, 0.0  ;;  %v573_v45 = vmax.f32 %v449_v39, 0.0  ;;  %v622_v49 = vmin.f32 %v590_v36, 6.0  ;;  %v604_v50 = vmin.f32 %v572_v37, 6.0 }
  0xed   : > { %v607_v47 = vmin.f32 %v575_v42, 6.0  ;;  %v589_v48 = vmax.f32 %v513_v43, 0.0  ;;  %v620_v54 = vmin.f32 %v588_v41, 6.0 }
  0xee   : > { %v623_v51 = vmin.f32 %v591_v44, 6.0  ;;  %v605_v52 = vmin.f32 %v573_v45, 6.0  ;;  %v1135_v53 = vpop.f32.mrb[4].mxu0 }
  0xef   : > { %v1020_v55 = vpack.c.bf16 %v607_v47, %v606_v46  ;;  %v621_v56 = vmin.f32 %v589_v48, 6.0  ;;  %v470_v57 = vadd.f32 %v1135_v53, %v1320_v22  ;;  %v1151_v58 = vpop.f32.mrb[4].mxu1  ;;  %v461_v59 = vpop.f32.mrb[5].mxu0 }
  0xf0   : > { %v1060_v60 = vpack.c.bf16 %v623_v51, %v622_v49  ;;  %v1015_v61 = vpack.c.bf16 %v605_v52, %v604_v50  ;;  %v534_v62 = vadd.f32 %v1151_v58, %v1320_v22  ;;  %v462_v63 = vadd.f32 %v461_v59, %v1320_v22  ;;  %v525_v0 = vpop.f32.mrb[5].mxu1  ;;  %v1136_v1 = vpop.f32.mrb[6].mxu0 }
  0xf1   : > { %1092 = vst [vmem:[%s1335_s29 + $0x8] sm:$0xff] %v1020_v55   ;;  %v1055_v2 = vpack.c.bf16 %v621_v56, %v620_v54  ;;  %v578_v3 = vmax.f32 %v470_v57, 0.0  ;;  %v526_v4 = vadd.f32 %v525_v0, %v1320_v22  ;;  %v473_v5 = vadd.f32 %v1136_v1, %v1320_v22  ;;  %v1152_v6 = vpop.f32.mrb[6].mxu1  ;;  %v464_v7 = vpop.f32.mrb[7].mxu0 }
  0xf2   : > { %1100 = vst [vmem:[%s1335_s29 + $0x48] sm:$0xff] %v1060_v60   ;;  %1016 = vst [vmem:[%s1335_s29] sm:$0xff] %v1015_v61   ;;  %v594_v8 = vmax.f32 %v534_v62, 0.0  ;;  %v576_v9 = vmax.f32 %v462_v63, 0.0  ;;  %v537_v10 = vadd.f32 %v1152_v6, %v1320_v22  ;;  %v465_v11 = vadd.f32 %v464_v7, %v1320_v22  ;;  %v528_v12 = vpop.f32.mrb[7].mxu1 }
  0xf3   : > { %1099 = vst [vmem:[%s1335_s29 + $0x40] sm:$0xff] %v1055_v2   ;;  %v592_v13 = vmax.f32 %v526_v4, 0.0  ;;  %v579_v14 = vmax.f32 %v473_v5, 0.0  ;;  %v529_v15 = vadd.f32 %v528_v12, %v1320_v22  ;;  %v610_v18 = vmin.f32 %v578_v3, 6.0 }
  0xf4   : > { %v595_v16 = vmax.f32 %v537_v10, 0.0  ;;  %v577_v17 = vmax.f32 %v465_v11, 0.0  ;;  %v626_v21 = vmin.f32 %v594_v8, 6.0  ;;  %v608_v23 = vmin.f32 %v576_v9, 6.0 }
  0xf5   : > { %v611_v19 = vmin.f32 %v579_v14, 6.0  ;;  %v593_v20 = vmax.f32 %v529_v15, 0.0  ;;  %v624_v27 = vmin.f32 %v592_v13, 6.0 }
  0xf6   : > { %v627_v24 = vmin.f32 %v595_v16, 6.0  ;;  %v609_v25 = vmin.f32 %v577_v17, 6.0  ;;  %v1139_v26 = vpop.f32.mrb[8].mxu0 }
  0xf7   : > { %v1030_v28 = vpack.c.bf16 %v611_v19, %v610_v18  ;;  %v625_v29 = vmin.f32 %v593_v20, 6.0  ;;  %v486_v30 = vadd.f32 %v1139_v26, %v1320_v22  ;;  %v1155_v31 = vpop.f32.mrb[8].mxu1  ;;  %v477_v32 = vpop.f32.mrb[9].mxu0 }
  0xf8   : > { %v1070_v33 = vpack.c.bf16 %v627_v24, %v626_v21  ;;  %v1025_v34 = vpack.c.bf16 %v609_v25, %v608_v23  ;;  %v550_v35 = vadd.f32 %v1155_v31, %v1320_v22  ;;  %v478_v36 = vadd.f32 %v477_v32, %v1320_v22  ;;  %v541_v37 = vpop.f32.mrb[9].mxu1  ;;  %v1140_v38 = vpop.f32.mrb[10].mxu0 }
  0xf9   : > { %1094 = vst [vmem:[%s1335_s29 + $0x18] sm:$0xff] %v1030_v28   ;;  %v1065_v39 = vpack.c.bf16 %v625_v29, %v624_v27  ;;  %v582_v40 = vmax.f32 %v486_v30, 0.0  ;;  %v542_v41 = vadd.f32 %v541_v37, %v1320_v22  ;;  %v489_v42 = vadd.f32 %v1140_v38, %v1320_v22  ;;  %v1156_v43 = vpop.f32.mrb[10].mxu1  ;;  %v480_v44 = vpop.f32.mrb[11].mxu0 }
  0xfa   : > { %1102 = vst [vmem:[%s1335_s29 + $0x58] sm:$0xff] %v1070_v33   ;;  %1093 = vst [vmem:[%s1335_s29 + $0x10] sm:$0xff] %v1025_v34   ;;  %v598_v45 = vmax.f32 %v550_v35, 0.0  ;;  %v580_v46 = vmax.f32 %v478_v36, 0.0  ;;  %v553_v47 = vadd.f32 %v1156_v43, %v1320_v22  ;;  %v481_v48 = vadd.f32 %v480_v44, %v1320_v22  ;;  %v544_v49 = vpop.f32.mrb[11].mxu1 }
  0xfb   : > { %1101 = vst [vmem:[%s1335_s29 + $0x50] sm:$0xff] %v1065_v39   ;;  %v596_v50 = vmax.f32 %v542_v41, 0.0  ;;  %v583_v51 = vmax.f32 %v489_v42, 0.0  ;;  %v545_v52 = vadd.f32 %v544_v49, %v1320_v22  ;;  %v614_v55 = vmin.f32 %v582_v40, 6.0 }
  0xfc   : > { %v599_v53 = vmax.f32 %v553_v47, 0.0  ;;  %v581_v54 = vmax.f32 %v481_v48, 0.0  ;;  %v630_v58 = vmin.f32 %v598_v45, 6.0  ;;  %v612_v59 = vmin.f32 %v580_v46, 6.0 }
  0xfd   : > { %v615_v56 = vmin.f32 %v583_v51, 6.0  ;;  %v597_v57 = vmax.f32 %v545_v52, 0.0  ;;  %v628_v63 = vmin.f32 %v596_v50, 6.0 }
  0xfe   : > { %v631_v60 = vmin.f32 %v599_v53, 6.0  ;;  %v613_v61 = vmin.f32 %v581_v54, 6.0  ;;  %v1143_v62 = vpop.f32.mrb[12].mxu0 }
  0xff   : > { %v1040_v0 = vpack.c.bf16 %v615_v56, %v614_v55  ;;  %v629_v1 = vmin.f32 %v597_v57, 6.0  ;;  %v502_v2 = vadd.f32 %v1143_v62, %v1320_v22  ;;  %v1159_v3 = vpop.f32.mrb[12].mxu1  ;;  %v493_v4 = vpop.f32.mrb[13].mxu0 }
 0x100   : > { %v1080_v5 = vpack.c.bf16 %v631_v60, %v630_v58  ;;  %v1035_v6 = vpack.c.bf16 %v613_v61, %v612_v59  ;;  %v566_v7 = vadd.f32 %v1159_v3, %v1320_v22  ;;  %v494_v8 = vadd.f32 %v493_v4, %v1320_v22  ;;  %v557_v9 = vpop.f32.mrb[13].mxu1  ;;  %v1144_v10 = vpop.f32.mrb[14].mxu0 }
 0x101   : > { %1096 = vst [vmem:[%s1335_s29 + $0x28] sm:$0xff] %v1040_v0   ;;  %v1075_v11 = vpack.c.bf16 %v629_v1, %v628_v63  ;;  %v586_v12 = vmax.f32 %v502_v2, 0.0  ;;  %v558_v13 = vadd.f32 %v557_v9, %v1320_v22  ;;  %v505_v14 = vadd.f32 %v1144_v10, %v1320_v22  ;;  %v1160_v15 = vpop.f32.mrb[14].mxu1  ;;  %v496_v16 = vpop.f32.mrb[15].mxu0 }
 0x102   : > { %1104 = vst [vmem:[%s1335_s29 + $0x68] sm:$0xff] %v1080_v5   ;;  %1095 = vst [vmem:[%s1335_s29 + $0x20] sm:$0xff] %v1035_v6   ;;  %v602_v17 = vmax.f32 %v566_v7, 0.0  ;;  %v584_v18 = vmax.f32 %v494_v8, 0.0  ;;  %v569_v19 = vadd.f32 %v1160_v15, %v1320_v22  ;;  %v497_v20 = vadd.f32 %v496_v16, %v1320_v22  ;;  %v560_v21 = vpop.f32.mrb[15].mxu1 }
 0x103   : > { %1103 = vst [vmem:[%s1335_s29 + $0x60] sm:$0xff] %v1075_v11   ;;  %v600_v23 = vmax.f32 %v558_v13, 0.0  ;;  %v587_v24 = vmax.f32 %v505_v14, 0.0  ;;  %v561_v25 = vadd.f32 %v560_v21, %v1320_v22  ;;  %v618_v28 = vmin.f32 %v586_v12, 6.0 }
 0x104   : > { %v603_v26 = vmax.f32 %v569_v19, 0.0  ;;  %v585_v27 = vmax.f32 %v497_v20, 0.0  ;;  %v634_v31 = vmin.f32 %v602_v17, 6.0  ;;  %v616_v32 = vmin.f32 %v584_v18, 6.0 }
 0x105   : > { %v619_v29 = vmin.f32 %v587_v24, 6.0  ;;  %v601_v30 = vmax.f32 %v561_v25, 0.0  ;;  %v632_v35 = vmin.f32 %v600_v23, 6.0 }
 0x106   : > { %v635_v33 = vmin.f32 %v603_v26, 6.0  ;;  %v617_v34 = vmin.f32 %v585_v27, 6.0 }
 0x107   : > { %v1050_v36 = vpack.c.bf16 %v619_v29, %v618_v28  ;;  %v633_v37 = vmin.f32 %v601_v30, 6.0 }
 0x108   : > { %v1090_v38 = vpack.c.bf16 %v635_v33, %v634_v31  ;;  %v1045_v39 = vpack.c.bf16 %v617_v34, %v616_v32 }
 0x109   : > { %1098 = vst [vmem:[%s1335_s29 + $0x38] sm:$0xff] %v1050_v36   ;;  %v1085_v40 = vpack.c.bf16 %v633_v37, %v632_v35 }
 0x10a   : > { %1106 = vst [vmem:[%s1335_s29 + $0x78] sm:$0xff] %v1090_v38   ;;  %1097 = vst [vmem:[%s1335_s29 + $0x30] sm:$0xff] %v1045_v39  }
 0x10b   : > { %1105 = vst [vmem:[%s1335_s29 + $0x70] sm:$0xff] %v1085_v40  }
 0x10c PF: > { %s13_s14 = sadd.s32 1, %s1229_s14   ;;  %s1390_s12 = smov %s1225_s13 }
 0x10d   : > { %p10_p5 = scmp.ge.s32.totalorder %s13_s14, 4   ;;  %s1391_s13 = smov %s1393_s15 }
 0x10f   :  { %12 = sbr.rel (!%p10_p5) target bundleno = 2 (0x2), region = 68 }

// kernel: _lambda_.22
= control target key start
LH: loop header
LB: loop body
LE: loop exit
PB: predicated region body
PF: predicated region fallthrough
CT: control target
= control target key end

     0   :  { %s1300_s12 = smov 0   ;;  %s1302_s13 = smov 0   ;;  %s1444_s0 = inlined_call_operand.vmem [shape: bf16[512,65], index: 0, kind: input, shape index: {}]   ;;  %s1445_s1 = inlined_call_operand.vmem [shape: bf16[65,128], index: 1, kind: input, shape index: {}]   ;;  %s1446_s2 = inlined_call_operand.vmem [shape: f32[2,128], index: 2, kind: input, shape index: {}]   ;;  %s1447_s3 = inlined_call_operand.vmem [shape: bf16[512,128], index: 3, kind: output, shape index: {}]  }
   0x1   :  { %s1304_s14 = smov 0  }
   0x2 LB: > { %s25_s15 = sadd.s32 1, %s1273_s13  ;;  %p933_p0 = scmp.ge.s32.totalorder %s1277_s14, 1  ;;  %s1277_s14 = sphi %s1304_s14, %s13_s14   ;;  %s1273_s13 = sphi %s1302_s13, %s1449_s13   ;;  %s1269_s12 = sphi %s1300_s12, %s1448_s12  }
   0x3   : > { %p27_p1 = scmp.ge.s32.totalorder %s25_s15, 2  ;;  %p170_p2 = scmp.lt.s32.totalorder %s1277_s14, 3 }
   0x5   : > { %s1451_s15 = smov (%p27_p1, %s25_s15), 0  ;;  %p171_p3 = pnand %p933_p0, %p170_p2 }
   0x6   : > { %v1234_v0 = vld [vmem:[%s1445_s1] sm:$0xff] (!%p171_p3)   ;;  %v1235_v1 = vld [vmem:[%s1445_s1 + $0x8] sm:$0xff] (!%p171_p3)   ;;  %s934_s20 = sshll.u32 (!%p171_p3), %s1269_s12, 5  ;;  %v1236_v2 = vld [vmem:[%s1445_s1 + $0x10] sm:$0xff] (!%p171_p3)   ;;  %vm431_vm0 = vcmask (!%p171_p3), 1040384   ;;  %v1279_v5 = vmov (!%p171_p3), 0   ;;  %v271_v24 = vlaneseq (!%p171_p3) }
   0x7   : > { %174 = sbr.rel (%p171_p3) target bundleno = 275 (0x113), region = 32  ;;  %1157 = vmatprep.subr.bf16.mxu0 (!%p171_p3), %v1234_v0  ;;  %1199 = vmatprep.subr.bf16.mxu1 (!%p171_p3), %v1234_v0  ;;  %p206_p4 = scmp.lt.s32.totalorder (!%p171_p3), %s934_s20, 63  ;;  %v1237_v3 = vld [vmem:[%s1445_s1 + $0x18] sm:$0xff] (!%p171_p3)   ;;  %v1238_v4 = vld [vmem:[%s1445_s1 + $0x20] ss:$0 sps:$4 sm:$0x11] (!%p171_p3)  }
   0x8   : > { %1158 = vmatpush3.bf16.msra.mxu0 (!%p171_p3), %v1234_v0  ;;  %1204 = vmatpush3.bf16.msra.mxu1 (!%p171_p3), %v1234_v0  ;;  %v433_v6 = vsel (!%p171_p3), %vm431_vm0, 65535, %v1279_v5  ;;  %vm382_vm1 = vcmask (!%p171_p3), 531456   ;;  %v272_v25 = vshrl.u32 (!%p171_p3), %v271_v24, 7  ;;  %v270_v27 = vld [vmem:[%s1446_s2] sm:$0x3] (!%p171_p3) }
   0x9   : > { %1159 = vmatprep.subr.bf16.mxu0 (!%p171_p3), %v1235_v1  ;;  %1200 = vmatprep.subr.bf16.mxu1 (!%p171_p3), %v1235_v1  ;;  %v435_v9 = vand.u32 (!%p171_p3), %v1238_v4, %v433_v6 }
   0xa   : > { %v273_v26 = vsub.s32 (!%p171_p3), 1, %v272_v25 }
   0xc   : > { %1160 = vmatpush3.bf16.msra.mxu0 (!%p171_p3), %v1235_v1  ;;  %1205 = vmatpush3.bf16.msra.mxu1 (!%p171_p3), %v1235_v1  ;;  %v1378_v28 = vrot.slane (!%p171_p3), %v270_v27, %v273_v26 }
   0xd   : > { %1161 = vmatprep.subr.bf16.mxu0 (!%p171_p3), %v1236_v2  ;;  %1201 = vmatprep.subr.bf16.mxu1 (!%p171_p3), %v1236_v2 }
   0xe   : > { %s1453_s20 = smov (!%p206_p4, %s934_s20), 63 }
   0xf   : > { %s935_s27 = sshll.u32 %s1453_s20, 2 }
  0x10   : > { %s1341_s30 = scalar_lea.vmem %s1444_s0, %s935_s27  ;;  %1162 = vmatpush3.bf16.msra.mxu0 %v1236_v2  ;;  %1206 = vmatpush3.bf16.msra.mxu1 %v1236_v2  ;;  %s1393_s8 = scalar_lea.vmem %s1447_s3, %s935_s27 }
  0x11   : > { %v1239_v7 = vld [vmem:[%s1341_s30] sm:$0xff]   ;;  %1163 = vmatprep.subr.bf16.mxu0 %v1237_v3  ;;  %1202 = vmatprep.subr.bf16.mxu1 %v1237_v3  ;;  %v1241_v10 = vld [vmem:[%s1341_s30 + $0x8] sm:$0xff]   ;;  %v1243_v12 = vld [vmem:[%s1341_s30 + $0x10] sm:$0xff]  }
  0x12   : > { %v1240_v8 = vld [vmem:[%s1341_s30 + $0x40] sm:$0xff]   ;;  %1167 = vmatprep.mubr.msk.bf16.mxu0 %vm382_vm1, %v1239_v7  ;;  %v1242_v11 = vld [vmem:[%s1341_s30 + $0x48] sm:$0xff]   ;;  %v1244_v13 = vld [vmem:[%s1341_s30 + $0x50] sm:$0xff]  }
  0x13   : > { %1183 = vmatprep.mubr.msk.bf16.mxu1 %vm382_vm1, %v1240_v8  ;;  %v1245_v14 = vld [vmem:[%s1341_s30 + $0x18] sm:$0xff]   ;;  %v1247_v16 = vld [vmem:[%s1341_s30 + $0x20] sm:$0xff]   ;;  %v1249_v18 = vld [vmem:[%s1341_s30 + $0x28] sm:$0xff]  }
  0x14   : > { %1164 = vmatpush3.bf16.msra.mxu0 %v1237_v3  ;;  %1207 = vmatpush3.bf16.msra.mxu1 %v1237_v3  ;;  %v1246_v15 = vld [vmem:[%s1341_s30 + $0x58] sm:$0xff]   ;;  %v1248_v17 = vld [vmem:[%s1341_s30 + $0x60] sm:$0xff]   ;;  %v1250_v19 = vld [vmem:[%s1341_s30 + $0x68] sm:$0xff]  }
  0x15   : > { %1165 = vmatprep.subr.bf16.mxu0 %v435_v9  ;;  %1203 = vmatprep.subr.bf16.mxu1 %v435_v9  ;;  %v1251_v20 = vld [vmem:[%s1341_s30 + $0x30] sm:$0xff]   ;;  %v1253_v22 = vld [vmem:[%s1341_s30 + $0x38] sm:$0xff]  }
  0x16   : > { %v1252_v21 = vld [vmem:[%s1341_s30 + $0x70] sm:$0xff]   ;;  %v1254_v23 = vld [vmem:[%s1341_s30 + $0x78] sm:$0xff]  }
  0x18   : > { %1166 = vmatpush3.bf16.msra.mxu0 %v435_v9  ;;  %1208 = vmatpush3.bf16.msra.mxu1 %v435_v9 }
  0x1b   : > { %1168 = vmatmul.mubr.msk.bf16.vlgmr.msra.gmra.mrb[0].mxu0 %vm382_vm1, %v1241_v10  ;;  %1184 = vmatmul.mubr.msk.bf16.vlgmr.msra.gmra.mrb[0].mxu1 %vm382_vm1, %v1242_v11 }
  0x1c   : > { %1171 = vmatprep.mubr.msk.bf16.mxu0 %vm382_vm1, %v1243_v12  ;;  %1187 = vmatprep.mubr.msk.bf16.mxu1 %vm382_vm1, %v1244_v13 }
  0x23   : > { %1172 = vmatmul.mubr.msk.bf16.gmra.mrb[4].mxu0 %vm382_vm1, %v1245_v14  ;;  %1188 = vmatmul.mubr.msk.bf16.gmra.mrb[4].mxu1 %vm382_vm1, %v1246_v15 }
  0x24   : > { %1175 = vmatprep.mubr.msk.bf16.mxu0 %vm382_vm1, %v1247_v16  ;;  %1191 = vmatprep.mubr.msk.bf16.mxu1 %vm382_vm1, %v1248_v17 }
  0x2b   : > { %1176 = vmatmul.mubr.msk.bf16.gmra.mrb[8].mxu0 %vm382_vm1, %v1249_v18  ;;  %1192 = vmatmul.mubr.msk.bf16.gmra.mrb[8].mxu1 %vm382_vm1, %v1250_v19 }
  0x2c   : > { %1179 = vmatprep.mubr.msk.bf16.mxu0 %vm382_vm1, %v1251_v20  ;;  %1195 = vmatprep.mubr.msk.bf16.mxu1 %vm382_vm1, %v1252_v21 }
  0x33   : > { %1180 = vmatmul.mubr.msk.bf16.gmra.mrb[12].mxu0 %vm382_vm1, %v1253_v22  ;;  %1196 = vmatmul.mubr.msk.bf16.gmra.mrb[12].mxu1 %vm382_vm1, %v1254_v23 }
  0xee   : > { %v1169_v29 = vpop.f32.mrb[0].mxu0  ;;  %v1185_v30 = vpop.f32.mrb[0].mxu1 }
  0xef   : > { %v480_v31 = vadd.f32 %v1169_v29, %v1378_v28  ;;  %v544_v32 = vadd.f32 %v1185_v30, %v1378_v28  ;;  %v471_v33 = vpop.f32.mrb[1].mxu0  ;;  %v535_v34 = vpop.f32.mrb[1].mxu1 }
  0xf0   : > { %v472_v35 = vadd.f32 %v471_v33, %v1378_v28  ;;  %v536_v36 = vadd.f32 %v535_v34, %v1378_v28  ;;  %v1170_v37 = vpop.f32.mrb[2].mxu0  ;;  %v1186_v38 = vpop.f32.mrb[2].mxu1 }
  0xf1   : > { %v600_v39 = vmax.f32 %v480_v31, 0.0  ;;  %v616_v40 = vmax.f32 %v544_v32, 0.0  ;;  %v483_v41 = vadd.f32 %v1170_v37, %v1378_v28  ;;  %v547_v42 = vadd.f32 %v1186_v38, %v1378_v28  ;;  %v474_v43 = vpop.f32.mrb[3].mxu0  ;;  %v538_v44 = vpop.f32.mrb[3].mxu1 }
  0xf2   : > { %v598_v45 = vmax.f32 %v472_v35, 0.0  ;;  %v614_v46 = vmax.f32 %v536_v36, 0.0  ;;  %v475_v47 = vadd.f32 %v474_v43, %v1378_v28  ;;  %v539_v48 = vadd.f32 %v538_v44, %v1378_v28 }
  0xf3   : > { %v601_v49 = vmax.f32 %v483_v41, 0.0  ;;  %v617_v50 = vmax.f32 %v547_v42, 0.0  ;;  %v632_v53 = vmin.f32 %v600_v39, 6.0  ;;  %v648_v54 = vmin.f32 %v616_v40, 6.0 }
  0xf4   : > { %v599_v51 = vmax.f32 %v475_v47, 0.0  ;;  %v615_v52 = vmax.f32 %v539_v48, 0.0  ;;  %v630_v57 = vmin.f32 %v598_v45, 6.0  ;;  %v646_v58 = vmin.f32 %v614_v46, 6.0 }
  0xf5   : > { %v633_v55 = vmin.f32 %v601_v49, 6.0  ;;  %v649_v56 = vmin.f32 %v617_v50, 6.0 }
  0xf6   : > { %v631_v59 = vmin.f32 %v599_v51, 6.0  ;;  %v647_v60 = vmin.f32 %v615_v52, 6.0  ;;  %v1173_v61 = vpop.f32.mrb[4].mxu0  ;;  %v1189_v62 = vpop.f32.mrb[4].mxu1 }
  0xf7   : > { %v1049_v63 = vpack.c.bf16 %v633_v55, %v632_v53  ;;  %v1089_v0 = vpack.c.bf16 %v649_v56, %v648_v54  ;;  %v496_v1 = vadd.f32 %v1173_v61, %v1378_v28  ;;  %v560_v2 = vadd.f32 %v1189_v62, %v1378_v28  ;;  %v487_v3 = vpop.f32.mrb[5].mxu0  ;;  %v551_v4 = vpop.f32.mrb[5].mxu1 }
  0xf8   : > { %v1044_v5 = vpack.c.bf16 %v631_v59, %v630_v57  ;;  %v1084_v6 = vpack.c.bf16 %v647_v60, %v646_v58  ;;  %v488_v7 = vadd.f32 %v487_v3, %v1378_v28  ;;  %v552_v8 = vadd.f32 %v551_v4, %v1378_v28  ;;  %v1174_v9 = vpop.f32.mrb[6].mxu0  ;;  %v1190_v10 = vpop.f32.mrb[6].mxu1 }
  0xf9   : > { %1121 = vst [vmem:[%s1393_s8 + $0x8] sm:$0xff] %v1049_v63   ;;  %1129 = vst [vmem:[%s1393_s8 + $0x48] sm:$0xff] %v1089_v0   ;;  %v604_v11 = vmax.f32 %v496_v1, 0.0  ;;  %v620_v12 = vmax.f32 %v560_v2, 0.0  ;;  %v499_v13 = vadd.f32 %v1174_v9, %v1378_v28  ;;  %v563_v14 = vadd.f32 %v1190_v10, %v1378_v28  ;;  %v490_v15 = vpop.f32.mrb[7].mxu0  ;;  %v554_v16 = vpop.f32.mrb[7].mxu1 }
  0xfa   : > { %1045 = vst [vmem:[%s1393_s8] sm:$0xff] %v1044_v5   ;;  %1128 = vst [vmem:[%s1393_s8 + $0x40] sm:$0xff] %v1084_v6   ;;  %v602_v17 = vmax.f32 %v488_v7, 0.0  ;;  %v618_v18 = vmax.f32 %v552_v8, 0.0  ;;  %v491_v19 = vadd.f32 %v490_v15, %v1378_v28  ;;  %v555_v20 = vadd.f32 %v554_v16, %v1378_v28 }
  0xfb   : > { %v605_v21 = vmax.f32 %v499_v13, 0.0  ;;  %v621_v22 = vmax.f32 %v563_v14, 0.0  ;;  %v636_v25 = vmin.f32 %v604_v11, 6.0  ;;  %v652_v26 = vmin.f32 %v620_v12, 6.0 }
  0xfc   : > { %v603_v23 = vmax.f32 %v491_v19, 0.0  ;;  %v619_v24 = vmax.f32 %v555_v20, 0.0  ;;  %v634_v30 = vmin.f32 %v602_v17, 6.0  ;;  %v650_v31 = vmin.f32 %v618_v18, 6.0 }
  0xfd   : > { %v637_v27 = vmin.f32 %v605_v21, 6.0  ;;  %v653_v29 = vmin.f32 %v621_v22, 6.0 }
  0xfe   : > { %v635_v32 = vmin.f32 %v603_v23, 6.0  ;;  %v651_v33 = vmin.f32 %v619_v24, 6.0  ;;  %v1177_v34 = vpop.f32.mrb[8].mxu0  ;;  %v1193_v35 = vpop.f32.mrb[8].mxu1 }
  0xff   : > { %v1059_v36 = vpack.c.bf16 %v637_v27, %v636_v25  ;;  %v1099_v37 = vpack.c.bf16 %v653_v29, %v652_v26  ;;  %v512_v38 = vadd.f32 %v1177_v34, %v1378_v28  ;;  %v576_v39 = vadd.f32 %v1193_v35, %v1378_v28  ;;  %v503_v40 = vpop.f32.mrb[9].mxu0  ;;  %v567_v41 = vpop.f32.mrb[9].mxu1 }
 0x100   : > { %v1054_v42 = vpack.c.bf16 %v635_v32, %v634_v30  ;;  %v1094_v43 = vpack.c.bf16 %v651_v33, %v650_v31  ;;  %v504_v44 = vadd.f32 %v503_v40, %v1378_v28  ;;  %v568_v45 = vadd.f32 %v567_v41, %v1378_v28  ;;  %v1178_v46 = vpop.f32.mrb[10].mxu0  ;;  %v1194_v47 = vpop.f32.mrb[10].mxu1 }
 0x101   : > { %1123 = vst [vmem:[%s1393_s8 + $0x18] sm:$0xff] %v1059_v36   ;;  %1131 = vst [vmem:[%s1393_s8 + $0x58] sm:$0xff] %v1099_v37   ;;  %v608_v48 = vmax.f32 %v512_v38, 0.0  ;;  %v624_v49 = vmax.f32 %v576_v39, 0.0  ;;  %v515_v50 = vadd.f32 %v1178_v46, %v1378_v28  ;;  %v579_v51 = vadd.f32 %v1194_v47, %v1378_v28  ;;  %v506_v52 = vpop.f32.mrb[11].mxu0  ;;  %v570_v53 = vpop.f32.mrb[11].mxu1 }
 0x102   : > { %1122 = vst [vmem:[%s1393_s8 + $0x10] sm:$0xff] %v1054_v42   ;;  %1130 = vst [vmem:[%s1393_s8 + $0x50] sm:$0xff] %v1094_v43   ;;  %v606_v54 = vmax.f32 %v504_v44, 0.0  ;;  %v622_v55 = vmax.f32 %v568_v45, 0.0  ;;  %v507_v56 = vadd.f32 %v506_v52, %v1378_v28  ;;  %v571_v57 = vadd.f32 %v570_v53, %v1378_v28 }
 0x103   : > { %v609_v58 = vmax.f32 %v515_v50, 0.0  ;;  %v625_v59 = vmax.f32 %v579_v51, 0.0  ;;  %v640_v62 = vmin.f32 %v608_v48, 6.0  ;;  %v656_v63 = vmin.f32 %v624_v49, 6.0 }
 0x104   : > { %v607_v60 = vmax.f32 %v507_v56, 0.0  ;;  %v623_v61 = vmax.f32 %v571_v57, 0.0  ;;  %v638_v2 = vmin.f32 %v606_v54, 6.0  ;;  %v654_v3 = vmin.f32 %v622_v55, 6.0 }
 0x105   : > { %v641_v0 = vmin.f32 %v609_v58, 6.0  ;;  %v657_v1 = vmin.f32 %v625_v59, 6.0 }
 0x106   : > { %v639_v4 = vmin.f32 %v607_v60, 6.0  ;;  %v655_v5 = vmin.f32 %v623_v61, 6.0  ;;  %v1181_v6 = vpop.f32.mrb[12].mxu0  ;;  %v1197_v7 = vpop.f32.mrb[12].mxu1 }
 0x107   : > { %v1069_v8 = vpack.c.bf16 %v641_v0, %v640_v62  ;;  %v1109_v9 = vpack.c.bf16 %v657_v1, %v656_v63  ;;  %v528_v10 = vadd.f32 %v1181_v6, %v1378_v28  ;;  %v592_v11 = vadd.f32 %v1197_v7, %v1378_v28  ;;  %v519_v12 = vpop.f32.mrb[13].mxu0  ;;  %v583_v13 = vpop.f32.mrb[13].mxu1 }
 0x108   : > { %v1064_v14 = vpack.c.bf16 %v639_v4, %v638_v2  ;;  %v1104_v15 = vpack.c.bf16 %v655_v5, %v654_v3  ;;  %v520_v16 = vadd.f32 %v519_v12, %v1378_v28  ;;  %v584_v17 = vadd.f32 %v583_v13, %v1378_v28  ;;  %v1182_v18 = vpop.f32.mrb[14].mxu0  ;;  %v1198_v19 = vpop.f32.mrb[14].mxu1 }
 0x109   : > { %1125 = vst [vmem:[%s1393_s8 + $0x28] sm:$0xff] %v1069_v8   ;;  %1133 = vst [vmem:[%s1393_s8 + $0x68] sm:$0xff] %v1109_v9   ;;  %v612_v20 = vmax.f32 %v528_v10, 0.0  ;;  %v628_v21 = vmax.f32 %v592_v11, 0.0  ;;  %v531_v22 = vadd.f32 %v1182_v18, %v1378_v28  ;;  %v595_v23 = vadd.f32 %v1198_v19, %v1378_v28  ;;  %v522_v24 = vpop.f32.mrb[15].mxu0  ;;  %v586_v25 = vpop.f32.mrb[15].mxu1 }
 0x10a   : > { %1124 = vst [vmem:[%s1393_s8 + $0x20] sm:$0xff] %v1064_v14   ;;  %1132 = vst [vmem:[%s1393_s8 + $0x60] sm:$0xff] %v1104_v15   ;;  %v610_v26 = vmax.f32 %v520_v16, 0.0  ;;  %v626_v27 = vmax.f32 %v584_v17, 0.0  ;;  %v523_v29 = vadd.f32 %v522_v24, %v1378_v28  ;;  %v587_v30 = vadd.f32 %v586_v25, %v1378_v28 }
 0x10b   : > { %v613_v31 = vmax.f32 %v531_v22, 0.0  ;;  %v629_v32 = vmax.f32 %v595_v23, 0.0  ;;  %v644_v35 = vmin.f32 %v612_v20, 6.0  ;;  %v660_v36 = vmin.f32 %v628_v21, 6.0 }
 0x10c   : > { %v611_v33 = vmax.f32 %v523_v29, 0.0  ;;  %v627_v34 = vmax.f32 %v587_v30, 0.0  ;;  %v642_v39 = vmin.f32 %v610_v26, 6.0  ;;  %v658_v40 = vmin.f32 %v626_v27, 6.0 }
 0x10d   : > { %v645_v37 = vmin.f32 %v613_v31, 6.0  ;;  %v661_v38 = vmin.f32 %v629_v32, 6.0 }
 0x10e   : > { %v643_v41 = vmin.f32 %v611_v33, 6.0  ;;  %v659_v42 = vmin.f32 %v627_v34, 6.0 }
 0x10f   : > { %v1079_v43 = vpack.c.bf16 %v645_v37, %v644_v35  ;;  %v1119_v44 = vpack.c.bf16 %v661_v38, %v660_v36 }
 0x110   : > { %v1074_v45 = vpack.c.bf16 %v643_v41, %v642_v39  ;;  %v1114_v28 = vpack.c.bf16 %v659_v42, %v658_v40 }
 0x111   : > { %1127 = vst [vmem:[%s1393_s8 + $0x38] sm:$0xff] %v1079_v43   ;;  %1135 = vst [vmem:[%s1393_s8 + $0x78] sm:$0xff] %v1119_v44  }
 0x112   : > { %1126 = vst [vmem:[%s1393_s8 + $0x30] sm:$0xff] %v1074_v45   ;;  %1134 = vst [vmem:[%s1393_s8 + $0x70] sm:$0xff] %v1114_v28  }
 0x113 PF: > { %s13_s14 = sadd.s32 1, %s1277_s14   ;;  %s1448_s12 = smov %s1273_s13 }
 0x114   : > { %p10_p5 = scmp.ge.s32.totalorder %s13_s14, 4   ;;  %s1449_s13 = smov %s1451_s15 }
 0x116   :  { %12 = sbr.rel (!%p10_p5) target bundleno = 2 (0x2), region = 68 }

// kernel: _lambda_.23
= control target key start
LH: loop header
LB: loop body
LE: loop exit
PB: predicated region body
PF: predicated region fallthrough
CT: control target
= control target key end

     0   :  { %s1281_s12 = smov 0   ;;  %s1283_s13 = smov 0   ;;  %s1422_s0 = inlined_call_operand.vmem [shape: bf16[512,64], index: 0, kind: input, shape index: {}]   ;;  %s1423_s1 = inlined_call_operand.vmem [shape: bf16[64,128], index: 1, kind: input, shape index: {}]   ;;  %s1424_s2 = inlined_call_operand.vmem [shape: f32[2,128], index: 2, kind: input, shape index: {}]   ;;  %s1425_s3 = inlined_call_operand.vmem [shape: bf16[512,128], index: 3, kind: output, shape index: {}]  }
   0x1   :  { %s1285_s14 = smov 0  }
   0x2 LB: > { %s25_s15 = sadd.s32 1, %s1255_s13  ;;  %p923_p0 = scmp.ge.s32.totalorder %s1259_s14, 1  ;;  %s1259_s14 = sphi %s1285_s14, %s13_s14   ;;  %s1255_s13 = sphi %s1283_s13, %s1427_s13   ;;  %s1251_s12 = sphi %s1281_s12, %s1426_s12  }
   0x3   : > { %p27_p1 = scmp.ge.s32.totalorder %s25_s15, 2  ;;  %p170_p2 = scmp.lt.s32.totalorder %s1259_s14, 3 }
   0x5   : > { %s1429_s15 = smov (%p27_p1, %s25_s15), 0  ;;  %p171_p3 = pnand %p923_p0, %p170_p2 }
   0x6   : > { %v1217_v0 = vld [vmem:[%s1423_s1] sm:$0xff] (!%p171_p3)   ;;  %s924_s18 = sshll.u32 (!%p171_p3), %s1251_s12, 5  ;;  %v1218_v1 = vld [vmem:[%s1423_s1 + $0x8] sm:$0xff] (!%p171_p3)   ;;  %v1219_v2 = vld [vmem:[%s1423_s1 + $0x10] sm:$0xff] (!%p171_p3)   ;;  %vm378_vm0 = vcmask (!%p171_p3), 523264   ;;  %v270_v20 = vlaneseq (!%p171_p3) }
   0x7   : > { %174 = sbr.rel (%p171_p3) target bundleno = 271 (0x10f), region = 32  ;;  %p206_p4 = scmp.lt.s32.totalorder (!%p171_p3), %s924_s18, 63  ;;  %1145 = vmatprep.subr.bf16.mxu0 (!%p171_p3), %v1217_v0  ;;  %1185 = vmatprep.subr.bf16.mxu1 (!%p171_p3), %v1217_v0  ;;  %v1220_v3 = vld [vmem:[%s1423_s1 + $0x18] sm:$0xff] (!%p171_p3)   ;;  %v269_v23 = vld [vmem:[%s1424_s2] sm:$0x3] (!%p171_p3) }
   0x8   : > { %1146 = vmatpush3.bf16.msra.mxu0 (!%p171_p3), %v1217_v0  ;;  %1189 = vmatpush3.bf16.msra.mxu1 (!%p171_p3), %v1217_v0  ;;  %v271_v21 = vshrl.u32 (!%p171_p3), %v270_v20, 7 }
   0x9   : > { %1147 = vmatprep.subr.bf16.mxu0 (!%p171_p3), %v1218_v1  ;;  %1186 = vmatprep.subr.bf16.mxu1 (!%p171_p3), %v1218_v1 }
   0xa   : > { %v272_v22 = vsub.s32 (!%p171_p3), 1, %v271_v21 }
   0xc   : > { %1148 = vmatpush3.bf16.msra.mxu0 (!%p171_p3), %v1218_v1  ;;  %1190 = vmatpush3.bf16.msra.mxu1 (!%p171_p3), %v1218_v1  ;;  %v1356_v24 = vrot.slane (!%p171_p3), %v269_v23, %v272_v22 }
   0xd   : > { %1149 = vmatprep.subr.bf16.mxu0 (!%p171_p3), %v1219_v2  ;;  %1187 = vmatprep.subr.bf16.mxu1 (!%p171_p3), %v1219_v2 }
   0xe   : > { %s1431_s18 = smov (!%p206_p4, %s924_s18), 63 }
   0xf   : > { %s925_s23 = sshll.u32 %s1431_s18, 2 }
  0x10   : > { %s1319_s28 = scalar_lea.vmem %s1422_s0, %s925_s23  ;;  %1150 = vmatpush3.bf16.msra.mxu0 %v1219_v2  ;;  %1191 = vmatpush3.bf16.msra.mxu1 %v1219_v2  ;;  %s1371_s6 = scalar_lea.vmem %s1425_s3, %s925_s23 }
  0x11   : > { %v1221_v4 = vld [vmem:[%s1319_s28] sm:$0xff]   ;;  %1151 = vmatprep.subr.bf16.mxu0 %v1220_v3  ;;  %1188 = vmatprep.subr.bf16.mxu1 %v1220_v3  ;;  %v1223_v6 = vld [vmem:[%s1319_s28 + $0x8] sm:$0xff]   ;;  %v1225_v8 = vld [vmem:[%s1319_s28 + $0x10] sm:$0xff]  }
  0x12   : > { %v1222_v5 = vld [vmem:[%s1319_s28 + $0x40] sm:$0xff]   ;;  %1153 = vmatprep.mubr.msk.bf16.mxu0 %vm378_vm0, %v1221_v4  ;;  %v1224_v7 = vld [vmem:[%s1319_s28 + $0x48] sm:$0xff]   ;;  %v1226_v9 = vld [vmem:[%s1319_s28 + $0x50] sm:$0xff]  }
  0x13   : > { %1169 = vmatprep.mubr.msk.bf16.mxu1 %vm378_vm0, %v1222_v5  ;;  %v1227_v10 = vld [vmem:[%s1319_s28 + $0x18] sm:$0xff]   ;;  %v1229_v12 = vld [vmem:[%s1319_s28 + $0x20] sm:$0xff]   ;;  %v1231_v14 = vld [vmem:[%s1319_s28 + $0x28] sm:$0xff]  }
  0x14   : > { %1152 = vmatpush3.bf16.msra.mxu0 %v1220_v3  ;;  %1192 = vmatpush3.bf16.msra.mxu1 %v1220_v3  ;;  %v1228_v11 = vld [vmem:[%s1319_s28 + $0x58] sm:$0xff]   ;;  %v1230_v13 = vld [vmem:[%s1319_s28 + $0x60] sm:$0xff]   ;;  %v1232_v15 = vld [vmem:[%s1319_s28 + $0x68] sm:$0xff]  }
  0x15   : > { %v1233_v16 = vld [vmem:[%s1319_s28 + $0x30] sm:$0xff]   ;;  %v1235_v18 = vld [vmem:[%s1319_s28 + $0x38] sm:$0xff]  }
  0x16   : > { %v1234_v17 = vld [vmem:[%s1319_s28 + $0x70] sm:$0xff]   ;;  %v1236_v19 = vld [vmem:[%s1319_s28 + $0x78] sm:$0xff]  }
  0x17   : > { %1154 = vmatmul.mubr.msk.bf16.vlgmr.msra.gmra.mrb[0].mxu0 %vm378_vm0, %v1223_v6  ;;  %1170 = vmatmul.mubr.msk.bf16.vlgmr.msra.gmra.mrb[0].mxu1 %vm378_vm0, %v1224_v7 }
  0x18   : > { %1157 = vmatprep.mubr.msk.bf16.mxu0 %vm378_vm0, %v1225_v8  ;;  %1173 = vmatprep.mubr.msk.bf16.mxu1 %vm378_vm0, %v1226_v9 }
  0x1f   : > { %1158 = vmatmul.mubr.msk.bf16.gmra.mrb[4].mxu0 %vm378_vm0, %v1227_v10  ;;  %1174 = vmatmul.mubr.msk.bf16.gmra.mrb[4].mxu1 %vm378_vm0, %v1228_v11 }
  0x20   : > { %1161 = vmatprep.mubr.msk.bf16.mxu0 %vm378_vm0, %v1229_v12  ;;  %1177 = vmatprep.mubr.msk.bf16.mxu1 %vm378_vm0, %v1230_v13 }
  0x27   : > { %1162 = vmatmul.mubr.msk.bf16.gmra.mrb[8].mxu0 %vm378_vm0, %v1231_v14  ;;  %1178 = vmatmul.mubr.msk.bf16.gmra.mrb[8].mxu1 %vm378_vm0, %v1232_v15 }
  0x28   : > { %1165 = vmatprep.mubr.msk.bf16.mxu0 %vm378_vm0, %v1233_v16  ;;  %1181 = vmatprep.mubr.msk.bf16.mxu1 %vm378_vm0, %v1234_v17 }
  0x2f   : > { %1166 = vmatmul.mubr.msk.bf16.gmra.mrb[12].mxu0 %vm378_vm0, %v1235_v18  ;;  %1182 = vmatmul.mubr.msk.bf16.gmra.mrb[12].mxu1 %vm378_vm0, %v1236_v19 }
  0xea   : > { %v1155_v25 = vpop.f32.mrb[0].mxu0  ;;  %v1171_v26 = vpop.f32.mrb[0].mxu1 }
  0xeb   : > { %v470_v27 = vadd.f32 %v1155_v25, %v1356_v24  ;;  %v534_v28 = vadd.f32 %v1171_v26, %v1356_v24  ;;  %v461_v29 = vpop.f32.mrb[1].mxu0  ;;  %v525_v30 = vpop.f32.mrb[1].mxu1 }
  0xec   : > { %v462_v31 = vadd.f32 %v461_v29, %v1356_v24  ;;  %v526_v32 = vadd.f32 %v525_v30, %v1356_v24  ;;  %v1156_v33 = vpop.f32.mrb[2].mxu0  ;;  %v1172_v34 = vpop.f32.mrb[2].mxu1 }
  0xed   : > { %v590_v35 = vmax.f32 %v470_v27, 0.0  ;;  %v606_v36 = vmax.f32 %v534_v28, 0.0  ;;  %v473_v37 = vadd.f32 %v1156_v33, %v1356_v24  ;;  %v537_v38 = vadd.f32 %v1172_v34, %v1356_v24  ;;  %v464_v39 = vpop.f32.mrb[3].mxu0  ;;  %v528_v40 = vpop.f32.mrb[3].mxu1 }
  0xee   : > { %v588_v41 = vmax.f32 %v462_v31, 0.0  ;;  %v604_v42 = vmax.f32 %v526_v32, 0.0  ;;  %v465_v43 = vadd.f32 %v464_v39, %v1356_v24  ;;  %v529_v44 = vadd.f32 %v528_v40, %v1356_v24 }
  0xef   : > { %v591_v45 = vmax.f32 %v473_v37, 0.0  ;;  %v607_v46 = vmax.f32 %v537_v38, 0.0  ;;  %v622_v49 = vmin.f32 %v590_v35, 6.0  ;;  %v638_v50 = vmin.f32 %v606_v36, 6.0 }
  0xf0   : > { %v589_v47 = vmax.f32 %v465_v43, 0.0  ;;  %v605_v48 = vmax.f32 %v529_v44, 0.0  ;;  %v620_v53 = vmin.f32 %v588_v41, 6.0  ;;  %v636_v54 = vmin.f32 %v604_v42, 6.0 }
  0xf1   : > { %v623_v51 = vmin.f32 %v591_v45, 6.0  ;;  %v639_v52 = vmin.f32 %v607_v46, 6.0 }
  0xf2   : > { %v621_v55 = vmin.f32 %v589_v47, 6.0  ;;  %v637_v56 = vmin.f32 %v605_v48, 6.0  ;;  %v1159_v57 = vpop.f32.mrb[4].mxu0  ;;  %v1175_v58 = vpop.f32.mrb[4].mxu1 }
  0xf3   : > { %v1038_v59 = vpack.c.bf16 %v623_v51, %v622_v49  ;;  %v1078_v60 = vpack.c.bf16 %v639_v52, %v638_v50  ;;  %v486_v61 = vadd.f32 %v1159_v57, %v1356_v24  ;;  %v550_v62 = vadd.f32 %v1175_v58, %v1356_v24  ;;  %v477_v63 = vpop.f32.mrb[5].mxu0  ;;  %v541_v0 = vpop.f32.mrb[5].mxu1 }
  0xf4   : > { %v1033_v1 = vpack.c.bf16 %v621_v55, %v620_v53  ;;  %v1073_v2 = vpack.c.bf16 %v637_v56, %v636_v54  ;;  %v478_v3 = vadd.f32 %v477_v63, %v1356_v24  ;;  %v542_v4 = vadd.f32 %v541_v0, %v1356_v24  ;;  %v1160_v5 = vpop.f32.mrb[6].mxu0  ;;  %v1176_v6 = vpop.f32.mrb[6].mxu1 }
  0xf5   : > { %1110 = vst [vmem:[%s1371_s6 + $0x8] sm:$0xff] %v1038_v59   ;;  %1118 = vst [vmem:[%s1371_s6 + $0x48] sm:$0xff] %v1078_v60   ;;  %v594_v7 = vmax.f32 %v486_v61, 0.0  ;;  %v610_v8 = vmax.f32 %v550_v62, 0.0  ;;  %v489_v9 = vadd.f32 %v1160_v5, %v1356_v24  ;;  %v553_v10 = vadd.f32 %v1176_v6, %v1356_v24  ;;  %v480_v11 = vpop.f32.mrb[7].mxu0  ;;  %v544_v12 = vpop.f32.mrb[7].mxu1 }
  0xf6   : > { %1034 = vst [vmem:[%s1371_s6] sm:$0xff] %v1033_v1   ;;  %1117 = vst [vmem:[%s1371_s6 + $0x40] sm:$0xff] %v1073_v2   ;;  %v592_v13 = vmax.f32 %v478_v3, 0.0  ;;  %v608_v14 = vmax.f32 %v542_v4, 0.0  ;;  %v481_v15 = vadd.f32 %v480_v11, %v1356_v24  ;;  %v545_v16 = vadd.f32 %v544_v12, %v1356_v24 }
  0xf7   : > { %v595_v17 = vmax.f32 %v489_v9, 0.0  ;;  %v611_v18 = vmax.f32 %v553_v10, 0.0  ;;  %v626_v21 = vmin.f32 %v594_v7, 6.0  ;;  %v642_v22 = vmin.f32 %v610_v8, 6.0 }
  0xf8   : > { %v593_v19 = vmax.f32 %v481_v15, 0.0  ;;  %v609_v20 = vmax.f32 %v545_v16, 0.0  ;;  %v624_v26 = vmin.f32 %v592_v13, 6.0  ;;  %v640_v27 = vmin.f32 %v608_v14, 6.0 }
  0xf9   : > { %v627_v23 = vmin.f32 %v595_v17, 6.0  ;;  %v643_v25 = vmin.f32 %v611_v18, 6.0 }
  0xfa   : > { %v625_v28 = vmin.f32 %v593_v19, 6.0  ;;  %v641_v29 = vmin.f32 %v609_v20, 6.0  ;;  %v1163_v30 = vpop.f32.mrb[8].mxu0  ;;  %v1179_v31 = vpop.f32.mrb[8].mxu1 }
  0xfb   : > { %v1048_v32 = vpack.c.bf16 %v627_v23, %v626_v21  ;;  %v1088_v33 = vpack.c.bf16 %v643_v25, %v642_v22  ;;  %v502_v34 = vadd.f32 %v1163_v30, %v1356_v24  ;;  %v566_v35 = vadd.f32 %v1179_v31, %v1356_v24  ;;  %v493_v36 = vpop.f32.mrb[9].mxu0  ;;  %v557_v37 = vpop.f32.mrb[9].mxu1 }
  0xfc   : > { %v1043_v38 = vpack.c.bf16 %v625_v28, %v624_v26  ;;  %v1083_v39 = vpack.c.bf16 %v641_v29, %v640_v27  ;;  %v494_v40 = vadd.f32 %v493_v36, %v1356_v24  ;;  %v558_v41 = vadd.f32 %v557_v37, %v1356_v24  ;;  %v1164_v42 = vpop.f32.mrb[10].mxu0  ;;  %v1180_v43 = vpop.f32.mrb[10].mxu1 }
  0xfd   : > { %1112 = vst [vmem:[%s1371_s6 + $0x18] sm:$0xff] %v1048_v32   ;;  %1120 = vst [vmem:[%s1371_s6 + $0x58] sm:$0xff] %v1088_v33   ;;  %v598_v44 = vmax.f32 %v502_v34, 0.0  ;;  %v614_v45 = vmax.f32 %v566_v35, 0.0  ;;  %v505_v46 = vadd.f32 %v1164_v42, %v1356_v24  ;;  %v569_v47 = vadd.f32 %v1180_v43, %v1356_v24  ;;  %v496_v48 = vpop.f32.mrb[11].mxu0  ;;  %v560_v49 = vpop.f32.mrb[11].mxu1 }
  0xfe   : > { %1111 = vst [vmem:[%s1371_s6 + $0x10] sm:$0xff] %v1043_v38   ;;  %1119 = vst [vmem:[%s1371_s6 + $0x50] sm:$0xff] %v1083_v39   ;;  %v596_v50 = vmax.f32 %v494_v40, 0.0  ;;  %v612_v51 = vmax.f32 %v558_v41, 0.0  ;;  %v497_v52 = vadd.f32 %v496_v48, %v1356_v24  ;;  %v561_v53 = vadd.f32 %v560_v49, %v1356_v24 }
  0xff   : > { %v599_v54 = vmax.f32 %v505_v46, 0.0  ;;  %v615_v55 = vmax.f32 %v569_v47, 0.0  ;;  %v630_v58 = vmin.f32 %v598_v44, 6.0  ;;  %v646_v59 = vmin.f32 %v614_v45, 6.0 }
 0x100   : > { %v597_v56 = vmax.f32 %v497_v52, 0.0  ;;  %v613_v57 = vmax.f32 %v561_v53, 0.0  ;;  %v628_v62 = vmin.f32 %v596_v50, 6.0  ;;  %v644_v63 = vmin.f32 %v612_v51, 6.0 }
 0x101   : > { %v631_v60 = vmin.f32 %v599_v54, 6.0  ;;  %v647_v61 = vmin.f32 %v615_v55, 6.0 }
 0x102   : > { %v629_v0 = vmin.f32 %v597_v56, 6.0  ;;  %v645_v1 = vmin.f32 %v613_v57, 6.0  ;;  %v1167_v2 = vpop.f32.mrb[12].mxu0  ;;  %v1183_v3 = vpop.f32.mrb[12].mxu1 }
 0x103   : > { %v1058_v4 = vpack.c.bf16 %v631_v60, %v630_v58  ;;  %v1098_v5 = vpack.c.bf16 %v647_v61, %v646_v59  ;;  %v518_v6 = vadd.f32 %v1167_v2, %v1356_v24  ;;  %v582_v7 = vadd.f32 %v1183_v3, %v1356_v24  ;;  %v509_v8 = vpop.f32.mrb[13].mxu0  ;;  %v573_v9 = vpop.f32.mrb[13].mxu1 }
 0x104   : > { %v1053_v10 = vpack.c.bf16 %v629_v0, %v628_v62  ;;  %v1093_v11 = vpack.c.bf16 %v645_v1, %v644_v63  ;;  %v510_v12 = vadd.f32 %v509_v8, %v1356_v24  ;;  %v574_v13 = vadd.f32 %v573_v9, %v1356_v24  ;;  %v1168_v14 = vpop.f32.mrb[14].mxu0  ;;  %v1184_v15 = vpop.f32.mrb[14].mxu1 }
 0x105   : > { %1114 = vst [vmem:[%s1371_s6 + $0x28] sm:$0xff] %v1058_v4   ;;  %1122 = vst [vmem:[%s1371_s6 + $0x68] sm:$0xff] %v1098_v5   ;;  %v602_v16 = vmax.f32 %v518_v6, 0.0  ;;  %v618_v17 = vmax.f32 %v582_v7, 0.0  ;;  %v521_v18 = vadd.f32 %v1168_v14, %v1356_v24  ;;  %v585_v19 = vadd.f32 %v1184_v15, %v1356_v24  ;;  %v512_v20 = vpop.f32.mrb[15].mxu0  ;;  %v576_v21 = vpop.f32.mrb[15].mxu1 }
 0x106   : > { %1113 = vst [vmem:[%s1371_s6 + $0x20] sm:$0xff] %v1053_v10   ;;  %1121 = vst [vmem:[%s1371_s6 + $0x60] sm:$0xff] %v1093_v11   ;;  %v600_v22 = vmax.f32 %v510_v12, 0.0  ;;  %v616_v23 = vmax.f32 %v574_v13, 0.0  ;;  %v513_v25 = vadd.f32 %v512_v20, %v1356_v24  ;;  %v577_v26 = vadd.f32 %v576_v21, %v1356_v24 }
 0x107   : > { %v603_v27 = vmax.f32 %v521_v18, 0.0  ;;  %v619_v28 = vmax.f32 %v585_v19, 0.0  ;;  %v634_v31 = vmin.f32 %v602_v16, 6.0  ;;  %v650_v32 = vmin.f32 %v618_v17, 6.0 }
 0x108   : > { %v601_v29 = vmax.f32 %v513_v25, 0.0  ;;  %v617_v30 = vmax.f32 %v577_v26, 0.0  ;;  %v632_v35 = vmin.f32 %v600_v22, 6.0  ;;  %v648_v36 = vmin.f32 %v616_v23, 6.0 }
 0x109   : > { %v635_v33 = vmin.f32 %v603_v27, 6.0  ;;  %v651_v34 = vmin.f32 %v619_v28, 6.0 }
 0x10a   : > { %v633_v37 = vmin.f32 %v601_v29, 6.0  ;;  %v649_v38 = vmin.f32 %v617_v30, 6.0 }
 0x10b   : > { %v1068_v39 = vpack.c.bf16 %v635_v33, %v634_v31  ;;  %v1108_v40 = vpack.c.bf16 %v651_v34, %v650_v32 }
 0x10c   : > { %v1063_v41 = vpack.c.bf16 %v633_v37, %v632_v35  ;;  %v1103_v24 = vpack.c.bf16 %v649_v38, %v648_v36 }
 0x10d   : > { %1116 = vst [vmem:[%s1371_s6 + $0x38] sm:$0xff] %v1068_v39   ;;  %1124 = vst [vmem:[%s1371_s6 + $0x78] sm:$0xff] %v1108_v40  }
 0x10e   : > { %1115 = vst [vmem:[%s1371_s6 + $0x30] sm:$0xff] %v1063_v41   ;;  %1123 = vst [vmem:[%s1371_s6 + $0x70] sm:$0xff] %v1103_v24  }
 0x10f PF: > { %s13_s14 = sadd.s32 1, %s1259_s14   ;;  %s1426_s12 = smov %s1255_s13 }
 0x110   : > { %p10_p5 = scmp.ge.s32.totalorder %s13_s14, 4   ;;  %s1427_s13 = smov %s1429_s15 }
 0x112   :  { %12 = sbr.rel (!%p10_p5) target bundleno = 2 (0x2), region = 68 }

// kernel: _lambda_.24
= control target key start
LH: loop header
LB: loop body
LE: loop exit
PB: predicated region body
PF: predicated region fallthrough
CT: control target
= control target key end

     0   :  { %s2004_s12 = smov 0   ;;  %s2006_s13 = smov 0   ;;  %s2216_s0 = inlined_call_operand.vmem [shape: bf16[2048,16], index: 0, kind: input, shape index: {}]   ;;  %s2217_s1 = inlined_call_operand.vmem [shape: bf16[16,128], index: 1, kind: input, shape index: {}]   ;;  %s2218_s2 = inlined_call_operand.vmem [shape: f32[2,128], index: 2, kind: input, shape index: {}]   ;;  %s2219_s3 = inlined_call_operand.vmem [shape: bf16[2048,128], index: 3, kind: output, shape index: {}]  }
   0x1   :  { %s2008_s14 = smov 0  }
   0x2 LB: > { %s25_s15 = sadd.s32 1, %s1978_s13  ;;  %p1411_p0 = scmp.ge.s32.totalorder %s1982_s14, 1  ;;  %s1982_s14 = sphi %s2008_s14, %s13_s14   ;;  %s1978_s13 = sphi %s2006_s13, %s2221_s13   ;;  %s1974_s12 = sphi %s2004_s12, %s2220_s12  }
   0x3   : > { %p27_p1 = scmp.ge.s32.totalorder %s25_s15, 4  ;;  %p170_p2 = scmp.lt.s32.totalorder %s1982_s14, 5 }
   0x5   : > { %s2223_s15 = smov (%p27_p1, %s25_s15), 0  ;;  %p171_p3 = pnand %p1411_p0, %p170_p2 }
   0x6   : > { %v1927_v0 = vld [vmem:[%s2217_s1] sm:$0xff] (!%p171_p3)   ;;  %s1412_s18 = sshll.u32 (!%p171_p3), %s1974_s12, 6  ;;  %vm466_vm0 = vcmask (!%p171_p3), 130048   ;;  %v296_v33 = vlaneseq (!%p171_p3) }
   0x7   : > { %174 = sbr.rel (%p171_p3) target bundleno = 300 (0x12c), region = 32  ;;  %p206_p4 = scmp.lt.s32.totalorder (!%p171_p3), %s1412_s18, 255  ;;  %1835 = vmatprep.subr.bf16.mxu0 (!%p171_p3), %v1927_v0  ;;  %1901 = vmatprep.subr.bf16.mxu1 (!%p171_p3), %v1927_v0  ;;  %v295_v36 = vld [vmem:[%s2218_s2] sm:$0x3] (!%p171_p3) }
   0x8   : > { %1836 = vmatpush3.bf16.msra.mxu0 (!%p171_p3), %v1927_v0  ;;  %1902 = vmatpush3.bf16.msra.mxu1 (!%p171_p3), %v1927_v0  ;;  %v297_v34 = vshrl.u32 (!%p171_p3), %v296_v33, 7 }
   0xa   : > { %v298_v35 = vsub.s32 (!%p171_p3), 1, %v297_v34 }
   0xc   : > { %v2102_v37 = vrot.slane (!%p171_p3), %v295_v36, %v298_v35 }
   0xe   : > { %s2225_s18 = smov (!%p206_p4, %s1412_s18), 255 }
   0xf   : > { %s1413_s19 = sshll.u32 %s2225_s18, 2 }
  0x10   : > { %s2033_s22 = scalar_lea.vmem %s2216_s0, %s1413_s19  ;;  %s2117_s27 = scalar_lea.vmem %s2219_s3, %s1413_s19 }
  0x11   : > { %v1928_v1 = vld [vmem:[%s2033_s22] sm:$0xff]   ;;  %v1930_v3 = vld [vmem:[%s2033_s22 + $0x8] sm:$0xff]   ;;  %v1932_v5 = vld [vmem:[%s2033_s22 + $0x10] sm:$0xff]  }
  0x12   : > { %v1929_v2 = vld [vmem:[%s2033_s22 + $0x80] sm:$0xff]   ;;  %1837 = vmatprep.mubr.msk.bf16.mxu0 %vm466_vm0, %v1928_v1  ;;  %v1931_v4 = vld [vmem:[%s2033_s22 + $0x88] sm:$0xff]   ;;  %v1933_v6 = vld [vmem:[%s2033_s22 + $0x90] sm:$0xff]  }
  0x13   : > { %1869 = vmatprep.mubr.msk.bf16.mxu1 %vm466_vm0, %v1929_v2  ;;  %1838 = vmatmul.mubr.msk.bf16.vlgmr.msra.gmra.mrb[0].mxu0 %vm466_vm0, %v1930_v3  ;;  %v1934_v7 = vld [vmem:[%s2033_s22 + $0x18] sm:$0xff]   ;;  %v1936_v9 = vld [vmem:[%s2033_s22 + $0x20] sm:$0xff]   ;;  %v1938_v11 = vld [vmem:[%s2033_s22 + $0x28] sm:$0xff]  }
  0x14   : > { %1870 = vmatmul.mubr.msk.bf16.vlgmr.msra.gmra.mrb[0].mxu1 %vm466_vm0, %v1931_v4  ;;  %1841 = vmatprep.mubr.msk.bf16.mxu0 %vm466_vm0, %v1932_v5  ;;  %v1935_v8 = vld [vmem:[%s2033_s22 + $0x98] sm:$0xff]   ;;  %v1937_v10 = vld [vmem:[%s2033_s22 + $0xa0] sm:$0xff]   ;;  %v1939_v12 = vld [vmem:[%s2033_s22 + $0xa8] sm:$0xff]  }
  0x15   : > { %1873 = vmatprep.mubr.msk.bf16.mxu1 %vm466_vm0, %v1933_v6  ;;  %v1940_v13 = vld [vmem:[%s2033_s22 + $0x30] sm:$0xff]   ;;  %v1942_v15 = vld [vmem:[%s2033_s22 + $0x38] sm:$0xff]   ;;  %v1944_v17 = vld [vmem:[%s2033_s22 + $0x40] sm:$0xff]  }
  0x16   : > { %v1941_v14 = vld [vmem:[%s2033_s22 + $0xb0] sm:$0xff]   ;;  %v1943_v16 = vld [vmem:[%s2033_s22 + $0xb8] sm:$0xff]   ;;  %v1945_v18 = vld [vmem:[%s2033_s22 + $0xc0] sm:$0xff]  }
  0x17   : > { %v1946_v19 = vld [vmem:[%s2033_s22 + $0x48] sm:$0xff]   ;;  %v1948_v21 = vld [vmem:[%s2033_s22 + $0x50] sm:$0xff]   ;;  %v1950_v23 = vld [vmem:[%s2033_s22 + $0x58] sm:$0xff]  }
  0x18   : > { %v1947_v20 = vld [vmem:[%s2033_s22 + $0xc8] sm:$0xff]   ;;  %v1949_v22 = vld [vmem:[%s2033_s22 + $0xd0] sm:$0xff]   ;;  %v1951_v24 = vld [vmem:[%s2033_s22 + $0xd8] sm:$0xff]  }
  0x19   : > { %v1952_v25 = vld [vmem:[%s2033_s22 + $0x60] sm:$0xff]   ;;  %v1954_v27 = vld [vmem:[%s2033_s22 + $0x68] sm:$0xff]   ;;  %v1956_v29 = vld [vmem:[%s2033_s22 + $0x70] sm:$0xff]  }
  0x1a   : > { %v1953_v26 = vld [vmem:[%s2033_s22 + $0xe0] sm:$0xff]   ;;  %v1955_v28 = vld [vmem:[%s2033_s22 + $0xe8] sm:$0xff]   ;;  %v1957_v30 = vld [vmem:[%s2033_s22 + $0xf0] sm:$0xff]  }
  0x1b   : > { %1842 = vmatmul.mubr.msk.bf16.gmra.mrb[4].mxu0 %vm466_vm0, %v1934_v7  ;;  %v1958_v31 = vld [vmem:[%s2033_s22 + $0x78] sm:$0xff]  }
  0x1c   : > { %1874 = vmatmul.mubr.msk.bf16.gmra.mrb[4].mxu1 %vm466_vm0, %v1935_v8  ;;  %1845 = vmatprep.mubr.msk.bf16.mxu0 %vm466_vm0, %v1936_v9  ;;  %v1959_v32 = vld [vmem:[%s2033_s22 + $0xf8] sm:$0xff]  }
  0x1d   : > { %1877 = vmatprep.mubr.msk.bf16.mxu1 %vm466_vm0, %v1937_v10 }
  0x23   : > { %1846 = vmatmul.mubr.msk.bf16.gmra.mrb[8].mxu0 %vm466_vm0, %v1938_v11 }
  0x24   : > { %1878 = vmatmul.mubr.msk.bf16.gmra.mrb[8].mxu1 %vm466_vm0, %v1939_v12  ;;  %1849 = vmatprep.mubr.msk.bf16.mxu0 %vm466_vm0, %v1940_v13 }
  0x25   : > { %1881 = vmatprep.mubr.msk.bf16.mxu1 %vm466_vm0, %v1941_v14 }
  0x2b   : > { %1850 = vmatmul.mubr.msk.bf16.gmra.mrb[12].mxu0 %vm466_vm0, %v1942_v15 }
  0x2c   : > { %1882 = vmatmul.mubr.msk.bf16.gmra.mrb[12].mxu1 %vm466_vm0, %v1943_v16  ;;  %1853 = vmatprep.mubr.msk.bf16.mxu0 %vm466_vm0, %v1944_v17 }
  0x2d   : > { %1885 = vmatprep.mubr.msk.bf16.mxu1 %vm466_vm0, %v1945_v18 }
  0x33   : > { %1854 = vmatmul.mubr.msk.bf16.gmra.mrb[16].mxu0 %vm466_vm0, %v1946_v19 }
  0x34   : > { %1886 = vmatmul.mubr.msk.bf16.gmra.mrb[16].mxu1 %vm466_vm0, %v1947_v20  ;;  %1857 = vmatprep.mubr.msk.bf16.mxu0 %vm466_vm0, %v1948_v21 }
  0x35   : > { %1889 = vmatprep.mubr.msk.bf16.mxu1 %vm466_vm0, %v1949_v22 }
  0x3b   : > { %1858 = vmatmul.mubr.msk.bf16.gmra.mrb[20].mxu0 %vm466_vm0, %v1950_v23 }
  0x3c   : > { %1890 = vmatmul.mubr.msk.bf16.gmra.mrb[20].mxu1 %vm466_vm0, %v1951_v24  ;;  %1861 = vmatprep.mubr.msk.bf16.mxu0 %vm466_vm0, %v1952_v25 }
  0x3d   : > { %1893 = vmatprep.mubr.msk.bf16.mxu1 %vm466_vm0, %v1953_v26 }
  0x43   : > { %1862 = vmatmul.mubr.msk.bf16.gmra.mrb[24].mxu0 %vm466_vm0, %v1954_v27 }
  0x44   : > { %1894 = vmatmul.mubr.msk.bf16.gmra.mrb[24].mxu1 %vm466_vm0, %v1955_v28  ;;  %1865 = vmatprep.mubr.msk.bf16.mxu0 %vm466_vm0, %v1956_v29 }
  0x45   : > { %1897 = vmatprep.mubr.msk.bf16.mxu1 %vm466_vm0, %v1957_v30 }
  0x4b   : > { %1866 = vmatmul.mubr.msk.bf16.gmra.mrb[28].mxu0 %vm466_vm0, %v1958_v31 }
  0x4c   : > { %1898 = vmatmul.mubr.msk.bf16.gmra.mrb[28].mxu1 %vm466_vm0, %v1959_v32 }
  0xe6   : > { %v1839_v38 = vpop.f32.mrb[0].mxu0 }
  0xe7   : > { %v606_v39 = vadd.f32 %v1839_v38, %v2102_v37  ;;  %v1871_v40 = vpop.f32.mrb[0].mxu1  ;;  %v597_v41 = vpop.f32.mrb[1].mxu0 }
  0xe8   : > { %v734_v42 = vadd.f32 %v1871_v40, %v2102_v37  ;;  %v598_v43 = vadd.f32 %v597_v41, %v2102_v37  ;;  %v725_v44 = vpop.f32.mrb[1].mxu1  ;;  %v1840_v45 = vpop.f32.mrb[2].mxu0 }
  0xe9   : > { %v854_v46 = vmax.f32 %v606_v39, 0.0  ;;  %v726_v47 = vadd.f32 %v725_v44, %v2102_v37  ;;  %v609_v48 = vadd.f32 %v1840_v45, %v2102_v37  ;;  %v1872_v49 = vpop.f32.mrb[2].mxu1  ;;  %v600_v50 = vpop.f32.mrb[3].mxu0 }
  0xea   : > { %v886_v51 = vmax.f32 %v734_v42, 0.0  ;;  %v852_v52 = vmax.f32 %v598_v43, 0.0  ;;  %v737_v53 = vadd.f32 %v1872_v49, %v2102_v37  ;;  %v601_v54 = vadd.f32 %v600_v50, %v2102_v37  ;;  %v728_v55 = vpop.f32.mrb[3].mxu1 }
  0xeb   : > { %v884_v56 = vmax.f32 %v726_v47, 0.0  ;;  %v855_v57 = vmax.f32 %v609_v48, 0.0  ;;  %v729_v58 = vadd.f32 %v728_v55, %v2102_v37  ;;  %v918_v61 = vmin.f32 %v854_v46, 6.0 }
  0xec   : > { %v887_v59 = vmax.f32 %v737_v53, 0.0  ;;  %v853_v60 = vmax.f32 %v601_v54, 0.0  ;;  %v950_v0 = vmin.f32 %v886_v51, 6.0  ;;  %v916_v1 = vmin.f32 %v852_v52, 6.0 }
  0xed   : > { %v919_v62 = vmin.f32 %v855_v57, 6.0  ;;  %v885_v63 = vmax.f32 %v729_v58, 0.0  ;;  %v948_v5 = vmin.f32 %v884_v56, 6.0 }
  0xee   : > { %v951_v2 = vmin.f32 %v887_v59, 6.0  ;;  %v917_v3 = vmin.f32 %v853_v60, 6.0  ;;  %v1843_v4 = vpop.f32.mrb[4].mxu0 }
  0xef   : > { %v1619_v6 = vpack.c.bf16 %v919_v62, %v918_v61  ;;  %v949_v7 = vmin.f32 %v885_v63, 6.0  ;;  %v622_v8 = vadd.f32 %v1843_v4, %v2102_v37  ;;  %v1875_v9 = vpop.f32.mrb[4].mxu1  ;;  %v613_v10 = vpop.f32.mrb[5].mxu0 }
  0xf0   : > { %v1699_v11 = vpack.c.bf16 %v951_v2, %v950_v0  ;;  %v1614_v12 = vpack.c.bf16 %v917_v3, %v916_v1  ;;  %v750_v13 = vadd.f32 %v1875_v9, %v2102_v37  ;;  %v614_v14 = vadd.f32 %v613_v10, %v2102_v37  ;;  %v741_v15 = vpop.f32.mrb[5].mxu1  ;;  %v1844_v16 = vpop.f32.mrb[6].mxu0 }
  0xf1   : > { %1771 = vst [vmem:[%s2117_s27 + $0x8] sm:$0xff] %v1619_v6   ;;  %v1694_v17 = vpack.c.bf16 %v949_v7, %v948_v5  ;;  %v858_v18 = vmax.f32 %v622_v8, 0.0  ;;  %v742_v19 = vadd.f32 %v741_v15, %v2102_v37  ;;  %v625_v20 = vadd.f32 %v1844_v16, %v2102_v37  ;;  %v1876_v21 = vpop.f32.mrb[6].mxu1  ;;  %v616_v22 = vpop.f32.mrb[7].mxu0 }
  0xf2   : > { %1787 = vst [vmem:[%s2117_s27 + $0x88] sm:$0xff] %v1699_v11   ;;  %1615 = vst [vmem:[%s2117_s27] sm:$0xff] %v1614_v12   ;;  %v890_v23 = vmax.f32 %v750_v13, 0.0  ;;  %v856_v24 = vmax.f32 %v614_v14, 0.0  ;;  %v753_v25 = vadd.f32 %v1876_v21, %v2102_v37  ;;  %v617_v26 = vadd.f32 %v616_v22, %v2102_v37  ;;  %v744_v27 = vpop.f32.mrb[7].mxu1 }
  0xf3   : > { %1786 = vst [vmem:[%s2117_s27 + $0x80] sm:$0xff] %v1694_v17   ;;  %v888_v28 = vmax.f32 %v742_v19, 0.0  ;;  %v859_v29 = vmax.f32 %v625_v20, 0.0  ;;  %v745_v30 = vadd.f32 %v744_v27, %v2102_v37  ;;  %v922_v33 = vmin.f32 %v858_v18, 6.0 }
  0xf4   : > { %v891_v31 = vmax.f32 %v753_v25, 0.0  ;;  %v857_v32 = vmax.f32 %v617_v26, 0.0  ;;  %v954_v36 = vmin.f32 %v890_v23, 6.0  ;;  %v920_v38 = vmin.f32 %v856_v24, 6.0 }
  0xf5   : > { %v923_v34 = vmin.f32 %v859_v29, 6.0  ;;  %v889_v35 = vmax.f32 %v745_v30, 0.0  ;;  %v952_v42 = vmin.f32 %v888_v28, 6.0 }
  0xf6   : > { %v955_v39 = vmin.f32 %v891_v31, 6.0  ;;  %v921_v40 = vmin.f32 %v857_v32, 6.0  ;;  %v1847_v41 = vpop.f32.mrb[8].mxu0 }
  0xf7   : > { %v1629_v43 = vpack.c.bf16 %v923_v34, %v922_v33  ;;  %v953_v44 = vmin.f32 %v889_v35, 6.0  ;;  %v638_v45 = vadd.f32 %v1847_v41, %v2102_v37  ;;  %v1879_v46 = vpop.f32.mrb[8].mxu1  ;;  %v629_v47 = vpop.f32.mrb[9].mxu0 }
  0xf8   : > { %v1709_v48 = vpack.c.bf16 %v955_v39, %v954_v36  ;;  %v1624_v49 = vpack.c.bf16 %v921_v40, %v920_v38  ;;  %v766_v50 = vadd.f32 %v1879_v46, %v2102_v37  ;;  %v630_v51 = vadd.f32 %v629_v47, %v2102_v37  ;;  %v757_v52 = vpop.f32.mrb[9].mxu1  ;;  %v1848_v53 = vpop.f32.mrb[10].mxu0 }
  0xf9   : > { %1773 = vst [vmem:[%s2117_s27 + $0x18] sm:$0xff] %v1629_v43   ;;  %v1704_v54 = vpack.c.bf16 %v953_v44, %v952_v42  ;;  %v862_v55 = vmax.f32 %v638_v45, 0.0  ;;  %v758_v56 = vadd.f32 %v757_v52, %v2102_v37  ;;  %v641_v57 = vadd.f32 %v1848_v53, %v2102_v37  ;;  %v1880_v58 = vpop.f32.mrb[10].mxu1  ;;  %v632_v59 = vpop.f32.mrb[11].mxu0 }
  0xfa   : > { %1789 = vst [vmem:[%s2117_s27 + $0x98] sm:$0xff] %v1709_v48   ;;  %1772 = vst [vmem:[%s2117_s27 + $0x10] sm:$0xff] %v1624_v49   ;;  %v894_v60 = vmax.f32 %v766_v50, 0.0  ;;  %v860_v61 = vmax.f32 %v630_v51, 0.0  ;;  %v769_v62 = vadd.f32 %v1880_v58, %v2102_v37  ;;  %v633_v63 = vadd.f32 %v632_v59, %v2102_v37  ;;  %v760_v0 = vpop.f32.mrb[11].mxu1 }
  0xfb   : > { %1788 = vst [vmem:[%s2117_s27 + $0x90] sm:$0xff] %v1704_v54   ;;  %v892_v1 = vmax.f32 %v758_v56, 0.0  ;;  %v863_v2 = vmax.f32 %v641_v57, 0.0  ;;  %v761_v3 = vadd.f32 %v760_v0, %v2102_v37  ;;  %v926_v6 = vmin.f32 %v862_v55, 6.0 }
  0xfc   : > { %v895_v4 = vmax.f32 %v769_v62, 0.0  ;;  %v861_v5 = vmax.f32 %v633_v63, 0.0  ;;  %v958_v9 = vmin.f32 %v894_v60, 6.0  ;;  %v924_v10 = vmin.f32 %v860_v61, 6.0 }
  0xfd   : > { %v927_v7 = vmin.f32 %v863_v2, 6.0  ;;  %v893_v8 = vmax.f32 %v761_v3, 0.0  ;;  %v956_v14 = vmin.f32 %v892_v1, 6.0 }
  0xfe   : > { %v959_v11 = vmin.f32 %v895_v4, 6.0  ;;  %v925_v12 = vmin.f32 %v861_v5, 6.0  ;;  %v1851_v13 = vpop.f32.mrb[12].mxu0 }
  0xff   : > { %v1639_v15 = vpack.c.bf16 %v927_v7, %v926_v6  ;;  %v957_v16 = vmin.f32 %v893_v8, 6.0  ;;  %v654_v17 = vadd.f32 %v1851_v13, %v2102_v37  ;;  %v1883_v18 = vpop.f32.mrb[12].mxu1  ;;  %v645_v19 = vpop.f32.mrb[13].mxu0 }
 0x100   : > { %v1719_v20 = vpack.c.bf16 %v959_v11, %v958_v9  ;;  %v1634_v21 = vpack.c.bf16 %v925_v12, %v924_v10  ;;  %v782_v22 = vadd.f32 %v1883_v18, %v2102_v37  ;;  %v646_v23 = vadd.f32 %v645_v19, %v2102_v37  ;;  %v773_v24 = vpop.f32.mrb[13].mxu1  ;;  %v1852_v25 = vpop.f32.mrb[14].mxu0 }
 0x101   : > { %1775 = vst [vmem:[%s2117_s27 + $0x28] sm:$0xff] %v1639_v15   ;;  %v1714_v26 = vpack.c.bf16 %v957_v16, %v956_v14  ;;  %v866_v27 = vmax.f32 %v654_v17, 0.0  ;;  %v774_v28 = vadd.f32 %v773_v24, %v2102_v37  ;;  %v657_v29 = vadd.f32 %v1852_v25, %v2102_v37  ;;  %v1884_v30 = vpop.f32.mrb[14].mxu1  ;;  %v648_v31 = vpop.f32.mrb[15].mxu0 }
 0x102   : > { %1791 = vst [vmem:[%s2117_s27 + $0xa8] sm:$0xff] %v1719_v20   ;;  %1774 = vst [vmem:[%s2117_s27 + $0x20] sm:$0xff] %v1634_v21   ;;  %v898_v32 = vmax.f32 %v782_v22, 0.0  ;;  %v864_v33 = vmax.f32 %v646_v23, 0.0  ;;  %v785_v34 = vadd.f32 %v1884_v30, %v2102_v37  ;;  %v649_v35 = vadd.f32 %v648_v31, %v2102_v37  ;;  %v776_v36 = vpop.f32.mrb[15].mxu1 }
 0x103   : > { %1790 = vst [vmem:[%s2117_s27 + $0xa0] sm:$0xff] %v1714_v26   ;;  %v896_v38 = vmax.f32 %v774_v28, 0.0  ;;  %v867_v39 = vmax.f32 %v657_v29, 0.0  ;;  %v777_v40 = vadd.f32 %v776_v36, %v2102_v37  ;;  %v930_v43 = vmin.f32 %v866_v27, 6.0 }
 0x104   : > { %v899_v41 = vmax.f32 %v785_v34, 0.0  ;;  %v865_v42 = vmax.f32 %v649_v35, 0.0  ;;  %v962_v46 = vmin.f32 %v898_v32, 6.0  ;;  %v928_v47 = vmin.f32 %v864_v33, 6.0 }
 0x105   : > { %v931_v44 = vmin.f32 %v867_v39, 6.0  ;;  %v897_v45 = vmax.f32 %v777_v40, 0.0  ;;  %v960_v51 = vmin.f32 %v896_v38, 6.0 }
 0x106   : > { %v963_v48 = vmin.f32 %v899_v41, 6.0  ;;  %v929_v49 = vmin.f32 %v865_v42, 6.0  ;;  %v1855_v50 = vpop.f32.mrb[16].mxu0 }
 0x107   : > { %v1649_v52 = vpack.c.bf16 %v931_v44, %v930_v43  ;;  %v961_v53 = vmin.f32 %v897_v45, 6.0  ;;  %v670_v54 = vadd.f32 %v1855_v50, %v2102_v37  ;;  %v1887_v55 = vpop.f32.mrb[16].mxu1  ;;  %v661_v56 = vpop.f32.mrb[17].mxu0 }
 0x108   : > { %v1729_v57 = vpack.c.bf16 %v963_v48, %v962_v46  ;;  %v1644_v58 = vpack.c.bf16 %v929_v49, %v928_v47  ;;  %v798_v59 = vadd.f32 %v1887_v55, %v2102_v37  ;;  %v662_v60 = vadd.f32 %v661_v56, %v2102_v37  ;;  %v789_v61 = vpop.f32.mrb[17].mxu1  ;;  %v1856_v62 = vpop.f32.mrb[18].mxu0 }
 0x109   : > { %1777 = vst [vmem:[%s2117_s27 + $0x38] sm:$0xff] %v1649_v52   ;;  %v1724_v63 = vpack.c.bf16 %v961_v53, %v960_v51  ;;  %v870_v0 = vmax.f32 %v670_v54, 0.0  ;;  %v790_v1 = vadd.f32 %v789_v61, %v2102_v37  ;;  %v673_v2 = vadd.f32 %v1856_v62, %v2102_v37  ;;  %v1888_v3 = vpop.f32.mrb[18].mxu1  ;;  %v664_v4 = vpop.f32.mrb[19].mxu0 }
 0x10a   : > { %1793 = vst [vmem:[%s2117_s27 + $0xb8] sm:$0xff] %v1729_v57   ;;  %1776 = vst [vmem:[%s2117_s27 + $0x30] sm:$0xff] %v1644_v58   ;;  %v902_v5 = vmax.f32 %v798_v59, 0.0  ;;  %v868_v6 = vmax.f32 %v662_v60, 0.0  ;;  %v801_v7 = vadd.f32 %v1888_v3, %v2102_v37  ;;  %v665_v8 = vadd.f32 %v664_v4, %v2102_v37  ;;  %v792_v9 = vpop.f32.mrb[19].mxu1 }
 0x10b   : > { %1792 = vst [vmem:[%s2117_s27 + $0xb0] sm:$0xff] %v1724_v63   ;;  %v900_v10 = vmax.f32 %v790_v1, 0.0  ;;  %v871_v11 = vmax.f32 %v673_v2, 0.0  ;;  %v793_v12 = vadd.f32 %v792_v9, %v2102_v37  ;;  %v934_v15 = vmin.f32 %v870_v0, 6.0 }
 0x10c   : > { %v903_v13 = vmax.f32 %v801_v7, 0.0  ;;  %v869_v14 = vmax.f32 %v665_v8, 0.0  ;;  %v966_v18 = vmin.f32 %v902_v5, 6.0  ;;  %v932_v19 = vmin.f32 %v868_v6, 6.0 }
 0x10d   : > { %v935_v16 = vmin.f32 %v871_v11, 6.0  ;;  %v901_v17 = vmax.f32 %v793_v12, 0.0  ;;  %v964_v23 = vmin.f32 %v900_v10, 6.0 }
 0x10e   : > { %v967_v20 = vmin.f32 %v903_v13, 6.0  ;;  %v933_v21 = vmin.f32 %v869_v14, 6.0  ;;  %v1859_v22 = vpop.f32.mrb[20].mxu0 }
 0x10f   : > { %v1659_v24 = vpack.c.bf16 %v935_v16, %v934_v15  ;;  %v965_v25 = vmin.f32 %v901_v17, 6.0  ;;  %v686_v26 = vadd.f32 %v1859_v22, %v2102_v37  ;;  %v1891_v27 = vpop.f32.mrb[20].mxu1  ;;  %v677_v28 = vpop.f32.mrb[21].mxu0 }
 0x110   : > { %v1739_v29 = vpack.c.bf16 %v967_v20, %v966_v18  ;;  %v1654_v30 = vpack.c.bf16 %v933_v21, %v932_v19  ;;  %v814_v31 = vadd.f32 %v1891_v27, %v2102_v37  ;;  %v678_v32 = vadd.f32 %v677_v28, %v2102_v37  ;;  %v805_v33 = vpop.f32.mrb[21].mxu1  ;;  %v1860_v34 = vpop.f32.mrb[22].mxu0 }
 0x111   : > { %1779 = vst [vmem:[%s2117_s27 + $0x48] sm:$0xff] %v1659_v24   ;;  %v1734_v35 = vpack.c.bf16 %v965_v25, %v964_v23  ;;  %v874_v36 = vmax.f32 %v686_v26, 0.0  ;;  %v806_v38 = vadd.f32 %v805_v33, %v2102_v37  ;;  %v689_v39 = vadd.f32 %v1860_v34, %v2102_v37  ;;  %v1892_v40 = vpop.f32.mrb[22].mxu1  ;;  %v680_v41 = vpop.f32.mrb[23].mxu0 }
 0x112   : > { %1795 = vst [vmem:[%s2117_s27 + $0xc8] sm:$0xff] %v1739_v29   ;;  %1778 = vst [vmem:[%s2117_s27 + $0x40] sm:$0xff] %v1654_v30   ;;  %v906_v42 = vmax.f32 %v814_v31, 0.0  ;;  %v872_v43 = vmax.f32 %v678_v32, 0.0  ;;  %v817_v44 = vadd.f32 %v1892_v40, %v2102_v37  ;;  %v681_v45 = vadd.f32 %v680_v41, %v2102_v37  ;;  %v808_v46 = vpop.f32.mrb[23].mxu1 }
 0x113   : > { %1794 = vst [vmem:[%s2117_s27 + $0xc0] sm:$0xff] %v1734_v35   ;;  %v904_v47 = vmax.f32 %v806_v38, 0.0  ;;  %v875_v48 = vmax.f32 %v689_v39, 0.0  ;;  %v809_v49 = vadd.f32 %v808_v46, %v2102_v37  ;;  %v938_v52 = vmin.f32 %v874_v36, 6.0 }
 0x114   : > { %v907_v50 = vmax.f32 %v817_v44, 0.0  ;;  %v873_v51 = vmax.f32 %v681_v45, 0.0  ;;  %v970_v55 = vmin.f32 %v906_v42, 6.0  ;;  %v936_v56 = vmin.f32 %v872_v43, 6.0 }
 0x115   : > { %v939_v53 = vmin.f32 %v875_v48, 6.0  ;;  %v905_v54 = vmax.f32 %v809_v49, 0.0  ;;  %v968_v60 = vmin.f32 %v904_v47, 6.0 }
 0x116   : > { %v971_v57 = vmin.f32 %v907_v50, 6.0  ;;  %v937_v58 = vmin.f32 %v873_v51, 6.0  ;;  %v1863_v59 = vpop.f32.mrb[24].mxu0 }
 0x117   : > { %v1669_v61 = vpack.c.bf16 %v939_v53, %v938_v52  ;;  %v969_v62 = vmin.f32 %v905_v54, 6.0  ;;  %v702_v63 = vadd.f32 %v1863_v59, %v2102_v37  ;;  %v1895_v0 = vpop.f32.mrb[24].mxu1  ;;  %v693_v1 = vpop.f32.mrb[25].mxu0 }
 0x118   : > { %v1749_v2 = vpack.c.bf16 %v971_v57, %v970_v55  ;;  %v1664_v3 = vpack.c.bf16 %v937_v58, %v936_v56  ;;  %v830_v4 = vadd.f32 %v1895_v0, %v2102_v37  ;;  %v694_v5 = vadd.f32 %v693_v1, %v2102_v37  ;;  %v821_v6 = vpop.f32.mrb[25].mxu1  ;;  %v1864_v7 = vpop.f32.mrb[26].mxu0 }
 0x119   : > { %1781 = vst [vmem:[%s2117_s27 + $0x58] sm:$0xff] %v1669_v61   ;;  %v1744_v8 = vpack.c.bf16 %v969_v62, %v968_v60  ;;  %v878_v9 = vmax.f32 %v702_v63, 0.0  ;;  %v822_v10 = vadd.f32 %v821_v6, %v2102_v37  ;;  %v705_v11 = vadd.f32 %v1864_v7, %v2102_v37  ;;  %v1896_v12 = vpop.f32.mrb[26].mxu1  ;;  %v696_v13 = vpop.f32.mrb[27].mxu0 }
 0x11a   : > { %1797 = vst [vmem:[%s2117_s27 + $0xd8] sm:$0xff] %v1749_v2   ;;  %1780 = vst [vmem:[%s2117_s27 + $0x50] sm:$0xff] %v1664_v3   ;;  %v910_v14 = vmax.f32 %v830_v4, 0.0  ;;  %v876_v15 = vmax.f32 %v694_v5, 0.0  ;;  %v833_v16 = vadd.f32 %v1896_v12, %v2102_v37  ;;  %v697_v17 = vadd.f32 %v696_v13, %v2102_v37  ;;  %v824_v18 = vpop.f32.mrb[27].mxu1 }
 0x11b   : > { %1796 = vst [vmem:[%s2117_s27 + $0xd0] sm:$0xff] %v1744_v8   ;;  %v908_v19 = vmax.f32 %v822_v10, 0.0  ;;  %v879_v20 = vmax.f32 %v705_v11, 0.0  ;;  %v825_v21 = vadd.f32 %v824_v18, %v2102_v37  ;;  %v942_v24 = vmin.f32 %v878_v9, 6.0 }
 0x11c   : > { %v911_v22 = vmax.f32 %v833_v16, 0.0  ;;  %v877_v23 = vmax.f32 %v697_v17, 0.0  ;;  %v974_v27 = vmin.f32 %v910_v14, 6.0  ;;  %v940_v28 = vmin.f32 %v876_v15, 6.0 }
 0x11d   : > { %v943_v25 = vmin.f32 %v879_v20, 6.0  ;;  %v909_v26 = vmax.f32 %v825_v21, 0.0  ;;  %v972_v32 = vmin.f32 %v908_v19, 6.0 }
 0x11e   : > { %v975_v29 = vmin.f32 %v911_v22, 6.0  ;;  %v941_v30 = vmin.f32 %v877_v23, 6.0  ;;  %v1867_v31 = vpop.f32.mrb[28].mxu0 }
 0x11f   : > { %v1679_v33 = vpack.c.bf16 %v943_v25, %v942_v24  ;;  %v973_v34 = vmin.f32 %v909_v26, 6.0  ;;  %v718_v35 = vadd.f32 %v1867_v31, %v2102_v37  ;;  %v1899_v36 = vpop.f32.mrb[28].mxu1  ;;  %v709_v38 = vpop.f32.mrb[29].mxu0 }
 0x120   : > { %v1759_v39 = vpack.c.bf16 %v975_v29, %v974_v27  ;;  %v1674_v40 = vpack.c.bf16 %v941_v30, %v940_v28  ;;  %v846_v41 = vadd.f32 %v1899_v36, %v2102_v37  ;;  %v710_v42 = vadd.f32 %v709_v38, %v2102_v37  ;;  %v837_v43 = vpop.f32.mrb[29].mxu1  ;;  %v1868_v44 = vpop.f32.mrb[30].mxu0 }
 0x121   : > { %1783 = vst [vmem:[%s2117_s27 + $0x68] sm:$0xff] %v1679_v33   ;;  %v1754_v45 = vpack.c.bf16 %v973_v34, %v972_v32  ;;  %v882_v46 = vmax.f32 %v718_v35, 0.0  ;;  %v838_v47 = vadd.f32 %v837_v43, %v2102_v37  ;;  %v721_v48 = vadd.f32 %v1868_v44, %v2102_v37  ;;  %v1900_v49 = vpop.f32.mrb[30].mxu1  ;;  %v712_v50 = vpop.f32.mrb[31].mxu0 }
 0x122   : > { %1799 = vst [vmem:[%s2117_s27 + $0xe8] sm:$0xff] %v1759_v39   ;;  %1782 = vst [vmem:[%s2117_s27 + $0x60] sm:$0xff] %v1674_v40   ;;  %v914_v51 = vmax.f32 %v846_v41, 0.0  ;;  %v880_v52 = vmax.f32 %v710_v42, 0.0  ;;  %v849_v53 = vadd.f32 %v1900_v49, %v2102_v37  ;;  %v713_v54 = vadd.f32 %v712_v50, %v2102_v37  ;;  %v840_v55 = vpop.f32.mrb[31].mxu1 }
 0x123   : > { %1798 = vst [vmem:[%s2117_s27 + $0xe0] sm:$0xff] %v1754_v45   ;;  %v912_v56 = vmax.f32 %v838_v47, 0.0  ;;  %v883_v57 = vmax.f32 %v721_v48, 0.0  ;;  %v841_v58 = vadd.f32 %v840_v55, %v2102_v37  ;;  %v946_v61 = vmin.f32 %v882_v46, 6.0 }
 0x124   : > { %v915_v59 = vmax.f32 %v849_v53, 0.0  ;;  %v881_v60 = vmax.f32 %v713_v54, 0.0  ;;  %v978_v0 = vmin.f32 %v914_v51, 6.0  ;;  %v944_v1 = vmin.f32 %v880_v52, 6.0 }
 0x125   : > { %v947_v62 = vmin.f32 %v883_v57, 6.0  ;;  %v913_v63 = vmax.f32 %v841_v58, 0.0  ;;  %v976_v4 = vmin.f32 %v912_v56, 6.0 }
 0x126   : > { %v979_v2 = vmin.f32 %v915_v59, 6.0  ;;  %v945_v3 = vmin.f32 %v881_v60, 6.0 }
 0x127   : > { %v1689_v5 = vpack.c.bf16 %v947_v62, %v946_v61  ;;  %v977_v6 = vmin.f32 %v913_v63, 6.0 }
 0x128   : > { %v1769_v7 = vpack.c.bf16 %v979_v2, %v978_v0  ;;  %v1684_v8 = vpack.c.bf16 %v945_v3, %v944_v1 }
 0x129   : > { %1785 = vst [vmem:[%s2117_s27 + $0x78] sm:$0xff] %v1689_v5   ;;  %v1764_v9 = vpack.c.bf16 %v977_v6, %v976_v4 }
 0x12a   : > { %1801 = vst [vmem:[%s2117_s27 + $0xf8] sm:$0xff] %v1769_v7   ;;  %1784 = vst [vmem:[%s2117_s27 + $0x70] sm:$0xff] %v1684_v8  }
 0x12b   : > { %1800 = vst [vmem:[%s2117_s27 + $0xf0] sm:$0xff] %v1764_v9  }
 0x12c PF: > { %s13_s14 = sadd.s32 1, %s1982_s14   ;;  %s2220_s12 = smov %s1978_s13 }
 0x12d   : > { %p10_p5 = scmp.ge.s32.totalorder %s13_s14, 6   ;;  %s2221_s13 = smov %s2223_s15 }
 0x12f   :  { %12 = sbr.rel (!%p10_p5) target bundleno = 2 (0x2), region = 68 }

// kernel: _lambda_.25
= control target key start
LH: loop header
LB: loop body
LE: loop exit
PB: predicated region body
PF: predicated region fallthrough
CT: control target
= control target key end

     0   :  { %s1529_s12 = smov 0   ;;  %s1531_s13 = smov 0   ;;  %s1829_s0 = inlined_call_operand.vmem [shape: bf16[2048,144], index: 0, kind: input, shape index: {}]   ;;  %s1830_s1 = inlined_call_operand.vmem [shape: bf16[144,128], index: 1, kind: input, shape index: {}]   ;;  %s1831_s2 = inlined_call_operand.vmem [shape: f32[2,128], index: 2, kind: input, shape index: {}]   ;;  %s1832_s3 = inlined_call_operand.vmem [shape: f32[2048,128], index: 3, kind: output, shape index: {}]  }
   0x1   :  { %s1533_s14 = smov 0  }
   0x2 LB: > { %s25_s15 = sadd.s32 1, %s1502_s13  ;;  %p1222_p0 = scmp.ge.s32.totalorder %s1506_s14, 1  ;;  %s1506_s14 = sphi %s1533_s14, %s13_s14   ;;  %s1502_s13 = sphi %s1531_s13, %s1834_s13   ;;  %s1498_s12 = sphi %s1529_s12, %s1833_s12  }
   0x3   : > { %p27_p1 = scmp.ge.s32.totalorder %s25_s15, 4  ;;  %p171_p2 = scmp.lt.s32.totalorder %s1506_s14, 5 }
   0x5   : > { %s1836_s15 = smov (%p27_p1, %s25_s15), 0  ;;  %p172_p3 = pnand %p1222_p0, %p171_p2 }
   0x6   : > { %v1379_v0 = vld [vmem:[%s1830_s1] sm:$0xff] (!%p172_p3)   ;;  %v1508_v1 = vmov (!%p172_p3), 0   ;;  %s1223_s18 = sshll.u32 (!%p172_p3), %s1498_s12, 6  ;;  %v1380_v2 = vld [vmem:[%s1830_s1 + $0x8] sm:$0xff] (!%p172_p3)   ;;  %v1381_v3 = vld [vmem:[%s1830_s1 + $0x10] sm:$0xff] (!%p172_p3)   ;;  %vm661_vm0 = vcmask (!%p172_p3), 130048  }
   0x7   : > { %175 = sbr.rel (%p172_p3) target bundleno = 380 (0x17c), region = 32  ;;  %758 = vmatprep.subr.bf16.mxu0 (!%p172_p3), %v1508_v1  ;;  %1336 = vmatprep.subr.bf16.mxu1 (!%p172_p3), %v1508_v1  ;;  %p208_p4 = scmp.lt.s32.totalorder (!%p172_p3), %s1223_s18, 255  ;;  %v1382_v4 = vld [vmem:[%s1830_s1 + $0x18] sm:$0xff] (!%p172_p3)   ;;  %v1383_v7 = vld [vmem:[%s1830_s1 + $0x20] sm:$0xff] (!%p172_p3)   ;;  %v1384_v8 = vld [vmem:[%s1830_s1 + $0x28] sm:$0xff] (!%p172_p3)  }
   0x8   : > { %759 = vmatpush1.bf16.msra.mxu0 (!%p172_p3), %v1379_v0  ;;  %1345 = vmatpush1.bf16.msra.mxu1 (!%p172_p3), %v1379_v0  ;;  %v1385_v9 = vld [vmem:[%s1830_s1 + $0x30] sm:$0xff] (!%p172_p3)   ;;  %v1386_v10 = vld [vmem:[%s1830_s1 + $0x38] sm:$0xff] (!%p172_p3)   ;;  %v1387_v11 = vld [vmem:[%s1830_s1 + $0x40] sm:$0xff] (!%p172_p3)  }
   0x9   : > { %760 = vmatprep.subr.bf16.mxu0 (!%p172_p3), %v1508_v1  ;;  %1337 = vmatprep.subr.bf16.mxu1 (!%p172_p3), %v1508_v1 }
   0xc   : > { %761 = vmatpush1.bf16.msra.mxu0 (!%p172_p3), %v1380_v2  ;;  %1346 = vmatpush1.bf16.msra.mxu1 (!%p172_p3), %v1380_v2 }
   0xd   : > { %762 = vmatprep.subr.bf16.mxu0 (!%p172_p3), %v1508_v1  ;;  %1338 = vmatprep.subr.bf16.mxu1 (!%p172_p3), %v1508_v1 }
   0xe   : > { %s1838_s18 = smov (!%p208_p4, %s1223_s18), 255 }
   0xf   : > { %s1335_s23 = sshll.u32 %s1838_s18, 3 }
  0x10   : > { %s1564_s26 = scalar_lea.vmem %s1829_s0, %s1335_s23  ;;  %763 = vmatpush1.bf16.msra.mxu0 %v1381_v3  ;;  %1347 = vmatpush1.bf16.msra.mxu1 %v1381_v3  ;;  %s1690_s20 = scalar_lea.vmem %s1832_s3, %s1335_s23 }
  0x11   : > { %v1390_v5 = vld [vmem:[%s1564_s26 + $0x4] ss:$8 sps:$4 sm:$0xff]   ;;  %764 = vmatprep.subr.bf16.mxu0 %v1508_v1  ;;  %1339 = vmatprep.subr.bf16.mxu1 %v1508_v1  ;;  %v1388_v12 = vld [vmem:[%s1564_s26] ss:$8 sps:$4 sm:$0xff]   ;;  %v1394_v14 = vld [vmem:[%s1564_s26 + $0x14] ss:$8 sps:$4 sm:$0xff]  }
  0x12   : > { %v1393_v6 = vld [vmem:[%s1564_s26 + $0x104] ss:$8 sps:$4 sm:$0xff]   ;;  %1301 = vmatprep.mubr.msk.bf16.mxu0 %vm661_vm0, %v1390_v5  ;;  %v1391_v13 = vld [vmem:[%s1564_s26 + $0x100] ss:$8 sps:$4 sm:$0xff]   ;;  %v1396_v15 = vld [vmem:[%s1564_s26 + $0x114] ss:$8 sps:$4 sm:$0xff]  }
  0x13   : > { %1317 = vmatprep.mubr.msk.bf16.mxu1 %vm661_vm0, %v1393_v6  ;;  %v1398_v16 = vld [vmem:[%s1564_s26 + $0x10] ss:$8 sps:$4 sm:$0xff]   ;;  %v1400_v18 = vld [vmem:[%s1564_s26 + $0x24] ss:$8 sps:$4 sm:$0xff]   ;;  %v1404_v20 = vld [vmem:[%s1564_s26 + $0x20] ss:$8 sps:$4 sm:$0xff]  }
  0x14   : > { %765 = vmatpush1.bf16.msra.mxu0 %v1382_v4  ;;  %1348 = vmatpush1.bf16.msra.mxu1 %v1382_v4  ;;  %v1399_v17 = vld [vmem:[%s1564_s26 + $0x110] ss:$8 sps:$4 sm:$0xff]   ;;  %v1402_v19 = vld [vmem:[%s1564_s26 + $0x124] ss:$8 sps:$4 sm:$0xff]   ;;  %v1405_v21 = vld [vmem:[%s1564_s26 + $0x120] ss:$8 sps:$4 sm:$0xff]  }
  0x15   : > { %766 = vmatprep.subr.bf16.mxu0 %v1508_v1  ;;  %1340 = vmatprep.subr.bf16.mxu1 %v1508_v1  ;;  %v1406_v22 = vld [vmem:[%s1564_s26 + $0x34] ss:$8 sps:$4 sm:$0xff]   ;;  %v1410_v24 = vld [vmem:[%s1564_s26 + $0x30] ss:$8 sps:$4 sm:$0xff]   ;;  %v1412_v26 = vld [vmem:[%s1564_s26 + $0x44] ss:$8 sps:$4 sm:$0xff]  }
  0x16   : > { %v1408_v23 = vld [vmem:[%s1564_s26 + $0x134] ss:$8 sps:$4 sm:$0xff]   ;;  %v1411_v25 = vld [vmem:[%s1564_s26 + $0x130] ss:$8 sps:$4 sm:$0xff]   ;;  %v1414_v27 = vld [vmem:[%s1564_s26 + $0x144] ss:$8 sps:$4 sm:$0xff]  }
  0x17   : > { %v1416_v28 = vld [vmem:[%s1564_s26 + $0x40] ss:$8 sps:$4 sm:$0xff]   ;;  %v1418_v30 = vld [vmem:[%s1564_s26 + $0x54] ss:$8 sps:$4 sm:$0xff]   ;;  %v1422_v32 = vld [vmem:[%s1564_s26 + $0x50] ss:$8 sps:$4 sm:$0xff]  }
  0x18   : > { %767 = vmatpush1.bf16.msra.mxu0 %v1383_v7  ;;  %1349 = vmatpush1.bf16.msra.mxu1 %v1383_v7  ;;  %v1417_v29 = vld [vmem:[%s1564_s26 + $0x140] ss:$8 sps:$4 sm:$0xff]   ;;  %v1420_v31 = vld [vmem:[%s1564_s26 + $0x154] ss:$8 sps:$4 sm:$0xff]   ;;  %v1423_v33 = vld [vmem:[%s1564_s26 + $0x150] ss:$8 sps:$4 sm:$0xff]  }
  0x19   : > { %768 = vmatprep.subr.bf16.mxu0 %v1508_v1  ;;  %1341 = vmatprep.subr.bf16.mxu1 %v1508_v1  ;;  %v1424_v34 = vld [vmem:[%s1564_s26 + $0x64] ss:$8 sps:$4 sm:$0xff]   ;;  %v1428_v36 = vld [vmem:[%s1564_s26 + $0x60] ss:$8 sps:$4 sm:$0xff]   ;;  %v1430_v38 = vld [vmem:[%s1564_s26 + $0x74] ss:$8 sps:$4 sm:$0xff]  }
  0x1a   : > { %v1426_v35 = vld [vmem:[%s1564_s26 + $0x164] ss:$8 sps:$4 sm:$0xff]   ;;  %v1429_v37 = vld [vmem:[%s1564_s26 + $0x160] ss:$8 sps:$4 sm:$0xff]   ;;  %v1432_v39 = vld [vmem:[%s1564_s26 + $0x174] ss:$8 sps:$4 sm:$0xff]  }
  0x1b   : > { %v1434_v40 = vld [vmem:[%s1564_s26 + $0x70] ss:$8 sps:$4 sm:$0xff]   ;;  %v1436_v42 = vld [vmem:[%s1564_s26 + $0x84] ss:$8 sps:$4 sm:$0xff]   ;;  %v1440_v44 = vld [vmem:[%s1564_s26 + $0x80] ss:$8 sps:$4 sm:$0xff]  }
  0x1c   : > { %769 = vmatpush1.bf16.msra.mxu0 %v1384_v8  ;;  %1350 = vmatpush1.bf16.msra.mxu1 %v1384_v8  ;;  %v1435_v41 = vld [vmem:[%s1564_s26 + $0x170] ss:$8 sps:$4 sm:$0xff]   ;;  %v1438_v43 = vld [vmem:[%s1564_s26 + $0x184] ss:$8 sps:$4 sm:$0xff]   ;;  %v1441_v45 = vld [vmem:[%s1564_s26 + $0x180] ss:$8 sps:$4 sm:$0xff]  }
  0x1d   : > { %770 = vmatprep.subr.bf16.mxu0 %v1508_v1  ;;  %1342 = vmatprep.subr.bf16.mxu1 %v1508_v1  ;;  %v1442_v46 = vld [vmem:[%s1564_s26 + $0x94] ss:$8 sps:$4 sm:$0xff]   ;;  %v1446_v48 = vld [vmem:[%s1564_s26 + $0x90] ss:$8 sps:$4 sm:$0xff]   ;;  %v1448_v50 = vld [vmem:[%s1564_s26 + $0xa4] ss:$8 sps:$4 sm:$0xff]  }
  0x1e   : > { %v1444_v47 = vld [vmem:[%s1564_s26 + $0x194] ss:$8 sps:$4 sm:$0xff]   ;;  %v1447_v49 = vld [vmem:[%s1564_s26 + $0x190] ss:$8 sps:$4 sm:$0xff]   ;;  %v1450_v51 = vld [vmem:[%s1564_s26 + $0x1a4] ss:$8 sps:$4 sm:$0xff]  }
  0x1f   : > { %v1452_v52 = vld [vmem:[%s1564_s26 + $0xa0] ss:$8 sps:$4 sm:$0xff]   ;;  %v1454_v54 = vld [vmem:[%s1564_s26 + $0xb4] ss:$8 sps:$4 sm:$0xff]   ;;  %v1458_v56 = vld [vmem:[%s1564_s26 + $0xb0] ss:$8 sps:$4 sm:$0xff]  }
  0x20   : > { %771 = vmatpush1.bf16.msra.mxu0 %v1385_v9  ;;  %1351 = vmatpush1.bf16.msra.mxu1 %v1385_v9  ;;  %v1453_v53 = vld [vmem:[%s1564_s26 + $0x1a0] ss:$8 sps:$4 sm:$0xff]   ;;  %v1456_v55 = vld [vmem:[%s1564_s26 + $0x1b4] ss:$8 sps:$4 sm:$0xff]   ;;  %v1459_v57 = vld [vmem:[%s1564_s26 + $0x1b0] ss:$8 sps:$4 sm:$0xff]  }
  0x21   : > { %772 = vmatprep.subr.bf16.mxu0 %v1508_v1  ;;  %1343 = vmatprep.subr.bf16.mxu1 %v1508_v1  ;;  %v1460_v58 = vld [vmem:[%s1564_s26 + $0xc4] ss:$8 sps:$4 sm:$0xff]   ;;  %v1464_v60 = vld [vmem:[%s1564_s26 + $0xc0] ss:$8 sps:$4 sm:$0xff]   ;;  %v1466_v62 = vld [vmem:[%s1564_s26 + $0xd4] ss:$8 sps:$4 sm:$0xff]  }
  0x22   : > { %v1462_v59 = vld [vmem:[%s1564_s26 + $0x1c4] ss:$8 sps:$4 sm:$0xff]   ;;  %v1465_v61 = vld [vmem:[%s1564_s26 + $0x1c0] ss:$8 sps:$4 sm:$0xff]   ;;  %v1468_v63 = vld [vmem:[%s1564_s26 + $0x1d4] ss:$8 sps:$4 sm:$0xff]  }
  0x23   : > { %v1470_v0 = vld [vmem:[%s1564_s26 + $0xd0] ss:$8 sps:$4 sm:$0xff]   ;;  %v1472_v2 = vld [vmem:[%s1564_s26 + $0xe4] ss:$8 sps:$4 sm:$0xff]   ;;  %v1476_v4 = vld [vmem:[%s1564_s26 + $0xe0] ss:$8 sps:$4 sm:$0xff]  }
  0x24   : > { %773 = vmatpush1.bf16.msra.mxu0 %v1386_v10  ;;  %1352 = vmatpush1.bf16.msra.mxu1 %v1386_v10  ;;  %v1474_v3 = vld [vmem:[%s1564_s26 + $0x1e4] ss:$8 sps:$4 sm:$0xff]   ;;  %v1477_v5 = vld [vmem:[%s1564_s26 + $0x1e0] ss:$8 sps:$4 sm:$0xff]   ;;  %v1478_v6 = vld [vmem:[%s1564_s26 + $0xf4] ss:$8 sps:$4 sm:$0xff]   ;;  %v315_v10 = vlaneseq }
  0x25   : > { %774 = vmatprep.subr.bf16.mxu0 %v1508_v1  ;;  %1344 = vmatprep.subr.bf16.mxu1 %v1508_v1  ;;  %v1471_v1 = vld [vmem:[%s1564_s26 + $0x1d0] ss:$8 sps:$4 sm:$0xff]   ;;  %v1480_v7 = vld [vmem:[%s1564_s26 + $0x1f4] ss:$8 sps:$4 sm:$0xff]  }
  0x26   : > { %v1482_v8 = vld [vmem:[%s1564_s26 + $0xf0] ss:$8 sps:$4 sm:$0xff]  }
  0x27   : > { %v1483_v9 = vld [vmem:[%s1564_s26 + $0x1f0] ss:$8 sps:$4 sm:$0xff]  }
  0x28   : > { %775 = vmatpush1.bf16.msra.mxu0 %v1387_v11  ;;  %1353 = vmatpush1.bf16.msra.mxu1 %v1387_v11  ;;  %v316_v11 = vshrl.u32 %v315_v10, 7 }
  0x2b   : > { %791 = vmatmul.mubr.bf16.vlgmr.msra.gmra.mrb[0].mxu0 %v1388_v12  ;;  %919 = vmatmul.mubr.bf16.vlgmr.msra.gmra.mrb[0].mxu1 %v1391_v13  ;;  %v317_v12 = vsub.s32 1, %v316_v11  ;;  %v314_v13 = vld [vmem:[%s1831_s2] sm:$0x3] }
  0x2c   : > { %1302 = vmatprep.mubr.msk.bf16.mxu0 %vm661_vm0, %v1394_v14  ;;  %1318 = vmatprep.mubr.msk.bf16.mxu1 %vm661_vm0, %v1396_v15 }
  0x2d   : > { %v1683_v14 = vrot.slane %v314_v13, %v317_v12 }
  0x33   : > { %799 = vmatmul.mubr.bf16.gmra.mrb[4].mxu0 %v1398_v16  ;;  %927 = vmatmul.mubr.bf16.gmra.mrb[4].mxu1 %v1399_v17 }
  0x34   : > { %1303 = vmatprep.mubr.msk.bf16.mxu0 %vm661_vm0, %v1400_v18  ;;  %1319 = vmatprep.mubr.msk.bf16.mxu1 %vm661_vm0, %v1402_v19 }
  0x3b   : > { %807 = vmatmul.mubr.bf16.gmra.mrb[8].mxu0 %v1404_v20  ;;  %935 = vmatmul.mubr.bf16.gmra.mrb[8].mxu1 %v1405_v21 }
  0x3c   : > { %1304 = vmatprep.mubr.msk.bf16.mxu0 %vm661_vm0, %v1406_v22  ;;  %1320 = vmatprep.mubr.msk.bf16.mxu1 %vm661_vm0, %v1408_v23 }
  0x43   : > { %815 = vmatmul.mubr.bf16.gmra.mrb[12].mxu0 %v1410_v24  ;;  %943 = vmatmul.mubr.bf16.gmra.mrb[12].mxu1 %v1411_v25 }
  0x44   : > { %1305 = vmatprep.mubr.msk.bf16.mxu0 %vm661_vm0, %v1412_v26  ;;  %1321 = vmatprep.mubr.msk.bf16.mxu1 %vm661_vm0, %v1414_v27 }
  0x4b   : > { %823 = vmatmul.mubr.bf16.gmra.mrb[16].mxu0 %v1416_v28  ;;  %951 = vmatmul.mubr.bf16.gmra.mrb[16].mxu1 %v1417_v29 }
  0x4c   : > { %1306 = vmatprep.mubr.msk.bf16.mxu0 %vm661_vm0, %v1418_v30  ;;  %1322 = vmatprep.mubr.msk.bf16.mxu1 %vm661_vm0, %v1420_v31 }
  0x53   : > { %831 = vmatmul.mubr.bf16.gmra.mrb[20].mxu0 %v1422_v32  ;;  %959 = vmatmul.mubr.bf16.gmra.mrb[20].mxu1 %v1423_v33 }
  0x54   : > { %1307 = vmatprep.mubr.msk.bf16.mxu0 %vm661_vm0, %v1424_v34  ;;  %1323 = vmatprep.mubr.msk.bf16.mxu1 %vm661_vm0, %v1426_v35 }
  0x5b   : > { %839 = vmatmul.mubr.bf16.gmra.mrb[24].mxu0 %v1428_v36  ;;  %967 = vmatmul.mubr.bf16.gmra.mrb[24].mxu1 %v1429_v37 }
  0x5c   : > { %1308 = vmatprep.mubr.msk.bf16.mxu0 %vm661_vm0, %v1430_v38  ;;  %1324 = vmatprep.mubr.msk.bf16.mxu1 %vm661_vm0, %v1432_v39 }
  0x63   : > { %847 = vmatmul.mubr.bf16.gmra.mrb[28].mxu0 %v1434_v40  ;;  %975 = vmatmul.mubr.bf16.gmra.mrb[28].mxu1 %v1435_v41 }
  0x64   : > { %1309 = vmatprep.mubr.msk.bf16.mxu0 %vm661_vm0, %v1436_v42  ;;  %1325 = vmatprep.mubr.msk.bf16.mxu1 %vm661_vm0, %v1438_v43 }
  0x6b   : > { %855 = vmatmul.mubr.bf16.gmra.mrb[32].mxu0 %v1440_v44  ;;  %983 = vmatmul.mubr.bf16.gmra.mrb[32].mxu1 %v1441_v45 }
  0x6c   : > { %1310 = vmatprep.mubr.msk.bf16.mxu0 %vm661_vm0, %v1442_v46  ;;  %1326 = vmatprep.mubr.msk.bf16.mxu1 %vm661_vm0, %v1444_v47 }
  0x73   : > { %863 = vmatmul.mubr.bf16.gmra.mrb[36].mxu0 %v1446_v48  ;;  %991 = vmatmul.mubr.bf16.gmra.mrb[36].mxu1 %v1447_v49 }
  0x74   : > { %1311 = vmatprep.mubr.msk.bf16.mxu0 %vm661_vm0, %v1448_v50  ;;  %1327 = vmatprep.mubr.msk.bf16.mxu1 %vm661_vm0, %v1450_v51 }
  0x7b   : > { %871 = vmatmul.mubr.bf16.gmra.mrb[40].mxu0 %v1452_v52  ;;  %999 = vmatmul.mubr.bf16.gmra.mrb[40].mxu1 %v1453_v53 }
  0x7c   : > { %1312 = vmatprep.mubr.msk.bf16.mxu0 %vm661_vm0, %v1454_v54  ;;  %1328 = vmatprep.mubr.msk.bf16.mxu1 %vm661_vm0, %v1456_v55 }
  0x83   : > { %879 = vmatmul.mubr.bf16.gmra.mrb[44].mxu0 %v1458_v56  ;;  %1007 = vmatmul.mubr.bf16.gmra.mrb[44].mxu1 %v1459_v57 }
  0x84   : > { %1313 = vmatprep.mubr.msk.bf16.mxu0 %vm661_vm0, %v1460_v58  ;;  %1329 = vmatprep.mubr.msk.bf16.mxu1 %vm661_vm0, %v1462_v59 }
  0x8b   : > { %887 = vmatmul.mubr.bf16.gmra.mrb[48].mxu0 %v1464_v60  ;;  %1015 = vmatmul.mubr.bf16.gmra.mrb[48].mxu1 %v1465_v61 }
  0x8c   : > { %1314 = vmatprep.mubr.msk.bf16.mxu0 %vm661_vm0, %v1466_v62  ;;  %1330 = vmatprep.mubr.msk.bf16.mxu1 %vm661_vm0, %v1468_v63 }
  0x93   : > { %895 = vmatmul.mubr.bf16.gmra.mrb[52].mxu0 %v1470_v0  ;;  %1023 = vmatmul.mubr.bf16.gmra.mrb[52].mxu1 %v1471_v1 }
  0x94   : > { %1315 = vmatprep.mubr.msk.bf16.mxu0 %vm661_vm0, %v1472_v2  ;;  %1331 = vmatprep.mubr.msk.bf16.mxu1 %vm661_vm0, %v1474_v3 }
  0x9b   : > { %903 = vmatmul.mubr.bf16.gmra.mrb[56].mxu0 %v1476_v4  ;;  %1031 = vmatmul.mubr.bf16.gmra.mrb[56].mxu1 %v1477_v5 }
  0x9c   : > { %1316 = vmatprep.mubr.msk.bf16.mxu0 %vm661_vm0, %v1478_v6  ;;  %1332 = vmatprep.mubr.msk.bf16.mxu1 %vm661_vm0, %v1480_v7 }
  0xa3   : > { %911 = vmatmul.mubr.bf16.gmra.mrb[60].mxu0 %v1482_v8  ;;  %1039 = vmatmul.mubr.bf16.gmra.mrb[60].mxu1 %v1483_v9 }
  0xfe   : > { %v792_v15 = vpop.f32.mrb[0].mxu0  ;;  %v920_v16 = vpop.f32.mrb[0].mxu1 }
  0xff   : > { %v793_v17 = vadd.f32 %v792_v15, %v1683_v14  ;;  %v921_v18 = vadd.f32 %v920_v16, %v1683_v14  ;;  %v794_v19 = vpop.f32.mrb[1].mxu0  ;;  %v922_v20 = vpop.f32.mrb[1].mxu1 }
 0x100   : > { %v795_v21 = vpop.f32.mrb[2].mxu0  ;;  %v923_v22 = vpop.f32.mrb[2].mxu1 }
 0x101   : > { %1047 = vst [vmem:[%s1690_s20] sm:$0xff] %v793_v17  ;;  %1079 = vst [vmem:[%s1690_s20 + $0x100] sm:$0xff] %v921_v18  ;;  %v796_v23 = vadd.f32 %v795_v21, %v1683_v14  ;;  %v924_v24 = vadd.f32 %v923_v22, %v1683_v14  ;;  %v797_v25 = vpop.f32.mrb[3].mxu0  ;;  %v925_v26 = vpop.f32.mrb[3].mxu1 }
 0x103   : > { %1048 = vst [vmem:[%s1690_s20 + $0x8] sm:$0xff] %v796_v23  ;;  %1080 = vst [vmem:[%s1690_s20 + $0x108] sm:$0xff] %v924_v24 }
 0x106   : > { %v800_v27 = vpop.f32.mrb[4].mxu0  ;;  %v928_v28 = vpop.f32.mrb[4].mxu1 }
 0x107   : > { %v801_v29 = vadd.f32 %v800_v27, %v1683_v14  ;;  %v929_v30 = vadd.f32 %v928_v28, %v1683_v14  ;;  %v802_v31 = vpop.f32.mrb[5].mxu0  ;;  %v930_v32 = vpop.f32.mrb[5].mxu1 }
 0x108   : > { %v803_v33 = vpop.f32.mrb[6].mxu0  ;;  %v931_v34 = vpop.f32.mrb[6].mxu1 }
 0x109   : > { %1049 = vst [vmem:[%s1690_s20 + $0x10] sm:$0xff] %v801_v29  ;;  %1081 = vst [vmem:[%s1690_s20 + $0x110] sm:$0xff] %v929_v30  ;;  %v804_v35 = vadd.f32 %v803_v33, %v1683_v14  ;;  %v932_v36 = vadd.f32 %v931_v34, %v1683_v14  ;;  %v805_v37 = vpop.f32.mrb[7].mxu0  ;;  %v933_v38 = vpop.f32.mrb[7].mxu1 }
 0x10b   : > { %1050 = vst [vmem:[%s1690_s20 + $0x18] sm:$0xff] %v804_v35  ;;  %1082 = vst [vmem:[%s1690_s20 + $0x118] sm:$0xff] %v932_v36 }
 0x10e   : > { %v808_v39 = vpop.f32.mrb[8].mxu0  ;;  %v936_v40 = vpop.f32.mrb[8].mxu1 }
 0x10f   : > { %v809_v41 = vadd.f32 %v808_v39, %v1683_v14  ;;  %v937_v42 = vadd.f32 %v936_v40, %v1683_v14  ;;  %v810_v43 = vpop.f32.mrb[9].mxu0  ;;  %v938_v44 = vpop.f32.mrb[9].mxu1 }
 0x110   : > { %v811_v45 = vpop.f32.mrb[10].mxu0  ;;  %v939_v46 = vpop.f32.mrb[10].mxu1 }
 0x111   : > { %1051 = vst [vmem:[%s1690_s20 + $0x20] sm:$0xff] %v809_v41  ;;  %1083 = vst [vmem:[%s1690_s20 + $0x120] sm:$0xff] %v937_v42  ;;  %v812_v47 = vadd.f32 %v811_v45, %v1683_v14  ;;  %v940_v48 = vadd.f32 %v939_v46, %v1683_v14  ;;  %v813_v49 = vpop.f32.mrb[11].mxu0  ;;  %v941_v50 = vpop.f32.mrb[11].mxu1 }
 0x113   : > { %1052 = vst [vmem:[%s1690_s20 + $0x28] sm:$0xff] %v812_v47  ;;  %1084 = vst [vmem:[%s1690_s20 + $0x128] sm:$0xff] %v940_v48 }
 0x116   : > { %v816_v51 = vpop.f32.mrb[12].mxu0  ;;  %v944_v52 = vpop.f32.mrb[12].mxu1 }
 0x117   : > { %v817_v53 = vadd.f32 %v816_v51, %v1683_v14  ;;  %v945_v54 = vadd.f32 %v944_v52, %v1683_v14  ;;  %v818_v55 = vpop.f32.mrb[13].mxu0  ;;  %v946_v56 = vpop.f32.mrb[13].mxu1 }
 0x118   : > { %v819_v57 = vpop.f32.mrb[14].mxu0  ;;  %v947_v58 = vpop.f32.mrb[14].mxu1 }
 0x119   : > { %1053 = vst [vmem:[%s1690_s20 + $0x30] sm:$0xff] %v817_v53  ;;  %1085 = vst [vmem:[%s1690_s20 + $0x130] sm:$0xff] %v945_v54  ;;  %v820_v59 = vadd.f32 %v819_v57, %v1683_v14  ;;  %v948_v60 = vadd.f32 %v947_v58, %v1683_v14  ;;  %v821_v61 = vpop.f32.mrb[15].mxu0  ;;  %v949_v62 = vpop.f32.mrb[15].mxu1 }
 0x11b   : > { %1054 = vst [vmem:[%s1690_s20 + $0x38] sm:$0xff] %v820_v59  ;;  %1086 = vst [vmem:[%s1690_s20 + $0x138] sm:$0xff] %v948_v60 }
 0x11e   : > { %v824_v63 = vpop.f32.mrb[16].mxu0  ;;  %v952_v0 = vpop.f32.mrb[16].mxu1 }
 0x11f   : > { %v825_v1 = vadd.f32 %v824_v63, %v1683_v14  ;;  %v953_v2 = vadd.f32 %v952_v0, %v1683_v14  ;;  %v826_v3 = vpop.f32.mrb[17].mxu0  ;;  %v954_v4 = vpop.f32.mrb[17].mxu1 }
 0x120   : > { %v827_v5 = vpop.f32.mrb[18].mxu0  ;;  %v955_v6 = vpop.f32.mrb[18].mxu1 }
 0x121   : > { %1055 = vst [vmem:[%s1690_s20 + $0x40] sm:$0xff] %v825_v1  ;;  %1087 = vst [vmem:[%s1690_s20 + $0x140] sm:$0xff] %v953_v2  ;;  %v828_v7 = vadd.f32 %v827_v5, %v1683_v14  ;;  %v956_v8 = vadd.f32 %v955_v6, %v1683_v14  ;;  %v829_v9 = vpop.f32.mrb[19].mxu0  ;;  %v957_v10 = vpop.f32.mrb[19].mxu1 }
 0x123   : > { %1056 = vst [vmem:[%s1690_s20 + $0x48] sm:$0xff] %v828_v7  ;;  %1088 = vst [vmem:[%s1690_s20 + $0x148] sm:$0xff] %v956_v8 }
 0x126   : > { %v832_v11 = vpop.f32.mrb[20].mxu0  ;;  %v960_v12 = vpop.f32.mrb[20].mxu1 }
 0x127   : > { %v833_v13 = vadd.f32 %v832_v11, %v1683_v14  ;;  %v961_v15 = vadd.f32 %v960_v12, %v1683_v14  ;;  %v834_v16 = vpop.f32.mrb[21].mxu0  ;;  %v962_v17 = vpop.f32.mrb[21].mxu1 }
 0x128   : > { %v835_v18 = vpop.f32.mrb[22].mxu0  ;;  %v963_v19 = vpop.f32.mrb[22].mxu1 }
 0x129   : > { %1057 = vst [vmem:[%s1690_s20 + $0x50] sm:$0xff] %v833_v13  ;;  %1089 = vst [vmem:[%s1690_s20 + $0x150] sm:$0xff] %v961_v15  ;;  %v836_v20 = vadd.f32 %v835_v18, %v1683_v14  ;;  %v964_v21 = vadd.f32 %v963_v19, %v1683_v14  ;;  %v837_v22 = vpop.f32.mrb[23].mxu0  ;;  %v965_v23 = vpop.f32.mrb[23].mxu1 }
 0x12b   : > { %1058 = vst [vmem:[%s1690_s20 + $0x58] sm:$0xff] %v836_v20  ;;  %1090 = vst [vmem:[%s1690_s20 + $0x158] sm:$0xff] %v964_v21 }
 0x12e   : > { %v840_v24 = vpop.f32.mrb[24].mxu0  ;;  %v968_v25 = vpop.f32.mrb[24].mxu1 }
 0x12f   : > { %v841_v26 = vadd.f32 %v840_v24, %v1683_v14  ;;  %v969_v27 = vadd.f32 %v968_v25, %v1683_v14  ;;  %v842_v28 = vpop.f32.mrb[25].mxu0  ;;  %v970_v29 = vpop.f32.mrb[25].mxu1 }
 0x130   : > { %v843_v30 = vpop.f32.mrb[26].mxu0  ;;  %v971_v31 = vpop.f32.mrb[26].mxu1 }
 0x131   : > { %1059 = vst [vmem:[%s1690_s20 + $0x60] sm:$0xff] %v841_v26  ;;  %1091 = vst [vmem:[%s1690_s20 + $0x160] sm:$0xff] %v969_v27  ;;  %v844_v32 = vadd.f32 %v843_v30, %v1683_v14  ;;  %v972_v33 = vadd.f32 %v971_v31, %v1683_v14  ;;  %v845_v34 = vpop.f32.mrb[27].mxu0  ;;  %v973_v35 = vpop.f32.mrb[27].mxu1 }
 0x133   : > { %1060 = vst [vmem:[%s1690_s20 + $0x68] sm:$0xff] %v844_v32  ;;  %1092 = vst [vmem:[%s1690_s20 + $0x168] sm:$0xff] %v972_v33 }
 0x136   : > { %v848_v36 = vpop.f32.mrb[28].mxu0  ;;  %v976_v37 = vpop.f32.mrb[28].mxu1 }
 0x137   : > { %v849_v38 = vadd.f32 %v848_v36, %v1683_v14  ;;  %v977_v39 = vadd.f32 %v976_v37, %v1683_v14  ;;  %v850_v40 = vpop.f32.mrb[29].mxu0  ;;  %v978_v41 = vpop.f32.mrb[29].mxu1 }
 0x138   : > { %v851_v42 = vpop.f32.mrb[30].mxu0  ;;  %v979_v43 = vpop.f32.mrb[30].mxu1 }
 0x139   : > { %1061 = vst [vmem:[%s1690_s20 + $0x70] sm:$0xff] %v849_v38  ;;  %1093 = vst [vmem:[%s1690_s20 + $0x170] sm:$0xff] %v977_v39  ;;  %v852_v44 = vadd.f32 %v851_v42, %v1683_v14  ;;  %v980_v45 = vadd.f32 %v979_v43, %v1683_v14  ;;  %v853_v46 = vpop.f32.mrb[31].mxu0  ;;  %v981_v47 = vpop.f32.mrb[31].mxu1 }
 0x13b   : > { %1062 = vst [vmem:[%s1690_s20 + $0x78] sm:$0xff] %v852_v44  ;;  %1094 = vst [vmem:[%s1690_s20 + $0x178] sm:$0xff] %v980_v45 }
 0x13e   : > { %v856_v48 = vpop.f32.mrb[32].mxu0  ;;  %v984_v49 = vpop.f32.mrb[32].mxu1 }
 0x13f   : > { %v857_v50 = vadd.f32 %v856_v48, %v1683_v14  ;;  %v985_v51 = vadd.f32 %v984_v49, %v1683_v14  ;;  %v858_v52 = vpop.f32.mrb[33].mxu0  ;;  %v986_v53 = vpop.f32.mrb[33].mxu1 }
 0x140   : > { %v859_v54 = vpop.f32.mrb[34].mxu0  ;;  %v987_v55 = vpop.f32.mrb[34].mxu1 }
 0x141   : > { %1063 = vst [vmem:[%s1690_s20 + $0x80] sm:$0xff] %v857_v50  ;;  %1095 = vst [vmem:[%s1690_s20 + $0x180] sm:$0xff] %v985_v51  ;;  %v860_v56 = vadd.f32 %v859_v54, %v1683_v14  ;;  %v988_v57 = vadd.f32 %v987_v55, %v1683_v14  ;;  %v861_v58 = vpop.f32.mrb[35].mxu0  ;;  %v989_v59 = vpop.f32.mrb[35].mxu1 }
 0x143   : > { %1064 = vst [vmem:[%s1690_s20 + $0x88] sm:$0xff] %v860_v56  ;;  %1096 = vst [vmem:[%s1690_s20 + $0x188] sm:$0xff] %v988_v57 }
 0x146   : > { %v864_v60 = vpop.f32.mrb[36].mxu0  ;;  %v992_v61 = vpop.f32.mrb[36].mxu1 }
 0x147   : > { %v865_v62 = vadd.f32 %v864_v60, %v1683_v14  ;;  %v993_v63 = vadd.f32 %v992_v61, %v1683_v14  ;;  %v866_v0 = vpop.f32.mrb[37].mxu0  ;;  %v994_v1 = vpop.f32.mrb[37].mxu1 }
 0x148   : > { %v867_v2 = vpop.f32.mrb[38].mxu0  ;;  %v995_v3 = vpop.f32.mrb[38].mxu1 }
 0x149   : > { %1065 = vst [vmem:[%s1690_s20 + $0x90] sm:$0xff] %v865_v62  ;;  %1097 = vst [vmem:[%s1690_s20 + $0x190] sm:$0xff] %v993_v63  ;;  %v868_v4 = vadd.f32 %v867_v2, %v1683_v14  ;;  %v996_v5 = vadd.f32 %v995_v3, %v1683_v14  ;;  %v869_v6 = vpop.f32.mrb[39].mxu0  ;;  %v997_v7 = vpop.f32.mrb[39].mxu1 }
 0x14b   : > { %1066 = vst [vmem:[%s1690_s20 + $0x98] sm:$0xff] %v868_v4  ;;  %1098 = vst [vmem:[%s1690_s20 + $0x198] sm:$0xff] %v996_v5 }
 0x14e   : > { %v872_v8 = vpop.f32.mrb[40].mxu0  ;;  %v1000_v9 = vpop.f32.mrb[40].mxu1 }
 0x14f   : > { %v873_v10 = vadd.f32 %v872_v8, %v1683_v14  ;;  %v1001_v11 = vadd.f32 %v1000_v9, %v1683_v14  ;;  %v874_v12 = vpop.f32.mrb[41].mxu0  ;;  %v1002_v13 = vpop.f32.mrb[41].mxu1 }
 0x150   : > { %v875_v15 = vpop.f32.mrb[42].mxu0  ;;  %v1003_v16 = vpop.f32.mrb[42].mxu1 }
 0x151   : > { %1067 = vst [vmem:[%s1690_s20 + $0xa0] sm:$0xff] %v873_v10  ;;  %1099 = vst [vmem:[%s1690_s20 + $0x1a0] sm:$0xff] %v1001_v11  ;;  %v876_v17 = vadd.f32 %v875_v15, %v1683_v14  ;;  %v1004_v18 = vadd.f32 %v1003_v16, %v1683_v14  ;;  %v877_v19 = vpop.f32.mrb[43].mxu0  ;;  %v1005_v20 = vpop.f32.mrb[43].mxu1 }
 0x153   : > { %1068 = vst [vmem:[%s1690_s20 + $0xa8] sm:$0xff] %v876_v17  ;;  %1100 = vst [vmem:[%s1690_s20 + $0x1a8] sm:$0xff] %v1004_v18 }
 0x156   : > { %v880_v21 = vpop.f32.mrb[44].mxu0  ;;  %v1008_v22 = vpop.f32.mrb[44].mxu1 }
 0x157   : > { %v881_v23 = vadd.f32 %v880_v21, %v1683_v14  ;;  %v1009_v24 = vadd.f32 %v1008_v22, %v1683_v14  ;;  %v882_v25 = vpop.f32.mrb[45].mxu0  ;;  %v1010_v26 = vpop.f32.mrb[45].mxu1 }
 0x158   : > { %v883_v27 = vpop.f32.mrb[46].mxu0  ;;  %v1011_v28 = vpop.f32.mrb[46].mxu1 }
 0x159   : > { %1069 = vst [vmem:[%s1690_s20 + $0xb0] sm:$0xff] %v881_v23  ;;  %1101 = vst [vmem:[%s1690_s20 + $0x1b0] sm:$0xff] %v1009_v24  ;;  %v884_v29 = vadd.f32 %v883_v27, %v1683_v14  ;;  %v1012_v30 = vadd.f32 %v1011_v28, %v1683_v14  ;;  %v885_v31 = vpop.f32.mrb[47].mxu0  ;;  %v1013_v32 = vpop.f32.mrb[47].mxu1 }
 0x15b   : > { %1070 = vst [vmem:[%s1690_s20 + $0xb8] sm:$0xff] %v884_v29  ;;  %1102 = vst [vmem:[%s1690_s20 + $0x1b8] sm:$0xff] %v1012_v30 }
 0x15e   : > { %v888_v33 = vpop.f32.mrb[48].mxu0  ;;  %v1016_v34 = vpop.f32.mrb[48].mxu1 }
 0x15f   : > { %v889_v35 = vadd.f32 %v888_v33, %v1683_v14  ;;  %v1017_v36 = vadd.f32 %v1016_v34, %v1683_v14  ;;  %v890_v37 = vpop.f32.mrb[49].mxu0  ;;  %v1018_v38 = vpop.f32.mrb[49].mxu1 }
 0x160   : > { %v891_v39 = vpop.f32.mrb[50].mxu0  ;;  %v1019_v40 = vpop.f32.mrb[50].mxu1 }
 0x161   : > { %1071 = vst [vmem:[%s1690_s20 + $0xc0] sm:$0xff] %v889_v35  ;;  %1103 = vst [vmem:[%s1690_s20 + $0x1c0] sm:$0xff] %v1017_v36  ;;  %v892_v41 = vadd.f32 %v891_v39, %v1683_v14  ;;  %v1020_v42 = vadd.f32 %v1019_v40, %v1683_v14  ;;  %v893_v43 = vpop.f32.mrb[51].mxu0  ;;  %v1021_v44 = vpop.f32.mrb[51].mxu1 }
 0x163   : > { %1072 = vst [vmem:[%s1690_s20 + $0xc8] sm:$0xff] %v892_v41  ;;  %1104 = vst [vmem:[%s1690_s20 + $0x1c8] sm:$0xff] %v1020_v42 }
 0x166   : > { %v896_v45 = vpop.f32.mrb[52].mxu0  ;;  %v1024_v46 = vpop.f32.mrb[52].mxu1 }
 0x167   : > { %v897_v47 = vadd.f32 %v896_v45, %v1683_v14  ;;  %v1025_v48 = vadd.f32 %v1024_v46, %v1683_v14  ;;  %v898_v49 = vpop.f32.mrb[53].mxu0  ;;  %v1026_v50 = vpop.f32.mrb[53].mxu1 }
 0x168   : > { %v899_v51 = vpop.f32.mrb[54].mxu0  ;;  %v1027_v52 = vpop.f32.mrb[54].mxu1 }
 0x169   : > { %1073 = vst [vmem:[%s1690_s20 + $0xd0] sm:$0xff] %v897_v47  ;;  %1105 = vst [vmem:[%s1690_s20 + $0x1d0] sm:$0xff] %v1025_v48  ;;  %v900_v53 = vadd.f32 %v899_v51, %v1683_v14  ;;  %v1028_v54 = vadd.f32 %v1027_v52, %v1683_v14  ;;  %v901_v55 = vpop.f32.mrb[55].mxu0  ;;  %v1029_v56 = vpop.f32.mrb[55].mxu1 }
 0x16b   : > { %1074 = vst [vmem:[%s1690_s20 + $0xd8] sm:$0xff] %v900_v53  ;;  %1106 = vst [vmem:[%s1690_s20 + $0x1d8] sm:$0xff] %v1028_v54 }
 0x16e   : > { %v904_v57 = vpop.f32.mrb[56].mxu0  ;;  %v1032_v58 = vpop.f32.mrb[56].mxu1 }
 0x16f   : > { %v905_v59 = vadd.f32 %v904_v57, %v1683_v14  ;;  %v1033_v60 = vadd.f32 %v1032_v58, %v1683_v14  ;;  %v906_v61 = vpop.f32.mrb[57].mxu0  ;;  %v1034_v62 = vpop.f32.mrb[57].mxu1 }
 0x170   : > { %v907_v63 = vpop.f32.mrb[58].mxu0  ;;  %v1035_v0 = vpop.f32.mrb[58].mxu1 }
 0x171   : > { %1075 = vst [vmem:[%s1690_s20 + $0xe0] sm:$0xff] %v905_v59  ;;  %1107 = vst [vmem:[%s1690_s20 + $0x1e0] sm:$0xff] %v1033_v60  ;;  %v908_v1 = vadd.f32 %v907_v63, %v1683_v14  ;;  %v1036_v2 = vadd.f32 %v1035_v0, %v1683_v14  ;;  %v909_v3 = vpop.f32.mrb[59].mxu0  ;;  %v1037_v4 = vpop.f32.mrb[59].mxu1 }
 0x173   : > { %1076 = vst [vmem:[%s1690_s20 + $0xe8] sm:$0xff] %v908_v1  ;;  %1108 = vst [vmem:[%s1690_s20 + $0x1e8] sm:$0xff] %v1036_v2 }
 0x176   : > { %v912_v5 = vpop.f32.mrb[60].mxu0  ;;  %v1040_v6 = vpop.f32.mrb[60].mxu1 }
 0x177   : > { %v913_v7 = vadd.f32 %v912_v5, %v1683_v14  ;;  %v1041_v8 = vadd.f32 %v1040_v6, %v1683_v14  ;;  %v914_v9 = vpop.f32.mrb[61].mxu0  ;;  %v1042_v10 = vpop.f32.mrb[61].mxu1 }
 0x178   : > { %v915_v11 = vpop.f32.mrb[62].mxu0  ;;  %v1043_v12 = vpop.f32.mrb[62].mxu1 }
 0x179   : > { %1077 = vst [vmem:[%s1690_s20 + $0xf0] sm:$0xff] %v913_v7  ;;  %1109 = vst [vmem:[%s1690_s20 + $0x1f0] sm:$0xff] %v1041_v8  ;;  %v916_v13 = vadd.f32 %v915_v11, %v1683_v14  ;;  %v1044_v15 = vadd.f32 %v1043_v12, %v1683_v14  ;;  %v917_v16 = vpop.f32.mrb[63].mxu0  ;;  %v1045_v17 = vpop.f32.mrb[63].mxu1 }
 0x17b   : > { %1078 = vst [vmem:[%s1690_s20 + $0xf8] sm:$0xff] %v916_v13  ;;  %1110 = vst [vmem:[%s1690_s20 + $0x1f8] sm:$0xff] %v1044_v15 }
 0x17c PF: > { %s13_s14 = sadd.s32 1, %s1506_s14   ;;  %s1833_s12 = smov %s1502_s13 }
 0x17d   : > { %p10_p5 = scmp.ge.s32.totalorder %s13_s14, 6   ;;  %s1834_s13 = smov %s1836_s15 }
 0x17f   :  { %12 = sbr.rel (!%p10_p5) target bundleno = 2 (0x2), region = 68 }

</bundles_post_ra>
